<compile_context>
chip_gen: v6e
topology: v6e:2x2x1
jax: 0.10.0
libtpu: 0.0.40
codegen_flags: <defaults>
</compile_context>

<pallas_src>
import jax
import jax.numpy as jnp
from jax import lax
from jax.experimental import pallas as pl
from jax.experimental.pallas import tpu as pltpu


def cbow_kernel(idx_ref, emb_hbm, w_ref, b_ref, out_ref, emb_vmem, gbuf, sem):
    i = pl.program_id(0)          # batch-tile index
    j = pl.program_id(1)          # vocab-tile index
    C, bm, _ = gbuf.shape

    # ---- once per batch tile: DMA-gather C embedding rows per batch row ----
    @pl.when(j == 0)
    def _gather_and_mean():
        row0 = i * bm             # first global batch row of this tile

        def start_row(b):
            for c in range(C):
                tok = idx_ref[(row0 + b) * C + c]
                pltpu.make_async_copy(emb_hbm.at[tok], gbuf.at[c, b], sem).start()

        def wait_row(b):
            for c in range(C):
                # same-size descriptor; wait only needs size + semaphore + dst
                pltpu.make_async_copy(emb_hbm.at[0], gbuf.at[c, b], sem).wait()

        lookahead = min(8, bm)    # batch rows of gather DMAs kept in flight
        for b in range(lookahead):            # prime the gather pipeline
            start_row(b)

        @pl.loop(0, bm - lookahead)
        def _(b):
            start_row(b + lookahead)
            wait_row(b)

        @pl.loop(bm - lookahead, bm)
        def _(b):
            wait_row(b)

        # mean over the context window: C cheap VPU adds, no XLU reduce.
        acc = gbuf[0].astype(jnp.float32)
        for c in range(1, C):
            acc = acc + gbuf[c].astype(jnp.float32)
        emb_vmem[...] = (acc * (1.0 / C)).astype(emb_vmem.dtype)

    # ---- every vocab tile: (bm, E) x (tn, E)^T on the MXU + bias -----------
    out = lax.dot_general(emb_vmem[...], w_ref[...],
                          dimension_numbers=(((1,), (1,)), ((), ())),
                          preferred_element_type=jnp.float32)
    out_ref[...] = out + b_ref[...]


def _round_up(x, m):
    return (x + m - 1) // m * m


def cbow_forward(idx, emb_table, lin_w, lin_b, *,
                 bm=128, tn=512, compute_dtype=jnp.bfloat16):
    """idx: (B, C) int; emb_table: (V, E); lin_w: (V, E); lin_b: (V,)."""
    B, C = idx.shape
    V, E = emb_table.shape
    assert lin_w.shape == (V, E) and lin_b.shape == (V,)

    bm = min(bm, _round_up(B, 8))          # 8-aligned batch tile
    tn = min(tn, _round_up(V, 128))        # 128-aligned (lane-dense) vocab tile
    B_pad = _round_up(B, bm)
    V_pad = _round_up(V, tn)

    idx_flat = jnp.pad(idx.astype(jnp.int32),
                       ((0, B_pad - B), (0, 0))).reshape(-1)     # SMEM-friendly 1-D
    emb_f32 = emb_table.astype(jnp.float32)                      # stays in HBM
    w_p = jnp.pad(lin_w, ((0, V_pad - V), (0, 0))).astype(compute_dtype)
    b_p = jnp.pad(lin_b, (0, V_pad - V)).astype(jnp.float32).reshape(1, V_pad)

    grid = (B_pad // bm, V_pad // tn)

    out = pl.pallas_call(
        cbow_kernel,
        out_shape=jax.ShapeDtypeStruct((B_pad, V_pad), jnp.float32),
        grid_spec=pltpu.PrefetchScalarGridSpec(
            num_scalar_prefetch=1,                               # idx -> SMEM
            grid=grid,
            in_specs=[
                pl.BlockSpec(memory_space=pl.ANY),               # emb table, HBM-resident
                pl.BlockSpec((tn, E), lambda i, j, _idx: (j, 0)),  # weight vocab tile
                pl.BlockSpec((1, tn), lambda i, j, _idx: (0, j)),  # bias vocab tile
            ],
            out_specs=pl.BlockSpec((bm, tn), lambda i, j, _idx: (i, j)),
            scratch_shapes=[
                pltpu.VMEM((bm, E), compute_dtype),      # mean embeddings (reused over j)
                pltpu.VMEM((C, bm, E), jnp.float32),     # gathered context rows
                pltpu.SemaphoreType.DMA(()),
            ]),
        compiler_params=pltpu.CompilerParams(
            dimension_semantics=("parallel", "arbitrary")),
    )(idx_flat, emb_f32, w_p, b_p)

    return out[:B, :V]


if __name__ == "__main__":
    # Small but tiling-meaningful shapes; B and V deliberately not tile-aligned
    # to exercise the padding path.
    B, C = 200, 4          # batch, context window
    E, V = 128, 1000       # embedding_dim, vocab_size

    key = jax.random.PRNGKey(0)
    k_idx, k_emb, k_w, k_b = jax.random.split(key, 4)

    idx = jax.random.randint(k_idx, (B, C), 0, V, dtype=jnp.int32)
    # nn.Embedding init: N(0, 1)
    emb_table = jax.random.normal(k_emb, (V, E), dtype=jnp.float32)
    # nn.Linear init: U(-1/sqrt(E), 1/sqrt(E))
    bound = 1.0 / (E ** 0.5)
    lin_w = jax.random.uniform(k_w, (V, E), minval=-bound, maxval=bound,
                               dtype=jnp.float32)
    lin_b = jax.random.uniform(k_b, (V,), minval=-bound, maxval=bound,
                               dtype=jnp.float32)

    out = jax.block_until_ready(cbow_forward(idx, emb_table, lin_w, lin_b))

    # Pure-JAX f32 reference; kernel uses bf16 MXU operands with f32 accum,
    # so allow a correspondingly loose tolerance.
    ref = jnp.take(emb_table, idx, axis=0).mean(axis=1) @ lin_w.T + lin_b
    assert out.shape == (B, V)
    assert jnp.allclose(out, ref, rtol=2e-2, atol=2e-2), \
        float(jnp.max(jnp.abs(out - ref)))

    print("KERNEL_OK")
</pallas_src>

<mosaic_0001>
module attributes {stable_mosaic.version = 11 : i64} {
  func.func @cbow_kernel(%arg0: i32, %arg1: i32, %arg2: memref<1024xi32, #tpu.memory_space<smem>>, %arg3: memref<1000x128xf32, #tpu.memory_space<any>>, %arg4: memref<512x128xbf16, #tpu.memory_space<vmem>>, %arg5: memref<1x512xf32, #tpu.memory_space<vmem>>, %arg6: memref<128x512xf32, #tpu.memory_space<vmem>>, %arg7: memref<128x128xbf16, #tpu.memory_space<vmem>>, %arg8: memref<4x128x128xf32, #tpu.memory_space<vmem>>, %arg9: memref<!tpu.dma_semaphore, #tpu.memory_space<semaphore_mem>>) attributes {dimension_semantics = [#tpu.dimension_semantics<parallel>, #tpu.dimension_semantics<arbitrary>], iteration_bounds = array<i64: 2, 2>, scalar_prefetch = 1 : i64, scratch_operands = 3 : i64, tpu.core_type = #tpu.core_type<tc>, window_params = [{}, {transform_indices = @transform_1, window_bounds = array<i64: 512, 128>}, {transform_indices = @transform_2, window_bounds = array<i64: 1, 512>}, {transform_indices = @transform_3, window_bounds = array<i64: 128, 512>}]} {
    %c0_i32 = arith.constant 0 : i32
    %0 = arith.cmpi eq, %arg1, %c0_i32 : i32
    %1 = arith.extui %0 : i1 to i32
    %c0_i32_0 = arith.constant 0 : i32
    %2 = arith.cmpi ne, %1, %c0_i32_0 : i32
    scf.if %2 {
      %c128_i32 = arith.constant 128 : i32
      %10 = arith.muli %arg0, %c128_i32 : i32
      %c0_i32_8 = arith.constant 0 : i32
      %11 = arith.addi %10, %c0_i32_8 : i32
      %c4_i32 = arith.constant 4 : i32
      %12 = arith.muli %11, %c4_i32 : i32
      %c0_i32_9 = arith.constant 0 : i32
      %13 = arith.addi %12, %c0_i32_9 : i32
      %14 = arith.index_cast %13 : i32 to index
      %15 = memref.load %arg2[%14] : memref<1024xi32, #tpu.memory_space<smem>>
      %c0_i32_10 = arith.constant 0 : i32
      %c0_i32_11 = arith.constant 0 : i32
      %c0_i32_12 = arith.constant 0 : i32
      %16 = tpu.memref_slice %arg3[%15, %c0_i32_12] : memref<1000x128xf32, #tpu.memory_space<any>> -> memref<1x128xf32, #tpu.memory_space<any>>
      %17 = tpu.memref_squeeze %16 : memref<1x128xf32, #tpu.memory_space<any>> -> memref<128xf32, #tpu.memory_space<any>>
      %c0_i32_13 = arith.constant 0 : i32
      %18 = tpu.memref_slice %arg8[%c0_i32_10, %c0_i32_11, %c0_i32_13] : memref<4x128x128xf32, #tpu.memory_space<vmem>> -> memref<1x1x128xf32, #tpu.memory_space<vmem>>
      %19 = tpu.memref_squeeze %18 : memref<1x1x128xf32, #tpu.memory_space<vmem>> -> memref<128xf32, #tpu.memory_space<vmem>>
      tpu.enqueue_dma source(%17 : memref<128xf32, #tpu.memory_space<any>>) target(%19 : memref<128xf32, #tpu.memory_space<vmem>>) target_semaphore(%arg9 : memref<!tpu.dma_semaphore, #tpu.memory_space<semaphore_mem>>)
      %c0_i32_14 = arith.constant 0 : i32
      %20 = arith.addi %10, %c0_i32_14 : i32
      %c4_i32_15 = arith.constant 4 : i32
      %21 = arith.muli %20, %c4_i32_15 : i32
      %c1_i32 = arith.constant 1 : i32
      %22 = arith.addi %21, %c1_i32 : i32
      %23 = arith.index_cast %22 : i32 to index
      %24 = memref.load %arg2[%23] : memref<1024xi32, #tpu.memory_space<smem>>
      %c1_i32_16 = arith.constant 1 : i32
      %c0_i32_17 = arith.constant 0 : i32
      %c0_i32_18 = arith.constant 0 : i32
      %25 = tpu.memref_slice %arg3[%24, %c0_i32_18] : memref<1000x128xf32, #tpu.memory_space<any>> -> memref<1x128xf32, #tpu.memory_space<any>>
      %26 = tpu.memref_squeeze %25 : memref<1x128xf32, #tpu.memory_space<any>> -> memref<128xf32, #tpu.memory_space<any>>
      %c0_i32_19 = arith.constant 0 : i32
      %27 = tpu.memref_slice %arg8[%c1_i32_16, %c0_i32_17, %c0_i32_19] : memref<4x128x128xf32, #tpu.memory_space<vmem>> -> memref<1x1x128xf32, #tpu.memory_space<vmem>>
      %28 = tpu.memref_squeeze %27 : memref<1x1x128xf32, #tpu.memory_space<vmem>> -> memref<128xf32, #tpu.memory_space<vmem>>
      tpu.enqueue_dma source(%26 : memref<128xf32, #tpu.memory_space<any>>) target(%28 : memref<128xf32, #tpu.memory_space<vmem>>) target_semaphore(%arg9 : memref<!tpu.dma_semaphore, #tpu.memory_space<semaphore_mem>>)
      %c0_i32_20 = arith.constant 0 : i32
      %29 = arith.addi %10, %c0_i32_20 : i32
      %c4_i32_21 = arith.constant 4 : i32
      %30 = arith.muli %29, %c4_i32_21 : i32
      %c2_i32 = arith.constant 2 : i32
      %31 = arith.addi %30, %c2_i32 : i32
      %32 = arith.index_cast %31 : i32 to index
      %33 = memref.load %arg2[%32] : memref<1024xi32, #tpu.memory_space<smem>>
      %c2_i32_22 = arith.constant 2 : i32
      %c0_i32_23 = arith.constant 0 : i32
      %c0_i32_24 = arith.constant 0 : i32
      %34 = tpu.memref_slice %arg3[%33, %c0_i32_24] : memref<1000x128xf32, #tpu.memory_space<any>> -> memref<1x128xf32, #tpu.memory_space<any>>
      %35 = tpu.memref_squeeze %34 : memref<1x128xf32, #tpu.memory_space<any>> -> memref<128xf32, #tpu.memory_space<any>>
      %c0_i32_25 = arith.constant 0 : i32
      %36 = tpu.memref_slice %arg8[%c2_i32_22, %c0_i32_23, %c0_i32_25] : memref<4x128x128xf32, #tpu.memory_space<vmem>> -> memref<1x1x128xf32, #tpu.memory_space<vmem>>
      %37 = tpu.memref_squeeze %36 : memref<1x1x128xf32, #tpu.memory_space<vmem>> -> memref<128xf32, #tpu.memory_space<vmem>>
      tpu.enqueue_dma source(%35 : memref<128xf32, #tpu.memory_space<any>>) target(%37 : memref<128xf32, #tpu.memory_space<vmem>>) target_semaphore(%arg9 : memref<!tpu.dma_semaphore, #tpu.memory_space<semaphore_mem>>)
      %c0_i32_26 = arith.constant 0 : i32
      %38 = arith.addi %10, %c0_i32_26 : i32
      %c4_i32_27 = arith.constant 4 : i32
      %39 = arith.muli %38, %c4_i32_27 : i32
      %c3_i32 = arith.constant 3 : i32
      %40 = arith.addi %39, %c3_i32 : i32
      %41 = arith.index_cast %40 : i32 to index
      %42 = memref.load %arg2[%41] : memref<1024xi32, #tpu.memory_space<smem>>
      %c3_i32_28 = arith.constant 3 : i32
      %c0_i32_29 = arith.constant 0 : i32
      %c0_i32_30 = arith.constant 0 : i32
      %43 = tpu.memref_slice %arg3[%42, %c0_i32_30] : memref<1000x128xf32, #tpu.memory_space<any>> -> memref<1x128xf32, #tpu.memory_space<any>>
      %44 = tpu.memref_squeeze %43 : memref<1x128xf32, #tpu.memory_space<any>> -> memref<128xf32, #tpu.memory_space<any>>
      %c0_i32_31 = arith.constant 0 : i32
      %45 = tpu.memref_slice %arg8[%c3_i32_28, %c0_i32_29, %c0_i32_31] : memref<4x128x128xf32, #tpu.memory_space<vmem>> -> memref<1x1x128xf32, #tpu.memory_space<vmem>>
      %46 = tpu.memref_squeeze %45 : memref<1x1x128xf32, #tpu.memory_space<vmem>> -> memref<128xf32, #tpu.memory_space<vmem>>
      tpu.enqueue_dma source(%44 : memref<128xf32, #tpu.memory_space<any>>) target(%46 : memref<128xf32, #tpu.memory_space<vmem>>) target_semaphore(%arg9 : memref<!tpu.dma_semaphore, #tpu.memory_space<semaphore_mem>>)
      %c1_i32_32 = arith.constant 1 : i32
      %47 = arith.addi %10, %c1_i32_32 : i32
      %c4_i32_33 = arith.constant 4 : i32
      %48 = arith.muli %47, %c4_i32_33 : i32
      %c0_i32_34 = arith.constant 0 : i32
      %49 = arith.addi %48, %c0_i32_34 : i32
      %50 = arith.index_cast %49 : i32 to index
      %51 = memref.load %arg2[%50] : memref<1024xi32, #tpu.memory_space<smem>>
      %c0_i32_35 = arith.constant 0 : i32
      %c1_i32_36 = arith.constant 1 : i32
      %c0_i32_37 = arith.constant 0 : i32
      %52 = tpu.memref_slice %arg3[%51, %c0_i32_37] : memref<1000x128xf32, #tpu.memory_space<any>> -> memref<1x128xf32, #tpu.memory_space<any>>
      %53 = tpu.memref_squeeze %52 : memref<1x128xf32, #tpu.memory_space<any>> -> memref<128xf32, #tpu.memory_space<any>>
      %c0_i32_38 = arith.constant 0 : i32
      %54 = tpu.memref_slice %arg8[%c0_i32_35, %c1_i32_36, %c0_i32_38] : memref<4x128x128xf32, #tpu.memory_space<vmem>> -> memref<1x1x128xf32, #tpu.memory_space<vmem>>
      %55 = tpu.memref_squeeze %54 : memref<1x1x128xf32, #tpu.memory_space<vmem>> -> memref<128xf32, #tpu.memory_space<vmem>>
      tpu.enqueue_dma source(%53 : memref<128xf32, #tpu.memory_space<any>>) target(%55 : memref<128xf32, #tpu.memory_space<vmem>>) target_semaphore(%arg9 : memref<!tpu.dma_semaphore, #tpu.memory_space<semaphore_mem>>)
      %c1_i32_39 = arith.constant 1 : i32
      %56 = arith.addi %10, %c1_i32_39 : i32
      %c4_i32_40 = arith.constant 4 : i32
      %57 = arith.muli %56, %c4_i32_40 : i32
      %c1_i32_41 = arith.constant 1 : i32
      %58 = arith.addi %57, %c1_i32_41 : i32
      %59 = arith.index_cast %58 : i32 to index
      %60 = memref.load %arg2[%59] : memref<1024xi32, #tpu.memory_space<smem>>
      %c1_i32_42 = arith.constant 1 : i32
      %c1_i32_43 = arith.constant 1 : i32
      %c0_i32_44 = arith.constant 0 : i32
      %61 = tpu.memref_slice %arg3[%60, %c0_i32_44] : memref<1000x128xf32, #tpu.memory_space<any>> -> memref<1x128xf32, #tpu.memory_space<any>>
      %62 = tpu.memref_squeeze %61 : memref<1x128xf32, #tpu.memory_space<any>> -> memref<128xf32, #tpu.memory_space<any>>
      %c0_i32_45 = arith.constant 0 : i32
      %63 = tpu.memref_slice %arg8[%c1_i32_42, %c1_i32_43, %c0_i32_45] : memref<4x128x128xf32, #tpu.memory_space<vmem>> -> memref<1x1x128xf32, #tpu.memory_space<vmem>>
      %64 = tpu.memref_squeeze %63 : memref<1x1x128xf32, #tpu.memory_space<vmem>> -> memref<128xf32, #tpu.memory_space<vmem>>
      tpu.enqueue_dma source(%62 : memref<128xf32, #tpu.memory_space<any>>) target(%64 : memref<128xf32, #tpu.memory_space<vmem>>) target_semaphore(%arg9 : memref<!tpu.dma_semaphore, #tpu.memory_space<semaphore_mem>>)
      %c1_i32_46 = arith.constant 1 : i32
      %65 = arith.addi %10, %c1_i32_46 : i32
      %c4_i32_47 = arith.constant 4 : i32
      %66 = arith.muli %65, %c4_i32_47 : i32
      %c2_i32_48 = arith.constant 2 : i32
      %67 = arith.addi %66, %c2_i32_48 : i32
      %68 = arith.index_cast %67 : i32 to index
      %69 = memref.load %arg2[%68] : memref<1024xi32, #tpu.memory_space<smem>>
      %c2_i32_49 = arith.constant 2 : i32
      %c1_i32_50 = arith.constant 1 : i32
      %c0_i32_51 = arith.constant 0 : i32
      %70 = tpu.memref_slice %arg3[%69, %c0_i32_51] : memref<1000x128xf32, #tpu.memory_space<any>> -> memref<1x128xf32, #tpu.memory_space<any>>
      %71 = tpu.memref_squeeze %70 : memref<1x128xf32, #tpu.memory_space<any>> -> memref<128xf32, #tpu.memory_space<any>>
      %c0_i32_52 = arith.constant 0 : i32
      %72 = tpu.memref_slice %arg8[%c2_i32_49, %c1_i32_50, %c0_i32_52] : memref<4x128x128xf32, #tpu.memory_space<vmem>> -> memref<1x1x128xf32, #tpu.memory_space<vmem>>
      %73 = tpu.memref_squeeze %72 : memref<1x1x128xf32, #tpu.memory_space<vmem>> -> memref<128xf32, #tpu.memory_space<vmem>>
      tpu.enqueue_dma source(%71 : memref<128xf32, #tpu.memory_space<any>>) target(%73 : memref<128xf32, #tpu.memory_space<vmem>>) target_semaphore(%arg9 : memref<!tpu.dma_semaphore, #tpu.memory_space<semaphore_mem>>)
      %c1_i32_53 = arith.constant 1 : i32
      %74 = arith.addi %10, %c1_i32_53 : i32
      %c4_i32_54 = arith.constant 4 : i32
      %75 = arith.muli %74, %c4_i32_54 : i32
      %c3_i32_55 = arith.constant 3 : i32
      %76 = arith.addi %75, %c3_i32_55 : i32
      %77 = arith.index_cast %76 : i32 to index
      %78 = memref.load %arg2[%77] : memref<1024xi32, #tpu.memory_space<smem>>
      %c3_i32_56 = arith.constant 3 : i32
      %c1_i32_57 = arith.constant 1 : i32
      %c0_i32_58 = arith.constant 0 : i32
      %79 = tpu.memref_slice %arg3[%78, %c0_i32_58] : memref<1000x128xf32, #tpu.memory_space<any>> -> memref<1x128xf32, #tpu.memory_space<any>>
      %80 = tpu.memref_squeeze %79 : memref<1x128xf32, #tpu.memory_space<any>> -> memref<128xf32, #tpu.memory_space<any>>
      %c0_i32_59 = arith.constant 0 : i32
      %81 = tpu.memref_slice %arg8[%c3_i32_56, %c1_i32_57, %c0_i32_59] : memref<4x128x128xf32, #tpu.memory_space<vmem>> -> memref<1x1x128xf32, #tpu.memory_space<vmem>>
      %82 = tpu.memref_squeeze %81 : memref<1x1x128xf32, #tpu.memory_space<vmem>> -> memref<128xf32, #tpu.memory_space<vmem>>
      tpu.enqueue_dma source(%80 : memref<128xf32, #tpu.memory_space<any>>) target(%82 : memref<128xf32, #tpu.memory_space<vmem>>) target_semaphore(%arg9 : memref<!tpu.dma_semaphore, #tpu.memory_space<semaphore_mem>>)
      %c2_i32_60 = arith.constant 2 : i32
      %83 = arith.addi %10, %c2_i32_60 : i32
      %c4_i32_61 = arith.constant 4 : i32
      %84 = arith.muli %83, %c4_i32_61 : i32
      %c0_i32_62 = arith.constant 0 : i32
      %85 = arith.addi %84, %c0_i32_62 : i32
      %86 = arith.index_cast %85 : i32 to index
      %87 = memref.load %arg2[%86] : memref<1024xi32, #tpu.memory_space<smem>>
      %c0_i32_63 = arith.constant 0 : i32
      %c2_i32_64 = arith.constant 2 : i32
      %c0_i32_65 = arith.constant 0 : i32
      %88 = tpu.memref_slice %arg3[%87, %c0_i32_65] : memref<1000x128xf32, #tpu.memory_space<any>> -> memref<1x128xf32, #tpu.memory_space<any>>
      %89 = tpu.memref_squeeze %88 : memref<1x128xf32, #tpu.memory_space<any>> -> memref<128xf32, #tpu.memory_space<any>>
      %c0_i32_66 = arith.constant 0 : i32
      %90 = tpu.memref_slice %arg8[%c0_i32_63, %c2_i32_64, %c0_i32_66] : memref<4x128x128xf32, #tpu.memory_space<vmem>> -> memref<1x1x128xf32, #tpu.memory_space<vmem>>
      %91 = tpu.memref_squeeze %90 : memref<1x1x128xf32, #tpu.memory_space<vmem>> -> memref<128xf32, #tpu.memory_space<vmem>>
      tpu.enqueue_dma source(%89 : memref<128xf32, #tpu.memory_space<any>>) target(%91 : memref<128xf32, #tpu.memory_space<vmem>>) target_semaphore(%arg9 : memref<!tpu.dma_semaphore, #tpu.memory_space<semaphore_mem>>)
      %c2_i32_67 = arith.constant 2 : i32
      %92 = arith.addi %10, %c2_i32_67 : i32
      %c4_i32_68 = arith.constant 4 : i32
      %93 = arith.muli %92, %c4_i32_68 : i32
      %c1_i32_69 = arith.constant 1 : i32
      %94 = arith.addi %93, %c1_i32_69 : i32
      %95 = arith.index_cast %94 : i32 to index
      %96 = memref.load %arg2[%95] : memref<1024xi32, #tpu.memory_space<smem>>
      %c1_i32_70 = arith.constant 1 : i32
      %c2_i32_71 = arith.constant 2 : i32
      %c0_i32_72 = arith.constant 0 : i32
      %97 = tpu.memref_slice %arg3[%96, %c0_i32_72] : memref<1000x128xf32, #tpu.memory_space<any>> -> memref<1x128xf32, #tpu.memory_space<any>>
      %98 = tpu.memref_squeeze %97 : memref<1x128xf32, #tpu.memory_space<any>> -> memref<128xf32, #tpu.memory_space<any>>
      %c0_i32_73 = arith.constant 0 : i32
      %99 = tpu.memref_slice %arg8[%c1_i32_70, %c2_i32_71, %c0_i32_73] : memref<4x128x128xf32, #tpu.memory_space<vmem>> -> memref<1x1x128xf32, #tpu.memory_space<vmem>>
      %100 = tpu.memref_squeeze %99 : memref<1x1x128xf32, #tpu.memory_space<vmem>> -> memref<128xf32, #tpu.memory_space<vmem>>
      tpu.enqueue_dma source(%98 : memref<128xf32, #tpu.memory_space<any>>) target(%100 : memref<128xf32, #tpu.memory_space<vmem>>) target_semaphore(%arg9 : memref<!tpu.dma_semaphore, #tpu.memory_space<semaphore_mem>>)
      %c2_i32_74 = arith.constant 2 : i32
      %101 = arith.addi %10, %c2_i32_74 : i32
      %c4_i32_75 = arith.constant 4 : i32
      %102 = arith.muli %101, %c4_i32_75 : i32
      %c2_i32_76 = arith.constant 2 : i32
      %103 = arith.addi %102, %c2_i32_76 : i32
      %104 = arith.index_cast %103 : i32 to index
      %105 = memref.load %arg2[%104] : memref<1024xi32, #tpu.memory_space<smem>>
      %c2_i32_77 = arith.constant 2 : i32
      %c2_i32_78 = arith.constant 2 : i32
      %c0_i32_79 = arith.constant 0 : i32
      %106 = tpu.memref_slice %arg3[%105, %c0_i32_79] : memref<1000x128xf32, #tpu.memory_space<any>> -> memref<1x128xf32, #tpu.memory_space<any>>
      %107 = tpu.memref_squeeze %106 : memref<1x128xf32, #tpu.memory_space<any>> -> memref<128xf32, #tpu.memory_space<any>>
      %c0_i32_80 = arith.constant 0 : i32
      %108 = tpu.memref_slice %arg8[%c2_i32_77, %c2_i32_78, %c0_i32_80] : memref<4x128x128xf32, #tpu.memory_space<vmem>> -> memref<1x1x128xf32, #tpu.memory_space<vmem>>
      %109 = tpu.memref_squeeze %108 : memref<1x1x128xf32, #tpu.memory_space<vmem>> -> memref<128xf32, #tpu.memory_space<vmem>>
      tpu.enqueue_dma source(%107 : memref<128xf32, #tpu.memory_space<any>>) target(%109 : memref<128xf32, #tpu.memory_space<vmem>>) target_semaphore(%arg9 : memref<!tpu.dma_semaphore, #tpu.memory_space<semaphore_mem>>)
      %c2_i32_81 = arith.constant 2 : i32
      %110 = arith.addi %10, %c2_i32_81 : i32
      %c4_i32_82 = arith.constant 4 : i32
      %111 = arith.muli %110, %c4_i32_82 : i32
      %c3_i32_83 = arith.constant 3 : i32
      %112 = arith.addi %111, %c3_i32_83 : i32
      %113 = arith.index_cast %112 : i32 to index
      %114 = memref.load %arg2[%113] : memref<1024xi32, #tpu.memory_space<smem>>
      %c3_i32_84 = arith.constant 3 : i32
      %c2_i32_85 = arith.constant 2 : i32
      %c0_i32_86 = arith.constant 0 : i32
      %115 = tpu.memref_slice %arg3[%114, %c0_i32_86] : memref<1000x128xf32, #tpu.memory_space<any>> -> memref<1x128xf32, #tpu.memory_space<any>>
      %116 = tpu.memref_squeeze %115 : memref<1x128xf32, #tpu.memory_space<any>> -> memref<128xf32, #tpu.memory_space<any>>
      %c0_i32_87 = arith.constant 0 : i32
      %117 = tpu.memref_slice %arg8[%c3_i32_84, %c2_i32_85, %c0_i32_87] : memref<4x128x128xf32, #tpu.memory_space<vmem>> -> memref<1x1x128xf32, #tpu.memory_space<vmem>>
      %118 = tpu.memref_squeeze %117 : memref<1x1x128xf32, #tpu.memory_space<vmem>> -> memref<128xf32, #tpu.memory_space<vmem>>
      tpu.enqueue_dma source(%116 : memref<128xf32, #tpu.memory_space<any>>) target(%118 : memref<128xf32, #tpu.memory_space<vmem>>) target_semaphore(%arg9 : memref<!tpu.dma_semaphore, #tpu.memory_space<semaphore_mem>>)
      %c3_i32_88 = arith.constant 3 : i32
      %119 = arith.addi %10, %c3_i32_88 : i32
      %c4_i32_89 = arith.constant 4 : i32
      %120 = arith.muli %119, %c4_i32_89 : i32
      %c0_i32_90 = arith.constant 0 : i32
      %121 = arith.addi %120, %c0_i32_90 : i32
      %122 = arith.index_cast %121 : i32 to index
      %123 = memref.load %arg2[%122] : memref<1024xi32, #tpu.memory_space<smem>>
      %c0_i32_91 = arith.constant 0 : i32
      %c3_i32_92 = arith.constant 3 : i32
      %c0_i32_93 = arith.constant 0 : i32
      %124 = tpu.memref_slice %arg3[%123, %c0_i32_93] : memref<1000x128xf32, #tpu.memory_space<any>> -> memref<1x128xf32, #tpu.memory_space<any>>
      %125 = tpu.memref_squeeze %124 : memref<1x128xf32, #tpu.memory_space<any>> -> memref<128xf32, #tpu.memory_space<any>>
      %c0_i32_94 = arith.constant 0 : i32
      %126 = tpu.memref_slice %arg8[%c0_i32_91, %c3_i32_92, %c0_i32_94] : memref<4x128x128xf32, #tpu.memory_space<vmem>> -> memref<1x1x128xf32, #tpu.memory_space<vmem>>
      %127 = tpu.memref_squeeze %126 : memref<1x1x128xf32, #tpu.memory_space<vmem>> -> memref<128xf32, #tpu.memory_space<vmem>>
      tpu.enqueue_dma source(%125 : memref<128xf32, #tpu.memory_space<any>>) target(%127 : memref<128xf32, #tpu.memory_space<vmem>>) target_semaphore(%arg9 : memref<!tpu.dma_semaphore, #tpu.memory_space<semaphore_mem>>)
      %c3_i32_95 = arith.constant 3 : i32
      %128 = arith.addi %10, %c3_i32_95 : i32
      %c4_i32_96 = arith.constant 4 : i32
      %129 = arith.muli %128, %c4_i32_96 : i32
      %c1_i32_97 = arith.constant 1 : i32
      %130 = arith.addi %129, %c1_i32_97 : i32
      %131 = arith.index_cast %130 : i32 to index
      %132 = memref.load %arg2[%131] : memref<1024xi32, #tpu.memory_space<smem>>
      %c1_i32_98 = arith.constant 1 : i32
      %c3_i32_99 = arith.constant 3 : i32
      %c0_i32_100 = arith.constant 0 : i32
      %133 = tpu.memref_slice %arg3[%132, %c0_i32_100] : memref<1000x128xf32, #tpu.memory_space<any>> -> memref<1x128xf32, #tpu.memory_space<any>>
      %134 = tpu.memref_squeeze %133 : memref<1x128xf32, #tpu.memory_space<any>> -> memref<128xf32, #tpu.memory_space<any>>
      %c0_i32_101 = arith.constant 0 : i32
      %135 = tpu.memref_slice %arg8[%c1_i32_98, %c3_i32_99, %c0_i32_101] : memref<4x128x128xf32, #tpu.memory_space<vmem>> -> memref<1x1x128xf32, #tpu.memory_space<vmem>>
      %136 = tpu.memref_squeeze %135 : memref<1x1x128xf32, #tpu.memory_space<vmem>> -> memref<128xf32, #tpu.memory_space<vmem>>
      tpu.enqueue_dma source(%134 : memref<128xf32, #tpu.memory_space<any>>) target(%136 : memref<128xf32, #tpu.memory_space<vmem>>) target_semaphore(%arg9 : memref<!tpu.dma_semaphore, #tpu.memory_space<semaphore_mem>>)
      %c3_i32_102 = arith.constant 3 : i32
      %137 = arith.addi %10, %c3_i32_102 : i32
      %c4_i32_103 = arith.constant 4 : i32
      %138 = arith.muli %137, %c4_i32_103 : i32
      %c2_i32_104 = arith.constant 2 : i32
      %139 = arith.addi %138, %c2_i32_104 : i32
      %140 = arith.index_cast %139 : i32 to index
      %141 = memref.load %arg2[%140] : memref<1024xi32, #tpu.memory_space<smem>>
      %c2_i32_105 = arith.constant 2 : i32
      %c3_i32_106 = arith.constant 3 : i32
      %c0_i32_107 = arith.constant 0 : i32
      %142 = tpu.memref_slice %arg3[%141, %c0_i32_107] : memref<1000x128xf32, #tpu.memory_space<any>> -> memref<1x128xf32, #tpu.memory_space<any>>
      %143 = tpu.memref_squeeze %142 : memref<1x128xf32, #tpu.memory_space<any>> -> memref<128xf32, #tpu.memory_space<any>>
      %c0_i32_108 = arith.constant 0 : i32
      %144 = tpu.memref_slice %arg8[%c2_i32_105, %c3_i32_106, %c0_i32_108] : memref<4x128x128xf32, #tpu.memory_space<vmem>> -> memref<1x1x128xf32, #tpu.memory_space<vmem>>
      %145 = tpu.memref_squeeze %144 : memref<1x1x128xf32, #tpu.memory_space<vmem>> -> memref<128xf32, #tpu.memory_space<vmem>>
      tpu.enqueue_dma source(%143 : memref<128xf32, #tpu.memory_space<any>>) target(%145 : memref<128xf32, #tpu.memory_space<vmem>>) target_semaphore(%arg9 : memref<!tpu.dma_semaphore, #tpu.memory_space<semaphore_mem>>)
      %c3_i32_109 = arith.constant 3 : i32
      %146 = arith.addi %10, %c3_i32_109 : i32
      %c4_i32_110 = arith.constant 4 : i32
      %147 = arith.muli %146, %c4_i32_110 : i32
      %c3_i32_111 = arith.constant 3 : i32
      %148 = arith.addi %147, %c3_i32_111 : i32
      %149 = arith.index_cast %148 : i32 to index
      %150 = memref.load %arg2[%149] : memref<1024xi32, #tpu.memory_space<smem>>
      %c3_i32_112 = arith.constant 3 : i32
      %c3_i32_113 = arith.constant 3 : i32
      %c0_i32_114 = arith.constant 0 : i32
      %151 = tpu.memref_slice %arg3[%150, %c0_i32_114] : memref<1000x128xf32, #tpu.memory_space<any>> -> memref<1x128xf32, #tpu.memory_space<any>>
      %152 = tpu.memref_squeeze %151 : memref<1x128xf32, #tpu.memory_space<any>> -> memref<128xf32, #tpu.memory_space<any>>
      %c0_i32_115 = arith.constant 0 : i32
      %153 = tpu.memref_slice %arg8[%c3_i32_112, %c3_i32_113, %c0_i32_115] : memref<4x128x128xf32, #tpu.memory_space<vmem>> -> memref<1x1x128xf32, #tpu.memory_space<vmem>>
      %154 = tpu.memref_squeeze %153 : memref<1x1x128xf32, #tpu.memory_space<vmem>> -> memref<128xf32, #tpu.memory_space<vmem>>
      tpu.enqueue_dma source(%152 : memref<128xf32, #tpu.memory_space<any>>) target(%154 : memref<128xf32, #tpu.memory_space<vmem>>) target_semaphore(%arg9 : memref<!tpu.dma_semaphore, #tpu.memory_space<semaphore_mem>>)
      %c4_i32_116 = arith.constant 4 : i32
      %155 = arith.addi %10, %c4_i32_116 : i32
      %c4_i32_117 = arith.constant 4 : i32
      %156 = arith.muli %155, %c4_i32_117 : i32
      %c0_i32_118 = arith.constant 0 : i32
      %157 = arith.addi %156, %c0_i32_118 : i32
      %158 = arith.index_cast %157 : i32 to index
      %159 = memref.load %arg2[%158] : memref<1024xi32, #tpu.memory_space<smem>>
      %c0_i32_119 = arith.constant 0 : i32
      %c4_i32_120 = arith.constant 4 : i32
      %c0_i32_121 = arith.constant 0 : i32
      %160 = tpu.memref_slice %arg3[%159, %c0_i32_121] : memref<1000x128xf32, #tpu.memory_space<any>> -> memref<1x128xf32, #tpu.memory_space<any>>
      %161 = tpu.memref_squeeze %160 : memref<1x128xf32, #tpu.memory_space<any>> -> memref<128xf32, #tpu.memory_space<any>>
      %c0_i32_122 = arith.constant 0 : i32
      %162 = tpu.memref_slice %arg8[%c0_i32_119, %c4_i32_120, %c0_i32_122] : memref<4x128x128xf32, #tpu.memory_space<vmem>> -> memref<1x1x128xf32, #tpu.memory_space<vmem>>
      %163 = tpu.memref_squeeze %162 : memref<1x1x128xf32, #tpu.memory_space<vmem>> -> memref<128xf32, #tpu.memory_space<vmem>>
      tpu.enqueue_dma source(%161 : memref<128xf32, #tpu.memory_space<any>>) target(%163 : memref<128xf32, #tpu.memory_space<vmem>>) target_semaphore(%arg9 : memref<!tpu.dma_semaphore, #tpu.memory_space<semaphore_mem>>)
      %c4_i32_123 = arith.constant 4 : i32
      %164 = arith.addi %10, %c4_i32_123 : i32
      %c4_i32_124 = arith.constant 4 : i32
      %165 = arith.muli %164, %c4_i32_124 : i32
      %c1_i32_125 = arith.constant 1 : i32
      %166 = arith.addi %165, %c1_i32_125 : i32
      %167 = arith.index_cast %166 : i32 to index
      %168 = memref.load %arg2[%167] : memref<1024xi32, #tpu.memory_space<smem>>
      %c1_i32_126 = arith.constant 1 : i32
      %c4_i32_127 = arith.constant 4 : i32
      %c0_i32_128 = arith.constant 0 : i32
      %169 = tpu.memref_slice %arg3[%168, %c0_i32_128] : memref<1000x128xf32, #tpu.memory_space<any>> -> memref<1x128xf32, #tpu.memory_space<any>>
      %170 = tpu.memref_squeeze %169 : memref<1x128xf32, #tpu.memory_space<any>> -> memref<128xf32, #tpu.memory_space<any>>
      %c0_i32_129 = arith.constant 0 : i32
      %171 = tpu.memref_slice %arg8[%c1_i32_126, %c4_i32_127, %c0_i32_129] : memref<4x128x128xf32, #tpu.memory_space<vmem>> -> memref<1x1x128xf32, #tpu.memory_space<vmem>>
      %172 = tpu.memref_squeeze %171 : memref<1x1x128xf32, #tpu.memory_space<vmem>> -> memref<128xf32, #tpu.memory_space<vmem>>
      tpu.enqueue_dma source(%170 : memref<128xf32, #tpu.memory_space<any>>) target(%172 : memref<128xf32, #tpu.memory_space<vmem>>) target_semaphore(%arg9 : memref<!tpu.dma_semaphore, #tpu.memory_space<semaphore_mem>>)
      %c4_i32_130 = arith.constant 4 : i32
      %173 = arith.addi %10, %c4_i32_130 : i32
      %c4_i32_131 = arith.constant 4 : i32
      %174 = arith.muli %173, %c4_i32_131 : i32
      %c2_i32_132 = arith.constant 2 : i32
      %175 = arith.addi %174, %c2_i32_132 : i32
      %176 = arith.index_cast %175 : i32 to index
      %177 = memref.load %arg2[%176] : memref<1024xi32, #tpu.memory_space<smem>>
      %c2_i32_133 = arith.constant 2 : i32
      %c4_i32_134 = arith.constant 4 : i32
      %c0_i32_135 = arith.constant 0 : i32
      %178 = tpu.memref_slice %arg3[%177, %c0_i32_135] : memref<1000x128xf32, #tpu.memory_space<any>> -> memref<1x128xf32, #tpu.memory_space<any>>
      %179 = tpu.memref_squeeze %178 : memref<1x128xf32, #tpu.memory_space<any>> -> memref<128xf32, #tpu.memory_space<any>>
      %c0_i32_136 = arith.constant 0 : i32
      %180 = tpu.memref_slice %arg8[%c2_i32_133, %c4_i32_134, %c0_i32_136] : memref<4x128x128xf32, #tpu.memory_space<vmem>> -> memref<1x1x128xf32, #tpu.memory_space<vmem>>
      %181 = tpu.memref_squeeze %180 : memref<1x1x128xf32, #tpu.memory_space<vmem>> -> memref<128xf32, #tpu.memory_space<vmem>>
      tpu.enqueue_dma source(%179 : memref<128xf32, #tpu.memory_space<any>>) target(%181 : memref<128xf32, #tpu.memory_space<vmem>>) target_semaphore(%arg9 : memref<!tpu.dma_semaphore, #tpu.memory_space<semaphore_mem>>)
      %c4_i32_137 = arith.constant 4 : i32
      %182 = arith.addi %10, %c4_i32_137 : i32
      %c4_i32_138 = arith.constant 4 : i32
      %183 = arith.muli %182, %c4_i32_138 : i32
      %c3_i32_139 = arith.constant 3 : i32
      %184 = arith.addi %183, %c3_i32_139 : i32
      %185 = arith.index_cast %184 : i32 to index
      %186 = memref.load %arg2[%185] : memref<1024xi32, #tpu.memory_space<smem>>
      %c3_i32_140 = arith.constant 3 : i32
      %c4_i32_141 = arith.constant 4 : i32
      %c0_i32_142 = arith.constant 0 : i32
      %187 = tpu.memref_slice %arg3[%186, %c0_i32_142] : memref<1000x128xf32, #tpu.memory_space<any>> -> memref<1x128xf32, #tpu.memory_space<any>>
      %188 = tpu.memref_squeeze %187 : memref<1x128xf32, #tpu.memory_space<any>> -> memref<128xf32, #tpu.memory_space<any>>
      %c0_i32_143 = arith.constant 0 : i32
      %189 = tpu.memref_slice %arg8[%c3_i32_140, %c4_i32_141, %c0_i32_143] : memref<4x128x128xf32, #tpu.memory_space<vmem>> -> memref<1x1x128xf32, #tpu.memory_space<vmem>>
      %190 = tpu.memref_squeeze %189 : memref<1x1x128xf32, #tpu.memory_space<vmem>> -> memref<128xf32, #tpu.memory_space<vmem>>
      tpu.enqueue_dma source(%188 : memref<128xf32, #tpu.memory_space<any>>) target(%190 : memref<128xf32, #tpu.memory_space<vmem>>) target_semaphore(%arg9 : memref<!tpu.dma_semaphore, #tpu.memory_space<semaphore_mem>>)
      %c5_i32 = arith.constant 5 : i32
      %191 = arith.addi %10, %c5_i32 : i32
      %c4_i32_144 = arith.constant 4 : i32
      %192 = arith.muli %191, %c4_i32_144 : i32
      %c0_i32_145 = arith.constant 0 : i32
      %193 = arith.addi %192, %c0_i32_145 : i32
      %194 = arith.index_cast %193 : i32 to index
      %195 = memref.load %arg2[%194] : memref<1024xi32, #tpu.memory_space<smem>>
      %c0_i32_146 = arith.constant 0 : i32
      %c5_i32_147 = arith.constant 5 : i32
      %c0_i32_148 = arith.constant 0 : i32
      %196 = tpu.memref_slice %arg3[%195, %c0_i32_148] : memref<1000x128xf32, #tpu.memory_space<any>> -> memref<1x128xf32, #tpu.memory_space<any>>
      %197 = tpu.memref_squeeze %196 : memref<1x128xf32, #tpu.memory_space<any>> -> memref<128xf32, #tpu.memory_space<any>>
      %c0_i32_149 = arith.constant 0 : i32
      %198 = tpu.memref_slice %arg8[%c0_i32_146, %c5_i32_147, %c0_i32_149] : memref<4x128x128xf32, #tpu.memory_space<vmem>> -> memref<1x1x128xf32, #tpu.memory_space<vmem>>
      %199 = tpu.memref_squeeze %198 : memref<1x1x128xf32, #tpu.memory_space<vmem>> -> memref<128xf32, #tpu.memory_space<vmem>>
      tpu.enqueue_dma source(%197 : memref<128xf32, #tpu.memory_space<any>>) target(%199 : memref<128xf32, #tpu.memory_space<vmem>>) target_semaphore(%arg9 : memref<!tpu.dma_semaphore, #tpu.memory_space<semaphore_mem>>)
      %c5_i32_150 = arith.constant 5 : i32
      %200 = arith.addi %10, %c5_i32_150 : i32
      %c4_i32_151 = arith.constant 4 : i32
      %201 = arith.muli %200, %c4_i32_151 : i32
      %c1_i32_152 = arith.constant 1 : i32
      %202 = arith.addi %201, %c1_i32_152 : i32
      %203 = arith.index_cast %202 : i32 to index
      %204 = memref.load %arg2[%203] : memref<1024xi32, #tpu.memory_space<smem>>
      %c1_i32_153 = arith.constant 1 : i32
      %c5_i32_154 = arith.constant 5 : i32
      %c0_i32_155 = arith.constant 0 : i32
      %205 = tpu.memref_slice %arg3[%204, %c0_i32_155] : memref<1000x128xf32, #tpu.memory_space<any>> -> memref<1x128xf32, #tpu.memory_space<any>>
      %206 = tpu.memref_squeeze %205 : memref<1x128xf32, #tpu.memory_space<any>> -> memref<128xf32, #tpu.memory_space<any>>
      %c0_i32_156 = arith.constant 0 : i32
      %207 = tpu.memref_slice %arg8[%c1_i32_153, %c5_i32_154, %c0_i32_156] : memref<4x128x128xf32, #tpu.memory_space<vmem>> -> memref<1x1x128xf32, #tpu.memory_space<vmem>>
      %208 = tpu.memref_squeeze %207 : memref<1x1x128xf32, #tpu.memory_space<vmem>> -> memref<128xf32, #tpu.memory_space<vmem>>
      tpu.enqueue_dma source(%206 : memref<128xf32, #tpu.memory_space<any>>) target(%208 : memref<128xf32, #tpu.memory_space<vmem>>) target_semaphore(%arg9 : memref<!tpu.dma_semaphore, #tpu.memory_space<semaphore_mem>>)
      %c5_i32_157 = arith.constant 5 : i32
      %209 = arith.addi %10, %c5_i32_157 : i32
      %c4_i32_158 = arith.constant 4 : i32
      %210 = arith.muli %209, %c4_i32_158 : i32
      %c2_i32_159 = arith.constant 2 : i32
      %211 = arith.addi %210, %c2_i32_159 : i32
      %212 = arith.index_cast %211 : i32 to index
      %213 = memref.load %arg2[%212] : memref<1024xi32, #tpu.memory_space<smem>>
      %c2_i32_160 = arith.constant 2 : i32
      %c5_i32_161 = arith.constant 5 : i32
      %c0_i32_162 = arith.constant 0 : i32
      %214 = tpu.memref_slice %arg3[%213, %c0_i32_162] : memref<1000x128xf32, #tpu.memory_space<any>> -> memref<1x128xf32, #tpu.memory_space<any>>
      %215 = tpu.memref_squeeze %214 : memref<1x128xf32, #tpu.memory_space<any>> -> memref<128xf32, #tpu.memory_space<any>>
      %c0_i32_163 = arith.constant 0 : i32
      %216 = tpu.memref_slice %arg8[%c2_i32_160, %c5_i32_161, %c0_i32_163] : memref<4x128x128xf32, #tpu.memory_space<vmem>> -> memref<1x1x128xf32, #tpu.memory_space<vmem>>
      %217 = tpu.memref_squeeze %216 : memref<1x1x128xf32, #tpu.memory_space<vmem>> -> memref<128xf32, #tpu.memory_space<vmem>>
      tpu.enqueue_dma source(%215 : memref<128xf32, #tpu.memory_space<any>>) target(%217 : memref<128xf32, #tpu.memory_space<vmem>>) target_semaphore(%arg9 : memref<!tpu.dma_semaphore, #tpu.memory_space<semaphore_mem>>)
      %c5_i32_164 = arith.constant 5 : i32
      %218 = arith.addi %10, %c5_i32_164 : i32
      %c4_i32_165 = arith.constant 4 : i32
      %219 = arith.muli %218, %c4_i32_165 : i32
      %c3_i32_166 = arith.constant 3 : i32
      %220 = arith.addi %219, %c3_i32_166 : i32
      %221 = arith.index_cast %220 : i32 to index
      %222 = memref.load %arg2[%221] : memref<1024xi32, #tpu.memory_space<smem>>
      %c3_i32_167 = arith.constant 3 : i32
      %c5_i32_168 = arith.constant 5 : i32
      %c0_i32_169 = arith.constant 0 : i32
      %223 = tpu.memref_slice %arg3[%222, %c0_i32_169] : memref<1000x128xf32, #tpu.memory_space<any>> -> memref<1x128xf32, #tpu.memory_space<any>>
      %224 = tpu.memref_squeeze %223 : memref<1x128xf32, #tpu.memory_space<any>> -> memref<128xf32, #tpu.memory_space<any>>
      %c0_i32_170 = arith.constant 0 : i32
      %225 = tpu.memref_slice %arg8[%c3_i32_167, %c5_i32_168, %c0_i32_170] : memref<4x128x128xf32, #tpu.memory_space<vmem>> -> memref<1x1x128xf32, #tpu.memory_space<vmem>>
      %226 = tpu.memref_squeeze %225 : memref<1x1x128xf32, #tpu.memory_space<vmem>> -> memref<128xf32, #tpu.memory_space<vmem>>
      tpu.enqueue_dma source(%224 : memref<128xf32, #tpu.memory_space<any>>) target(%226 : memref<128xf32, #tpu.memory_space<vmem>>) target_semaphore(%arg9 : memref<!tpu.dma_semaphore, #tpu.memory_space<semaphore_mem>>)
      %c6_i32 = arith.constant 6 : i32
      %227 = arith.addi %10, %c6_i32 : i32
      %c4_i32_171 = arith.constant 4 : i32
      %228 = arith.muli %227, %c4_i32_171 : i32
      %c0_i32_172 = arith.constant 0 : i32
      %229 = arith.addi %228, %c0_i32_172 : i32
      %230 = arith.index_cast %229 : i32 to index
      %231 = memref.load %arg2[%230] : memref<1024xi32, #tpu.memory_space<smem>>
      %c0_i32_173 = arith.constant 0 : i32
      %c6_i32_174 = arith.constant 6 : i32
      %c0_i32_175 = arith.constant 0 : i32
      %232 = tpu.memref_slice %arg3[%231, %c0_i32_175] : memref<1000x128xf32, #tpu.memory_space<any>> -> memref<1x128xf32, #tpu.memory_space<any>>
      %233 = tpu.memref_squeeze %232 : memref<1x128xf32, #tpu.memory_space<any>> -> memref<128xf32, #tpu.memory_space<any>>
      %c0_i32_176 = arith.constant 0 : i32
      %234 = tpu.memref_slice %arg8[%c0_i32_173, %c6_i32_174, %c0_i32_176] : memref<4x128x128xf32, #tpu.memory_space<vmem>> -> memref<1x1x128xf32, #tpu.memory_space<vmem>>
      %235 = tpu.memref_squeeze %234 : memref<1x1x128xf32, #tpu.memory_space<vmem>> -> memref<128xf32, #tpu.memory_space<vmem>>
      tpu.enqueue_dma source(%233 : memref<128xf32, #tpu.memory_space<any>>) target(%235 : memref<128xf32, #tpu.memory_space<vmem>>) target_semaphore(%arg9 : memref<!tpu.dma_semaphore, #tpu.memory_space<semaphore_mem>>)
      %c6_i32_177 = arith.constant 6 : i32
      %236 = arith.addi %10, %c6_i32_177 : i32
      %c4_i32_178 = arith.constant 4 : i32
      %237 = arith.muli %236, %c4_i32_178 : i32
      %c1_i32_179 = arith.constant 1 : i32
      %238 = arith.addi %237, %c1_i32_179 : i32
      %239 = arith.index_cast %238 : i32 to index
      %240 = memref.load %arg2[%239] : memref<1024xi32, #tpu.memory_space<smem>>
      %c1_i32_180 = arith.constant 1 : i32
      %c6_i32_181 = arith.constant 6 : i32
      %c0_i32_182 = arith.constant 0 : i32
      %241 = tpu.memref_slice %arg3[%240, %c0_i32_182] : memref<1000x128xf32, #tpu.memory_space<any>> -> memref<1x128xf32, #tpu.memory_space<any>>
      %242 = tpu.memref_squeeze %241 : memref<1x128xf32, #tpu.memory_space<any>> -> memref<128xf32, #tpu.memory_space<any>>
      %c0_i32_183 = arith.constant 0 : i32
      %243 = tpu.memref_slice %arg8[%c1_i32_180, %c6_i32_181, %c0_i32_183] : memref<4x128x128xf32, #tpu.memory_space<vmem>> -> memref<1x1x128xf32, #tpu.memory_space<vmem>>
      %244 = tpu.memref_squeeze %243 : memref<1x1x128xf32, #tpu.memory_space<vmem>> -> memref<128xf32, #tpu.memory_space<vmem>>
      tpu.enqueue_dma source(%242 : memref<128xf32, #tpu.memory_space<any>>) target(%244 : memref<128xf32, #tpu.memory_space<vmem>>) target_semaphore(%arg9 : memref<!tpu.dma_semaphore, #tpu.memory_space<semaphore_mem>>)
      %c6_i32_184 = arith.constant 6 : i32
      %245 = arith.addi %10, %c6_i32_184 : i32
      %c4_i32_185 = arith.constant 4 : i32
      %246 = arith.muli %245, %c4_i32_185 : i32
      %c2_i32_186 = arith.constant 2 : i32
      %247 = arith.addi %246, %c2_i32_186 : i32
      %248 = arith.index_cast %247 : i32 to index
      %249 = memref.load %arg2[%248] : memref<1024xi32, #tpu.memory_space<smem>>
      %c2_i32_187 = arith.constant 2 : i32
      %c6_i32_188 = arith.constant 6 : i32
      %c0_i32_189 = arith.constant 0 : i32
      %250 = tpu.memref_slice %arg3[%249, %c0_i32_189] : memref<1000x128xf32, #tpu.memory_space<any>> -> memref<1x128xf32, #tpu.memory_space<any>>
      %251 = tpu.memref_squeeze %250 : memref<1x128xf32, #tpu.memory_space<any>> -> memref<128xf32, #tpu.memory_space<any>>
      %c0_i32_190 = arith.constant 0 : i32
      %252 = tpu.memref_slice %arg8[%c2_i32_187, %c6_i32_188, %c0_i32_190] : memref<4x128x128xf32, #tpu.memory_space<vmem>> -> memref<1x1x128xf32, #tpu.memory_space<vmem>>
      %253 = tpu.memref_squeeze %252 : memref<1x1x128xf32, #tpu.memory_space<vmem>> -> memref<128xf32, #tpu.memory_space<vmem>>
      tpu.enqueue_dma source(%251 : memref<128xf32, #tpu.memory_space<any>>) target(%253 : memref<128xf32, #tpu.memory_space<vmem>>) target_semaphore(%arg9 : memref<!tpu.dma_semaphore, #tpu.memory_space<semaphore_mem>>)
      %c6_i32_191 = arith.constant 6 : i32
      %254 = arith.addi %10, %c6_i32_191 : i32
      %c4_i32_192 = arith.constant 4 : i32
      %255 = arith.muli %254, %c4_i32_192 : i32
      %c3_i32_193 = arith.constant 3 : i32
      %256 = arith.addi %255, %c3_i32_193 : i32
      %257 = arith.index_cast %256 : i32 to index
      %258 = memref.load %arg2[%257] : memref<1024xi32, #tpu.memory_space<smem>>
      %c3_i32_194 = arith.constant 3 : i32
      %c6_i32_195 = arith.constant 6 : i32
      %c0_i32_196 = arith.constant 0 : i32
      %259 = tpu.memref_slice %arg3[%258, %c0_i32_196] : memref<1000x128xf32, #tpu.memory_space<any>> -> memref<1x128xf32, #tpu.memory_space<any>>
      %260 = tpu.memref_squeeze %259 : memref<1x128xf32, #tpu.memory_space<any>> -> memref<128xf32, #tpu.memory_space<any>>
      %c0_i32_197 = arith.constant 0 : i32
      %261 = tpu.memref_slice %arg8[%c3_i32_194, %c6_i32_195, %c0_i32_197] : memref<4x128x128xf32, #tpu.memory_space<vmem>> -> memref<1x1x128xf32, #tpu.memory_space<vmem>>
      %262 = tpu.memref_squeeze %261 : memref<1x1x128xf32, #tpu.memory_space<vmem>> -> memref<128xf32, #tpu.memory_space<vmem>>
      tpu.enqueue_dma source(%260 : memref<128xf32, #tpu.memory_space<any>>) target(%262 : memref<128xf32, #tpu.memory_space<vmem>>) target_semaphore(%arg9 : memref<!tpu.dma_semaphore, #tpu.memory_space<semaphore_mem>>)
      %c7_i32 = arith.constant 7 : i32
      %263 = arith.addi %10, %c7_i32 : i32
      %c4_i32_198 = arith.constant 4 : i32
      %264 = arith.muli %263, %c4_i32_198 : i32
      %c0_i32_199 = arith.constant 0 : i32
      %265 = arith.addi %264, %c0_i32_199 : i32
      %266 = arith.index_cast %265 : i32 to index
      %267 = memref.load %arg2[%266] : memref<1024xi32, #tpu.memory_space<smem>>
      %c0_i32_200 = arith.constant 0 : i32
      %c7_i32_201 = arith.constant 7 : i32
      %c0_i32_202 = arith.constant 0 : i32
      %268 = tpu.memref_slice %arg3[%267, %c0_i32_202] : memref<1000x128xf32, #tpu.memory_space<any>> -> memref<1x128xf32, #tpu.memory_space<any>>
      %269 = tpu.memref_squeeze %268 : memref<1x128xf32, #tpu.memory_space<any>> -> memref<128xf32, #tpu.memory_space<any>>
      %c0_i32_203 = arith.constant 0 : i32
      %270 = tpu.memref_slice %arg8[%c0_i32_200, %c7_i32_201, %c0_i32_203] : memref<4x128x128xf32, #tpu.memory_space<vmem>> -> memref<1x1x128xf32, #tpu.memory_space<vmem>>
      %271 = tpu.memref_squeeze %270 : memref<1x1x128xf32, #tpu.memory_space<vmem>> -> memref<128xf32, #tpu.memory_space<vmem>>
      tpu.enqueue_dma source(%269 : memref<128xf32, #tpu.memory_space<any>>) target(%271 : memref<128xf32, #tpu.memory_space<vmem>>) target_semaphore(%arg9 : memref<!tpu.dma_semaphore, #tpu.memory_space<semaphore_mem>>)
      %c7_i32_204 = arith.constant 7 : i32
      %272 = arith.addi %10, %c7_i32_204 : i32
      %c4_i32_205 = arith.constant 4 : i32
      %273 = arith.muli %272, %c4_i32_205 : i32
      %c1_i32_206 = arith.constant 1 : i32
      %274 = arith.addi %273, %c1_i32_206 : i32
      %275 = arith.index_cast %274 : i32 to index
      %276 = memref.load %arg2[%275] : memref<1024xi32, #tpu.memory_space<smem>>
      %c1_i32_207 = arith.constant 1 : i32
      %c7_i32_208 = arith.constant 7 : i32
      %c0_i32_209 = arith.constant 0 : i32
      %277 = tpu.memref_slice %arg3[%276, %c0_i32_209] : memref<1000x128xf32, #tpu.memory_space<any>> -> memref<1x128xf32, #tpu.memory_space<any>>
      %278 = tpu.memref_squeeze %277 : memref<1x128xf32, #tpu.memory_space<any>> -> memref<128xf32, #tpu.memory_space<any>>
      %c0_i32_210 = arith.constant 0 : i32
      %279 = tpu.memref_slice %arg8[%c1_i32_207, %c7_i32_208, %c0_i32_210] : memref<4x128x128xf32, #tpu.memory_space<vmem>> -> memref<1x1x128xf32, #tpu.memory_space<vmem>>
      %280 = tpu.memref_squeeze %279 : memref<1x1x128xf32, #tpu.memory_space<vmem>> -> memref<128xf32, #tpu.memory_space<vmem>>
      tpu.enqueue_dma source(%278 : memref<128xf32, #tpu.memory_space<any>>) target(%280 : memref<128xf32, #tpu.memory_space<vmem>>) target_semaphore(%arg9 : memref<!tpu.dma_semaphore, #tpu.memory_space<semaphore_mem>>)
      %c7_i32_211 = arith.constant 7 : i32
      %281 = arith.addi %10, %c7_i32_211 : i32
      %c4_i32_212 = arith.constant 4 : i32
      %282 = arith.muli %281, %c4_i32_212 : i32
      %c2_i32_213 = arith.constant 2 : i32
      %283 = arith.addi %282, %c2_i32_213 : i32
      %284 = arith.index_cast %283 : i32 to index
      %285 = memref.load %arg2[%284] : memref<1024xi32, #tpu.memory_space<smem>>
      %c2_i32_214 = arith.constant 2 : i32
      %c7_i32_215 = arith.constant 7 : i32
      %c0_i32_216 = arith.constant 0 : i32
      %286 = tpu.memref_slice %arg3[%285, %c0_i32_216] : memref<1000x128xf32, #tpu.memory_space<any>> -> memref<1x128xf32, #tpu.memory_space<any>>
      %287 = tpu.memref_squeeze %286 : memref<1x128xf32, #tpu.memory_space<any>> -> memref<128xf32, #tpu.memory_space<any>>
      %c0_i32_217 = arith.constant 0 : i32
      %288 = tpu.memref_slice %arg8[%c2_i32_214, %c7_i32_215, %c0_i32_217] : memref<4x128x128xf32, #tpu.memory_space<vmem>> -> memref<1x1x128xf32, #tpu.memory_space<vmem>>
      %289 = tpu.memref_squeeze %288 : memref<1x1x128xf32, #tpu.memory_space<vmem>> -> memref<128xf32, #tpu.memory_space<vmem>>
      tpu.enqueue_dma source(%287 : memref<128xf32, #tpu.memory_space<any>>) target(%289 : memref<128xf32, #tpu.memory_space<vmem>>) target_semaphore(%arg9 : memref<!tpu.dma_semaphore, #tpu.memory_space<semaphore_mem>>)
      %c7_i32_218 = arith.constant 7 : i32
      %290 = arith.addi %10, %c7_i32_218 : i32
      %c4_i32_219 = arith.constant 4 : i32
      %291 = arith.muli %290, %c4_i32_219 : i32
      %c3_i32_220 = arith.constant 3 : i32
      %292 = arith.addi %291, %c3_i32_220 : i32
      %293 = arith.index_cast %292 : i32 to index
      %294 = memref.load %arg2[%293] : memref<1024xi32, #tpu.memory_space<smem>>
      %c3_i32_221 = arith.constant 3 : i32
      %c7_i32_222 = arith.constant 7 : i32
      %c0_i32_223 = arith.constant 0 : i32
      %295 = tpu.memref_slice %arg3[%294, %c0_i32_223] : memref<1000x128xf32, #tpu.memory_space<any>> -> memref<1x128xf32, #tpu.memory_space<any>>
      %296 = tpu.memref_squeeze %295 : memref<1x128xf32, #tpu.memory_space<any>> -> memref<128xf32, #tpu.memory_space<any>>
      %c0_i32_224 = arith.constant 0 : i32
      %297 = tpu.memref_slice %arg8[%c3_i32_221, %c7_i32_222, %c0_i32_224] : memref<4x128x128xf32, #tpu.memory_space<vmem>> -> memref<1x1x128xf32, #tpu.memory_space<vmem>>
      %298 = tpu.memref_squeeze %297 : memref<1x1x128xf32, #tpu.memory_space<vmem>> -> memref<128xf32, #tpu.memory_space<vmem>>
      tpu.enqueue_dma source(%296 : memref<128xf32, #tpu.memory_space<any>>) target(%298 : memref<128xf32, #tpu.memory_space<vmem>>) target_semaphore(%arg9 : memref<!tpu.dma_semaphore, #tpu.memory_space<semaphore_mem>>)
      %c0_i32_225 = arith.constant 0 : i32
      %c120_i32 = arith.constant 120 : i32
      %299 = arith.addi %c0_i32_225, %c120_i32 : i32
      %c1_i32_226 = arith.constant 1 : i32
      scf.for %arg10 = %c0_i32_225 to %299 step %c1_i32_226  : i32 {
        %c1_i32_243 = arith.constant 1 : i32
        %316 = arith.muli %arg10, %c1_i32_243 : i32
        %c0_i32_244 = arith.constant 0 : i32
        %317 = arith.addi %c0_i32_244, %316 : i32
        %c8_i32_245 = arith.constant 8 : i32
        %318 = arith.addi %317, %c8_i32_245 : i32
        %319 = arith.addi %10, %318 : i32
        %c4_i32_246 = arith.constant 4 : i32
        %320 = arith.muli %319, %c4_i32_246 : i32
        %c0_i32_247 = arith.constant 0 : i32
        %321 = arith.addi %320, %c0_i32_247 : i32
        %322 = arith.index_cast %321 : i32 to index
        %323 = memref.load %arg2[%322] : memref<1024xi32, #tpu.memory_space<smem>>
        %c0_i32_248 = arith.constant 0 : i32
        %c0_i32_249 = arith.constant 0 : i32
        %324 = tpu.memref_slice %arg3[%323, %c0_i32_249] : memref<1000x128xf32, #tpu.memory_space<any>> -> memref<1x128xf32, #tpu.memory_space<any>>
        %325 = tpu.memref_squeeze %324 : memref<1x128xf32, #tpu.memory_space<any>> -> memref<128xf32, #tpu.memory_space<any>>
        %c0_i32_250 = arith.constant 0 : i32
        %326 = tpu.memref_slice %arg8[%c0_i32_248, %318, %c0_i32_250] : memref<4x128x128xf32, #tpu.memory_space<vmem>> -> memref<1x1x128xf32, #tpu.memory_space<vmem>>
        %327 = tpu.memref_squeeze %326 : memref<1x1x128xf32, #tpu.memory_space<vmem>> -> memref<128xf32, #tpu.memory_space<vmem>>
        tpu.enqueue_dma source(%325 : memref<128xf32, #tpu.memory_space<any>>) target(%327 : memref<128xf32, #tpu.memory_space<vmem>>) target_semaphore(%arg9 : memref<!tpu.dma_semaphore, #tpu.memory_space<semaphore_mem>>)
        %328 = arith.addi %10, %318 : i32
        %c4_i32_251 = arith.constant 4 : i32
        %329 = arith.muli %328, %c4_i32_251 : i32
        %c1_i32_252 = arith.constant 1 : i32
        %330 = arith.addi %329, %c1_i32_252 : i32
        %331 = arith.index_cast %330 : i32 to index
        %332 = memref.load %arg2[%331] : memref<1024xi32, #tpu.memory_space<smem>>
        %c1_i32_253 = arith.constant 1 : i32
        %c0_i32_254 = arith.constant 0 : i32
        %333 = tpu.memref_slice %arg3[%332, %c0_i32_254] : memref<1000x128xf32, #tpu.memory_space<any>> -> memref<1x128xf32, #tpu.memory_space<any>>
        %334 = tpu.memref_squeeze %333 : memref<1x128xf32, #tpu.memory_space<any>> -> memref<128xf32, #tpu.memory_space<any>>
        %c0_i32_255 = arith.constant 0 : i32
        %335 = tpu.memref_slice %arg8[%c1_i32_253, %318, %c0_i32_255] : memref<4x128x128xf32, #tpu.memory_space<vmem>> -> memref<1x1x128xf32, #tpu.memory_space<vmem>>
        %336 = tpu.memref_squeeze %335 : memref<1x1x128xf32, #tpu.memory_space<vmem>> -> memref<128xf32, #tpu.memory_space<vmem>>
        tpu.enqueue_dma source(%334 : memref<128xf32, #tpu.memory_space<any>>) target(%336 : memref<128xf32, #tpu.memory_space<vmem>>) target_semaphore(%arg9 : memref<!tpu.dma_semaphore, #tpu.memory_space<semaphore_mem>>)
        %337 = arith.addi %10, %318 : i32
        %c4_i32_256 = arith.constant 4 : i32
        %338 = arith.muli %337, %c4_i32_256 : i32
        %c2_i32_257 = arith.constant 2 : i32
        %339 = arith.addi %338, %c2_i32_257 : i32
        %340 = arith.index_cast %339 : i32 to index
        %341 = memref.load %arg2[%340] : memref<1024xi32, #tpu.memory_space<smem>>
        %c2_i32_258 = arith.constant 2 : i32
        %c0_i32_259 = arith.constant 0 : i32
        %342 = tpu.memref_slice %arg3[%341, %c0_i32_259] : memref<1000x128xf32, #tpu.memory_space<any>> -> memref<1x128xf32, #tpu.memory_space<any>>
        %343 = tpu.memref_squeeze %342 : memref<1x128xf32, #tpu.memory_space<any>> -> memref<128xf32, #tpu.memory_space<any>>
        %c0_i32_260 = arith.constant 0 : i32
        %344 = tpu.memref_slice %arg8[%c2_i32_258, %318, %c0_i32_260] : memref<4x128x128xf32, #tpu.memory_space<vmem>> -> memref<1x1x128xf32, #tpu.memory_space<vmem>>
        %345 = tpu.memref_squeeze %344 : memref<1x1x128xf32, #tpu.memory_space<vmem>> -> memref<128xf32, #tpu.memory_space<vmem>>
        tpu.enqueue_dma source(%343 : memref<128xf32, #tpu.memory_space<any>>) target(%345 : memref<128xf32, #tpu.memory_space<vmem>>) target_semaphore(%arg9 : memref<!tpu.dma_semaphore, #tpu.memory_space<semaphore_mem>>)
        %346 = arith.addi %10, %318 : i32
        %c4_i32_261 = arith.constant 4 : i32
        %347 = arith.muli %346, %c4_i32_261 : i32
        %c3_i32_262 = arith.constant 3 : i32
        %348 = arith.addi %347, %c3_i32_262 : i32
        %349 = arith.index_cast %348 : i32 to index
        %350 = memref.load %arg2[%349] : memref<1024xi32, #tpu.memory_space<smem>>
        %c3_i32_263 = arith.constant 3 : i32
        %c0_i32_264 = arith.constant 0 : i32
        %351 = tpu.memref_slice %arg3[%350, %c0_i32_264] : memref<1000x128xf32, #tpu.memory_space<any>> -> memref<1x128xf32, #tpu.memory_space<any>>
        %352 = tpu.memref_squeeze %351 : memref<1x128xf32, #tpu.memory_space<any>> -> memref<128xf32, #tpu.memory_space<any>>
        %c0_i32_265 = arith.constant 0 : i32
        %353 = tpu.memref_slice %arg8[%c3_i32_263, %318, %c0_i32_265] : memref<4x128x128xf32, #tpu.memory_space<vmem>> -> memref<1x1x128xf32, #tpu.memory_space<vmem>>
        %354 = tpu.memref_squeeze %353 : memref<1x1x128xf32, #tpu.memory_space<vmem>> -> memref<128xf32, #tpu.memory_space<vmem>>
        tpu.enqueue_dma source(%352 : memref<128xf32, #tpu.memory_space<any>>) target(%354 : memref<128xf32, #tpu.memory_space<vmem>>) target_semaphore(%arg9 : memref<!tpu.dma_semaphore, #tpu.memory_space<semaphore_mem>>)
        %c0_i32_266 = arith.constant 0 : i32
        %c0_i32_267 = arith.constant 0 : i32
        %c0_i32_268 = arith.constant 0 : i32
        %355 = tpu.memref_slice %arg3[%c0_i32_266, %c0_i32_268] : memref<1000x128xf32, #tpu.memory_space<any>> -> memref<1x128xf32, #tpu.memory_space<any>>
        %356 = tpu.memref_squeeze %355 : memref<1x128xf32, #tpu.memory_space<any>> -> memref<128xf32, #tpu.memory_space<any>>
        %c0_i32_269 = arith.constant 0 : i32
        %357 = tpu.memref_slice %arg8[%c0_i32_267, %317, %c0_i32_269] : memref<4x128x128xf32, #tpu.memory_space<vmem>> -> memref<1x1x128xf32, #tpu.memory_space<vmem>>
        %358 = tpu.memref_squeeze %357 : memref<1x1x128xf32, #tpu.memory_space<vmem>> -> memref<128xf32, #tpu.memory_space<vmem>>
        tpu.wait_dma2 semaphore(%arg9 : memref<!tpu.dma_semaphore, #tpu.memory_space<semaphore_mem>>) src(%356 : memref<128xf32, #tpu.memory_space<any>>) dst(%358 : memref<128xf32, #tpu.memory_space<vmem>>)
        %c0_i32_270 = arith.constant 0 : i32
        %c1_i32_271 = arith.constant 1 : i32
        %c0_i32_272 = arith.constant 0 : i32
        %359 = tpu.memref_slice %arg3[%c0_i32_270, %c0_i32_272] : memref<1000x128xf32, #tpu.memory_space<any>> -> memref<1x128xf32, #tpu.memory_space<any>>
        %360 = tpu.memref_squeeze %359 : memref<1x128xf32, #tpu.memory_space<any>> -> memref<128xf32, #tpu.memory_space<any>>
        %c0_i32_273 = arith.constant 0 : i32
        %361 = tpu.memref_slice %arg8[%c1_i32_271, %317, %c0_i32_273] : memref<4x128x128xf32, #tpu.memory_space<vmem>> -> memref<1x1x128xf32, #tpu.memory_space<vmem>>
        %362 = tpu.memref_squeeze %361 : memref<1x1x128xf32, #tpu.memory_space<vmem>> -> memref<128xf32, #tpu.memory_space<vmem>>
        tpu.wait_dma2 semaphore(%arg9 : memref<!tpu.dma_semaphore, #tpu.memory_space<semaphore_mem>>) src(%360 : memref<128xf32, #tpu.memory_space<any>>) dst(%362 : memref<128xf32, #tpu.memory_space<vmem>>)
        %c0_i32_274 = arith.constant 0 : i32
        %c2_i32_275 = arith.constant 2 : i32
        %c0_i32_276 = arith.constant 0 : i32
        %363 = tpu.memref_slice %arg3[%c0_i32_274, %c0_i32_276] : memref<1000x128xf32, #tpu.memory_space<any>> -> memref<1x128xf32, #tpu.memory_space<any>>
        %364 = tpu.memref_squeeze %363 : memref<1x128xf32, #tpu.memory_space<any>> -> memref<128xf32, #tpu.memory_space<any>>
        %c0_i32_277 = arith.constant 0 : i32
        %365 = tpu.memref_slice %arg8[%c2_i32_275, %317, %c0_i32_277] : memref<4x128x128xf32, #tpu.memory_space<vmem>> -> memref<1x1x128xf32, #tpu.memory_space<vmem>>
        %366 = tpu.memref_squeeze %365 : memref<1x1x128xf32, #tpu.memory_space<vmem>> -> memref<128xf32, #tpu.memory_space<vmem>>
        tpu.wait_dma2 semaphore(%arg9 : memref<!tpu.dma_semaphore, #tpu.memory_space<semaphore_mem>>) src(%364 : memref<128xf32, #tpu.memory_space<any>>) dst(%366 : memref<128xf32, #tpu.memory_space<vmem>>)
        %c0_i32_278 = arith.constant 0 : i32
        %c3_i32_279 = arith.constant 3 : i32
        %c0_i32_280 = arith.constant 0 : i32
        %367 = tpu.memref_slice %arg3[%c0_i32_278, %c0_i32_280] : memref<1000x128xf32, #tpu.memory_space<any>> -> memref<1x128xf32, #tpu.memory_space<any>>
        %368 = tpu.memref_squeeze %367 : memref<1x128xf32, #tpu.memory_space<any>> -> memref<128xf32, #tpu.memory_space<any>>
        %c0_i32_281 = arith.constant 0 : i32
        %369 = tpu.memref_slice %arg8[%c3_i32_279, %317, %c0_i32_281] : memref<4x128x128xf32, #tpu.memory_space<vmem>> -> memref<1x1x128xf32, #tpu.memory_space<vmem>>
        %370 = tpu.memref_squeeze %369 : memref<1x1x128xf32, #tpu.memory_space<vmem>> -> memref<128xf32, #tpu.memory_space<vmem>>
        tpu.wait_dma2 semaphore(%arg9 : memref<!tpu.dma_semaphore, #tpu.memory_space<semaphore_mem>>) src(%368 : memref<128xf32, #tpu.memory_space<any>>) dst(%370 : memref<128xf32, #tpu.memory_space<vmem>>)
      }
      %c120_i32_227 = arith.constant 120 : i32
      %c0_i32_228 = arith.constant 0 : i32
      %c8_i32 = arith.constant 8 : i32
      %300 = arith.addi %c0_i32_228, %c8_i32 : i32
      %c1_i32_229 = arith.constant 1 : i32
      scf.for %arg10 = %c0_i32_228 to %300 step %c1_i32_229  : i32 {
        %c1_i32_243 = arith.constant 1 : i32
        %316 = arith.muli %arg10, %c1_i32_243 : i32
        %c120_i32_244 = arith.constant 120 : i32
        %317 = arith.addi %c120_i32_244, %316 : i32
        %c0_i32_245 = arith.constant 0 : i32
        %c0_i32_246 = arith.constant 0 : i32
        %c0_i32_247 = arith.constant 0 : i32
        %318 = tpu.memref_slice %arg3[%c0_i32_245, %c0_i32_247] : memref<1000x128xf32, #tpu.memory_space<any>> -> memref<1x128xf32, #tpu.memory_space<any>>
        %319 = tpu.memref_squeeze %318 : memref<1x128xf32, #tpu.memory_space<any>> -> memref<128xf32, #tpu.memory_space<any>>
        %c0_i32_248 = arith.constant 0 : i32
        %320 = tpu.memref_slice %arg8[%c0_i32_246, %317, %c0_i32_248] : memref<4x128x128xf32, #tpu.memory_space<vmem>> -> memref<1x1x128xf32, #tpu.memory_space<vmem>>
        %321 = tpu.memref_squeeze %320 : memref<1x1x128xf32, #tpu.memory_space<vmem>> -> memref<128xf32, #tpu.memory_space<vmem>>
        tpu.wait_dma2 semaphore(%arg9 : memref<!tpu.dma_semaphore, #tpu.memory_space<semaphore_mem>>) src(%319 : memref<128xf32, #tpu.memory_space<any>>) dst(%321 : memref<128xf32, #tpu.memory_space<vmem>>)
        %c0_i32_249 = arith.constant 0 : i32
        %c1_i32_250 = arith.constant 1 : i32
        %c0_i32_251 = arith.constant 0 : i32
        %322 = tpu.memref_slice %arg3[%c0_i32_249, %c0_i32_251] : memref<1000x128xf32, #tpu.memory_space<any>> -> memref<1x128xf32, #tpu.memory_space<any>>
        %323 = tpu.memref_squeeze %322 : memref<1x128xf32, #tpu.memory_space<any>> -> memref<128xf32, #tpu.memory_space<any>>
        %c0_i32_252 = arith.constant 0 : i32
        %324 = tpu.memref_slice %arg8[%c1_i32_250, %317, %c0_i32_252] : memref<4x128x128xf32, #tpu.memory_space<vmem>> -> memref<1x1x128xf32, #tpu.memory_space<vmem>>
        %325 = tpu.memref_squeeze %324 : memref<1x1x128xf32, #tpu.memory_space<vmem>> -> memref<128xf32, #tpu.memory_space<vmem>>
        tpu.wait_dma2 semaphore(%arg9 : memref<!tpu.dma_semaphore, #tpu.memory_space<semaphore_mem>>) src(%323 : memref<128xf32, #tpu.memory_space<any>>) dst(%325 : memref<128xf32, #tpu.memory_space<vmem>>)
        %c0_i32_253 = arith.constant 0 : i32
        %c2_i32_254 = arith.constant 2 : i32
        %c0_i32_255 = arith.constant 0 : i32
        %326 = tpu.memref_slice %arg3[%c0_i32_253, %c0_i32_255] : memref<1000x128xf32, #tpu.memory_space<any>> -> memref<1x128xf32, #tpu.memory_space<any>>
        %327 = tpu.memref_squeeze %326 : memref<1x128xf32, #tpu.memory_space<any>> -> memref<128xf32, #tpu.memory_space<any>>
        %c0_i32_256 = arith.constant 0 : i32
        %328 = tpu.memref_slice %arg8[%c2_i32_254, %317, %c0_i32_256] : memref<4x128x128xf32, #tpu.memory_space<vmem>> -> memref<1x1x128xf32, #tpu.memory_space<vmem>>
        %329 = tpu.memref_squeeze %328 : memref<1x1x128xf32, #tpu.memory_space<vmem>> -> memref<128xf32, #tpu.memory_space<vmem>>
        tpu.wait_dma2 semaphore(%arg9 : memref<!tpu.dma_semaphore, #tpu.memory_space<semaphore_mem>>) src(%327 : memref<128xf32, #tpu.memory_space<any>>) dst(%329 : memref<128xf32, #tpu.memory_space<vmem>>)
        %c0_i32_257 = arith.constant 0 : i32
        %c3_i32_258 = arith.constant 3 : i32
        %c0_i32_259 = arith.constant 0 : i32
        %330 = tpu.memref_slice %arg3[%c0_i32_257, %c0_i32_259] : memref<1000x128xf32, #tpu.memory_space<any>> -> memref<1x128xf32, #tpu.memory_space<any>>
        %331 = tpu.memref_squeeze %330 : memref<1x128xf32, #tpu.memory_space<any>> -> memref<128xf32, #tpu.memory_space<any>>
        %c0_i32_260 = arith.constant 0 : i32
        %332 = tpu.memref_slice %arg8[%c3_i32_258, %317, %c0_i32_260] : memref<4x128x128xf32, #tpu.memory_space<vmem>> -> memref<1x1x128xf32, #tpu.memory_space<vmem>>
        %333 = tpu.memref_squeeze %332 : memref<1x1x128xf32, #tpu.memory_space<vmem>> -> memref<128xf32, #tpu.memory_space<vmem>>
        tpu.wait_dma2 semaphore(%arg9 : memref<!tpu.dma_semaphore, #tpu.memory_space<semaphore_mem>>) src(%331 : memref<128xf32, #tpu.memory_space<any>>) dst(%333 : memref<128xf32, #tpu.memory_space<vmem>>)
      }
      %c8_i32_230 = arith.constant 8 : i32
      %c0_231 = arith.constant 0 : index
      %c0_232 = arith.constant 0 : index
      %c0_233 = arith.constant 0 : index
      %301 = vector.load %arg8[%c0_231, %c0_232, %c0_233] : memref<4x128x128xf32, #tpu.memory_space<vmem>>, vector<1x128x128xf32>
      %302 = vector.shape_cast %301 : vector<1x128x128xf32> to vector<128x128xf32>
      %c1 = arith.constant 1 : index
      %c0_234 = arith.constant 0 : index
      %c0_235 = arith.constant 0 : index
      %303 = vector.load %arg8[%c1, %c0_234, %c0_235] : memref<4x128x128xf32, #tpu.memory_space<vmem>>, vector<1x128x128xf32>
      %304 = vector.shape_cast %303 : vector<1x128x128xf32> to vector<128x128xf32>
      %305 = arith.addf %302, %304 : vector<128x128xf32>
      %c2 = arith.constant 2 : index
      %c0_236 = arith.constant 0 : index
      %c0_237 = arith.constant 0 : index
      %306 = vector.load %arg8[%c2, %c0_236, %c0_237] : memref<4x128x128xf32, #tpu.memory_space<vmem>>, vector<1x128x128xf32>
      %307 = vector.shape_cast %306 : vector<1x128x128xf32> to vector<128x128xf32>
      %308 = arith.addf %305, %307 : vector<128x128xf32>
      %c3 = arith.constant 3 : index
      %c0_238 = arith.constant 0 : index
      %c0_239 = arith.constant 0 : index
      %309 = vector.load %arg8[%c3, %c0_238, %c0_239] : memref<4x128x128xf32, #tpu.memory_space<vmem>>, vector<1x128x128xf32>
      %310 = vector.shape_cast %309 : vector<1x128x128xf32> to vector<128x128xf32>
      %311 = arith.addf %308, %310 : vector<128x128xf32>
      %cst_240 = arith.constant 2.500000e-01 : f32
      %312 = vector.broadcast %cst_240 : f32 to vector<128x128xf32>
      %313 = arith.mulf %311, %312 : vector<128x128xf32>
      %314 = arith.truncf %313 : vector<128x128xf32> to vector<128x128xbf16>
      %c0_241 = arith.constant 0 : index
      %c0_242 = arith.constant 0 : index
      %315 = vector.load %arg7[%c0_241, %c0_242] : memref<128x128xbf16, #tpu.memory_space<vmem>>, vector<128x128xbf16>
      tpu.vector_store %arg7[%c0_241, %c0_242], %314 {strides = array<i32>} : memref<128x128xbf16, #tpu.memory_space<vmem>>, vector<128x128xbf16>,
    } else {
    }
    %c0 = arith.constant 0 : index
    %c0_1 = arith.constant 0 : index
    %3 = vector.load %arg7[%c0, %c0_1] : memref<128x128xbf16, #tpu.memory_space<vmem>>, vector<128x128xbf16>
    %c0_2 = arith.constant 0 : index
    %c0_3 = arith.constant 0 : index
    %4 = vector.load %arg4[%c0_2, %c0_3] : memref<512x128xbf16, #tpu.memory_space<vmem>>, vector<512x128xbf16>
    %cst = arith.constant dense<0.000000e+00> : vector<128x512xf32>
    %5 = tpu.matmul %3, %4, %cst {dimension_numbers = #tpu.dot_dimension_numbers<[1], [1], [0], [0], [0, 0, 1, 0], [], []>} : vector<128x128xbf16>, vector<512x128xbf16>, vector<128x512xf32> -> vector<128x512xf32>
    %c0_4 = arith.constant 0 : index
    %c0_5 = arith.constant 0 : index
    %6 = vector.load %arg5[%c0_4, %c0_5] : memref<1x512xf32, #tpu.memory_space<vmem>>, vector<1x512xf32>
    %7 = vector.broadcast %6 : vector<1x512xf32> to vector<128x512xf32>
    %8 = arith.addf %5, %7 : vector<128x512xf32>
    %c0_6 = arith.constant 0 : index
    %c0_7 = arith.constant 0 : index
    %9 = vector.load %arg6[%c0_6, %c0_7] : memref<128x512xf32, #tpu.memory_space<vmem>>, vector<128x512xf32>
    tpu.vector_store %arg6[%c0_6, %c0_7], %8 {strides = array<i32>} : memref<128x512xf32, #tpu.memory_space<vmem>>, vector<128x512xf32>,
    return
  }
  func.func @transform_1(%arg0: i32, %arg1: i32, %arg2: memref<1024xi32, #tpu.memory_space<smem>>) -> (i32, i32) {
    %c0_i32 = arith.constant 0 : i32
    %c0_i32_0 = arith.constant 0 : i32
    return %arg1, %c0_i32 : i32, i32
  }
  func.func @transform_2(%arg0: i32, %arg1: i32, %arg2: memref<1024xi32, #tpu.memory_space<smem>>) -> (i32, i32) {
    %c0_i32 = arith.constant 0 : i32
    %c0_i32_0 = arith.constant 0 : i32
    return %c0_i32, %arg1 : i32, i32
  }
  func.func @transform_3(%arg0: i32, %arg1: i32, %arg2: memref<1024xi32, #tpu.memory_space<smem>>) -> (i32, i32) {
    %c0_i32 = arith.constant 0 : i32
    return %arg0, %arg1 : i32, i32
  }
}

</mosaic_0001>

<bundles_post_ra>
// kernel: tpu_custom_call.1
= control target key start
LH: loop header
LB: loop body
LE: loop exit
PB: predicated region body
PF: predicated region fallthrough
CT: control target
= control target key end

     0   :  { %s3389_s15 = smov [#allocation6]   ;;  %s4471_s0 = inlined_call_operand.hbm [shape: s32[1024], index: 0, kind: input, shape index: {}]   ;;  %s4472_s1 = inlined_call_operand.hbm [shape: f32[1000,128], index: 1, kind: input, shape index: {}]   ;;  %s4473_s2 = inlined_call_operand.hbm [shape: bf16[1024,128], index: 2, kind: input, shape index: {}]   ;;  %s4474_s3 = inlined_call_operand.hbm [shape: f32[1,1024], index: 3, kind: input, shape index: {}]   ;;  %s4475_s4 = inlined_call_operand.hbm [shape: f32[256,1024], index: 4, kind: output, shape index: {}]  }
   0x1   :  { %4489 = sst [smem:[#allocation105_spill]] %s4473_s2 }
   0x2   :  { %4490 = sst [smem:[#allocation106_spill]] %s4474_s3 }
   0x3   :  { %4491 = sst [smem:[#allocation107_spill]] %s4475_s4 }
   0x4   :  { %10 = dma.hbm_to_smem %s4471_s0, 128, %s3389_s15, [#allocation5] }
   0x5   :  { %3319 = dma.done.wait [#allocation5], 128 }
   0x6   :  { %3320 = vsyncadd [#allocation5], 4294967168 }
   0x7   :  { %12 = sfence }
   0x8   :  { %13 = vsyncpa [#allocation8], 0 }
   0x9   :  { %15 = vsyncpa [#allocation8 + $0x1], 0 }
   0xa   :  { %16 = vsyncpa [#allocation11], 0 }
   0xb   :  { %18 = vsyncpa [#allocation11 + $0x1], 0 }
   0xc   :  { %19 = vsyncpa [#allocation9], 0 }
   0xd   :  { %21 = vsyncpa [#allocation9 + $0x1], 0  ;;  %s3458_s18 = smov 0   ;;  %s3460_s19 = smov 0  }
   0xe   :  { %s3462_s20 = smov 0   ;;  %s3464_s21 = smov 0  }
   0xf   :  { %s3466_s22 = smov 0   ;;  %s3468_s0 = smov 0  }
  0x10   :  { %s3470_s23 = smov 0   ;;  %s3472_s24 = smov 0  }
  0x11   :  { %s3474_s25 = smov 0   ;;  %s3476_s26 = smov 0  }
  0x12   :  { %s3478_s27 = smov 0  }
  0x13 LB: > { %4492 = sst [smem:[#allocation93_spill]] %s3339_s18  ;;  %s1908_s28 = sadd.s32 4294967295, %s3379_s27   ;;  %s3379_s27 = sphi %s3478_s27, %s27_s27   ;;  %s3375_s26 = sphi %s3476_s26, %s4526_s26   ;;  %s3371_s25 = sphi %s3474_s25, %s4525_s25   ;;  %s3367_s24 = sphi %s3472_s24, %s4524_s24   ;;  %s3363_s23 = sphi %s3470_s23, %s4523_s23   ;;  %s3359_s0 = sphi %s3468_s0, %s4522_s0   ;;  %s3355_s22 = sphi %s3466_s22, %s4521_s22   ;;  %s3351_s21 = sphi %s3464_s21, %s4520_s21   ;;  %s3347_s20 = sphi %s3462_s20, %s4519_s20   ;;  %s3343_s19 = sphi %s3460_s19, %s4528_s19   ;;  %s3339_s18 = sphi %s3458_s18, %s4527_s18  }
  0x14   : > { %4493 = sst [smem:[#allocation94_spill]] %s3347_s20  ;;  %s1909_s29 = sadd.s32 4294967294, %s3379_s27  }
  0x15   : > { %4494 = sst [smem:[#allocation95_spill]] %s3355_s22  ;;  %s36_s30 = sadd.s32 1, %s3371_s25 }
  0x16   : > { %4495 = sst [smem:[#allocation96_spill]] %s3359_s0  ;;  %s39_s5 = sadd.s32 1, %s3375_s26 }
  0x17   : > { %4496 = sst [smem:[#allocation97_spill]] %s3371_s25  ;;  %p37_p0 = scmp.ge.s32.totalorder %s36_s30, 2 }
  0x18   : > { %4497 = sst [smem:[#allocation98_spill]] %s3375_s26  ;;  %s46_s6 = sadd.s32 1, %s3359_s0 }
  0x19   : > { %4498 = sst [smem:[#allocation99_spill]] %s3379_s27  ;;  %p53_p1 = scmp.ne.s32.totalorder %s3359_s0, %s3355_s22 }
  0x1a   : > { %p54_p2 = scmp.eq.s32.totalorder %s3379_s27, 0  ;;  %s4530_s30 = smov (%p37_p0, %s36_s30), 0 }
  0x1b   : > { %4499 = sst [smem:[#allocation100_spill]] %s4530_s30  ;;  %s4532_s5 = smov (!%p37_p0, %s39_s5), %s3375_s26 }
  0x1c   : > { %s43_s7 = ssub.s32 %s3371_s25, %s4530_s30  ;;  %p3524_p3 = por %p54_p2, %p53_p1 }
  0x1d   : > { %p41_p4 = scmp.ge.s32.totalorder %s4532_s5, 2  ;;  %p44_p5 = scmp.eq.s32.totalorder %s43_s7, 0 }
  0x1e   : > { %p59_p6 = scmp.ne.s32.totalorder %s3355_s22, %s3351_s21  ;;  %p60_p7 = scmp.eq.s32.totalorder %s1908_s28, 0 }
  0x1f   : > { %s4534_s5 = smov (%p41_p4, %s4532_s5), 0  ;;  %s100_s13 = sadd.s32 1, %s3347_s20 }
  0x20   : > { %4501 = sst [smem:[#allocation101_spill]] %s4534_s5  ;;  %p3534_p8 = por %p60_p7, %p59_p6 }
  0x21   : > { %s3532_s9 = scalar_select %p44_p5, %s3359_s0, %s46_s6  }
  0x22   : > { %s95_s11 = ssub.s32 %s3375_s26, %s4534_s5  ;;  %p110_p10 = scmp.ne.s32.totalorder %s3347_s20, %s3343_s19 }
  0x23   : > { %4502 = sst [smem:[#allocation102_spill]] %s3532_s9  ;;  %s97_s12 = sor.u32 %s95_s11, %s43_s7 }
  0x24   : > { %p98_p9 = scmp.eq.s32.totalorder %s97_s12, 0  ;;  %p111_p11 = scmp.eq.s32.totalorder %s1908_s28, 3 }
  0x25   : > { %p116_p12 = scmp.ne.s32.totalorder %s3343_s19, %s3339_s18  ;;  %p117_p0 = scmp.eq.s32.totalorder %s1909_s29, 3 }
  0x26   : > { %s3546_s14 = scalar_select %p98_p9, %s3347_s20, %s100_s13  }
  0x27   : > { %p3548_p13 = por %p111_p11, %p110_p10  ;;  %p2201_p1 = scmp.lt.s32.totalorder %s3379_s27, 4 }
  0x28   : > { %4504 = sst [smem:[#allocation103_spill]] %s3546_s14  ;;  %p3553_p2 = por %p117_p0, %p116_p12 }
  0x29   : > { %s3558_s17 = sand.u32 1, %s3359_s0   ;;  %s2033_s6 = sshll.u32 %s3371_s25, 12 }
  0x2a   : > { %s4506_s16 = scalar_select %p3553_p2, 1, 0 }
  0x2b   : > { %s1912_s21 = sshll.u32 %s3558_s17, 8  ;;  %s4508_s2 = sld [smem:[#allocation105_spill]] }
  0x2c   : > { %4507 = sst [smem:[#allocation104_spill]] %s4506_s16  ;;  %s141_s12 = scalar_lea.vmem [#allocation7], %s1912_s21 }
  0x2d   : > { %s148_s13 = sshll.u32 %s141_s12, 4  ;;  %p3567_p4 = pnand %p2201_p1, %p3524_p3  ;;  %s149_s13 = int_to_ptr.vmem [resolvable:$true] %s148_s13 }
  0x2e   : > { %p1918_p5 = scmp.ge.s32.totalorder %s3379_s27, 1  ;;  %s138_s5 = scalar_lea.sflag [#allocation8], %s3558_s17 }
  0x2f   : > { %p2395_p6 = pneg %p3567_p4  ;;  %s2406_s30 = scalar_lea.vmem %s149_s13, 4096 }
  0x30   : > { %p2407_p7 = scmp.ne.s32.totalorder %s149_s13, %s2406_s30  ;;  %s3390_s21 = smov [#allocation7]  }
  0x31   : > { %s147_s11 = scalar_lea.hbm %s4508_s2, %s2033_s6  ;;  %s2411_s6 = sshll.u32 %s3390_s21, 4  ;;  %s2412_s6 = int_to_ptr.vmem [resolvable:$false] %s2411_s6 }
  0x32   : > { %p2409_p9 = pnand %p2407_p7, %p2395_p6  ;;  %s2413_s8 = scalar_lea.vmem %s2412_s6, 8192 }
  0x33   : > { %p2414_p3 = scmp.lt.s32.totalorder %s149_s13, %s2412_s6  ;;  %p2415_p11 = scmp.lt.s32.totalorder %s2413_s8, %s2406_s30 }
  0x34   : > { %p2410_p10 = pneg %p2409_p9 }
  0x35   : > { %p2416_p12 = por %p2415_p11, %p2414_p3 }
  0x37   : > { %p2417_p0 = pnand %p2416_p12, %p2410_p10 }
  0x39   : > { %2420 = shalt.err (!%p2417_p0)
}
  0x3a   : > { %s3391_s28 = smov 64   ;;  %s3392_s7 = smov 4  }
  0x3b   : > { %2193 = dma.hbm_to_vmem [thread:$0]  (!%p3567_p4), %s147_s11, 4096, %s149_s13, %s138_s5, %s3391_s28, %s3391_s28, %s3392_s7  }
  0x3c   : > { %p175_p1 = scmp.lt.s32.totalorder %s3379_s27, 5  ;;  %s1915_s12 = sshll.u32 %s3558_s17, 2 }
  0x3d   : > { %s2034_s21 = sshll.u32 %s3371_s25, 6  ;;  %s4511_s3 = sld [smem:[#allocation106_spill]] }
  0x3e   : > { %p3585_p7 = pnand %p1918_p5, %p175_p1  ;;  %s162_s26 = scalar_lea.vmem [#allocation10], %s1915_s12 }
  0x3f   : > { %s170_s9 = sshll.u32 %s162_s26, 4  ;;  %s159_s0 = scalar_lea.sflag [#allocation11], %s3558_s17  ;;  %s171_s9 = int_to_ptr.vmem [resolvable:$true] %s170_s9 }
  0x40   : > { %s2434_s14 = scalar_lea.vmem %s171_s9, 64  ;;  %s3393_s5 = smov [#allocation10]  }
  0x41   : > { %p2435_p9 = scmp.ne.s32.totalorder %s171_s9, %s2434_s14  ;;  %s2439_s11 = sshll.u32 %s3393_s5, 4  ;;  %s2440_s11 = int_to_ptr.vmem [resolvable:$false] %s2439_s11 }
  0x42   : > { %s2441_s13 = scalar_lea.vmem %s2440_s11, 128  ;;  %p2442_p5 = scmp.lt.s32.totalorder %s171_s9, %s2440_s11 }
  0x43   : > { %s168_s2 = scalar_lea.hbm %s4511_s3, %s2034_s21  ;;  %p2437_p10 = pnand %p2435_p9, %p2395_p6 }
  0x44   : > { %p2443_p11 = scmp.lt.s32.totalorder %s2441_s13, %s2434_s14 }
  0x45   : > { %p2438_p3 = pneg %p2437_p10 }
  0x46   : > { %p2444_p12 = por %p2443_p11, %p2442_p5 }
  0x48   : > { %p2445_p0 = pnand %p2444_p12, %p2438_p3 }
  0x4a   : > { %2448 = shalt.err (!%p2445_p0)
}
  0x4b   : > { %2196 = dma.hbm_to_vmem [thread:$0]  (!%p3567_p4), %s168_s2, 64, %s171_s9, %s159_s0  }
  0x4c   : > { %179 = sbr.rel (%p3585_p7) target bundleno = 1210 (0x4ba), region = 28  ;;  %s181_s26 = sand.u32 (!%p3585_p7), 1, %s3355_s22  }
  0x4d   : > { %s1919_s17 = sshll.u32 (!%p3585_p7), %s181_s26, 8  ;;  %s182_s28 = scalar_lea.sflag (!%p3585_p7), [#allocation8], %s181_s26 }
  0x4e   : > { %s3601_s7 = scalar_lea.vmem (!%p3585_p7), [#allocation7], %s1919_s17 }
  0x51   : > { %3322 = dma.done.wait (%p3534_p8), %s182_s28, 4096  }
  0x52   : > { %3324 = vsyncadd (%p3534_p8), %s182_s28, 4294963200  ;;  %s1920_s14 = sshll.u32 %s181_s26, 2  ;;  %s191_s12 = scalar_lea.sflag [#allocation11], %s181_s26 }
  0x53   : > { %s3607_s29 = scalar_lea.vmem [#allocation10], %s1920_s14 }
  0x54   : > { %3326 = dma.done.wait (%p3534_p8), %s191_s12, 64  }
  0x55   : > { %3328 = vsyncadd (%p3534_p8), %s191_s12, 4294967232  ;;  %s4480_s2 = sand.u32 1, %s3343_s19   ;;  %p1922_p4 = scmp.ne.s32.totalorder %s3363_s23, 0 }
  0x56   : > { %s1921_s0 = sshll.u32 %s4480_s2, 9  ;;  %s3621_s30 = sshll.u32 (!%p1922_p4), %s3367_s24, 9 }
  0x57   : > { %s3616_s9 = scalar_lea.vmem [#allocation12], %s1921_s0  ;;  %228 = sbr.rel (%p1922_p4) target bundleno = 871 (0x367), region = 40 }
  0x58   : > { %s231_s10 = sld [smem:[#allocation6 + %s3621_s30]] (!%p1922_p4)  ;;  %s3394_s6 = smov (!%p1922_p4), [#allocation3]  }
  0x59   : > { %s241_s8 = sshll.u32 (!%p1922_p4), %s3394_s6, 4  ;;  %s245_s5 = sadd.s32 (!%p1922_p4), 1, %s3621_s30  ;;  %s3625_s8 = int_to_ptr.vmem [resolvable:$true] %s241_s8 }
  0x5a   : > { %s3627_s11 = sld [smem:[#allocation6 + %s245_s5]] (!%p1922_p4)  ;;  %s261_s13 = sadd.s32 (!%p1922_p4), 2, %s3621_s30 }
  0x5b   : > { %s3395_s26 = smov (!%p1922_p4), [#allocation3 + $0x80]   ;;  %s3630_s28 = sld [smem:[#allocation6 + %s261_s13]] (!%p1922_p4) }
  0x5c   : > { %s257_s17 = sshll.u32 %s3395_s26, 4  ;;  %s3396_s12 = smov [#allocation3 + $0x100]   ;;  %s3632_s17 = int_to_ptr.vmem [resolvable:$true] %s257_s17 }
  0x5d   : > { %s273_s0 = sshll.u32 %s3396_s12, 4  ;;  %s3642_s22 = scalar_lea.hbm %s4472_s1, 16000  ;;  %s3637_s0 = int_to_ptr.vmem [resolvable:$true] %s273_s0 }
  0x5e   : > { %s1925_s14 = sshll.u32 %s231_s10, 4 }
  0x5f   : > { %s233_s3 = scalar_lea.hbm %s4472_s1, %s1925_s14 }
  0x60   : > { %s2449_s6 = scalar_lea.hbm %s233_s3, 16  ;;  %p2452_p6 = scmp.lt.s32.totalorder %s233_s3, %s4472_s1 }
  0x61   : > { %p2450_p8 = scmp.ne.s32.totalorder %s233_s3, %s2449_s6  ;;  %p2453_p1 = scmp.lt.s32.totalorder %s3642_s22, %s2449_s6 }
  0x63   : > { %p2454_p7 = por %p2453_p1, %p2452_p6 }
  0x65   : > { %p2455_p9 = pnand %p2454_p7, %p2450_p8 }
  0x67   : > { %2458 = shalt.err (!%p2455_p9)  }
  0x68   : > { %s2459_s2 = scalar_lea.vmem %s3625_s8, 16  ;;  %s3651_s21 = scalar_lea.vmem %s3625_s8, 8192 }
  0x69   : > { %p2460_p10 = scmp.ne.s32.totalorder %s3625_s8, %s2459_s2  ;;  %p2464_p3 = scmp.lt.s32.totalorder %s3625_s8, %s3625_s8 }
  0x6a   : > { %p2465_p5 = scmp.lt.s32.totalorder %s3651_s21, %s2459_s2 }
  0x6c   : > { %p2466_p11 = por %p2465_p5, %p2464_p3 }
  0x6e   : > { %p2467_p12 = pnand %p2466_p11, %p2460_p10 }
  0x70   : > { %2470 = shalt.err (!%p2467_p12)  }
  0x71   : > { %244 = dma.hbm_to_vmem [thread:$0]  %s233_s3, 16, %s3625_s8, [#allocation4] }
  0x72   : > { %s1926_s25 = sshll.u32 %s3627_s11, 4  ;;  %s277_s10 = sadd.s32 3, %s3621_s30 }
  0x73   : > { %s248_s6 = scalar_lea.hbm %s4472_s1, %s1926_s25  ;;  %s1927_s5 = sshll.u32 %s3630_s28, 4 }
  0x74   : > { %s2471_s13 = scalar_lea.hbm %s248_s6, 16  ;;  %p2474_p4 = scmp.lt.s32.totalorder %s248_s6, %s4472_s1 }
  0x75   : > { %p2472_p0 = scmp.ne.s32.totalorder %s248_s6, %s2471_s13  ;;  %p2475_p8 = scmp.lt.s32.totalorder %s3642_s22, %s2471_s13 }
  0x77   : > { %p2476_p6 = por %p2475_p8, %p2474_p4 }
  0x79   : > { %p2477_p1 = pnand %p2476_p6, %p2472_p0 }
  0x7b   : > { %2480 = shalt.err (!%p2477_p1)  }
  0x7c   : > { %s2481_s3 = scalar_lea.vmem %s3632_s17, 16  ;;  %p2486_p9 = scmp.lt.s32.totalorder %s3632_s17, %s3625_s8 }
  0x7d   : > { %p2482_p7 = scmp.ne.s32.totalorder %s3632_s17, %s2481_s3  ;;  %p2487_p10 = scmp.lt.s32.totalorder %s3651_s21, %s2481_s3 }
  0x7f   : > { %p2488_p3 = por %p2487_p10, %p2486_p9 }
  0x81   : > { %p2489_p5 = pnand %p2488_p3, %p2482_p7 }
  0x83   : > { %2492 = shalt.err (!%p2489_p5)  }
  0x84   : > { %260 = dma.hbm_to_vmem [thread:$0]  %s248_s6, 16, %s3632_s17, [#allocation4] }
  0x85   : > { %s264_s25 = scalar_lea.hbm %s4472_s1, %s1927_s5  ;;  %s278_s14 = sld [smem:[#allocation6 + %s277_s10]] }
  0x86   : > { %s2493_s12 = scalar_lea.hbm %s264_s25, 16  ;;  %p2496_p12 = scmp.lt.s32.totalorder %s264_s25, %s4472_s1 }
  0x87   : > { %p2494_p11 = scmp.ne.s32.totalorder %s264_s25, %s2493_s12  ;;  %p2497_p0 = scmp.lt.s32.totalorder %s3642_s22, %s2493_s12 }
  0x89   : > { %p2498_p4 = por %p2497_p0, %p2496_p12 }
  0x8b   : > { %p2499_p8 = pnand %p2498_p4, %p2494_p11 }
  0x8d   : > { %2502 = shalt.err (!%p2499_p8)  }
  0x8e   : > { %s2503_s17 = scalar_lea.vmem %s3637_s0, 16  ;;  %p2508_p1 = scmp.lt.s32.totalorder %s3637_s0, %s3625_s8 }
  0x8f   : > { %p2504_p6 = scmp.ne.s32.totalorder %s3637_s0, %s2503_s17  ;;  %p2509_p7 = scmp.lt.s32.totalorder %s3651_s21, %s2503_s17 }
  0x91   : > { %p2510_p9 = por %p2509_p7, %p2508_p1 }
  0x93   : > { %p2511_p10 = pnand %p2510_p9, %p2504_p6 }
  0x95   : > { %2514 = shalt.err (!%p2511_p10)  }
  0x96   : > { %276 = dma.hbm_to_vmem [thread:$0]  %s264_s25, 16, %s3637_s0, [#allocation4] }
  0x97   : > { %s3687_s10 = sadd.s32 4, %s3621_s30  ;;  %s3397_s6 = smov [#allocation3 + $0x180]  }
  0x98   : > { %s289_s5 = sshll.u32 %s3397_s6, 4  ;;  %s295_s2 = sld [smem:[#allocation6 + %s3687_s10]]  ;;  %s290_s5 = int_to_ptr.vmem [resolvable:$true] %s289_s5 }
  0x99   : > { %s3398_s3 = smov [#allocation3 + $0x1]   ;;  %s310_s28 = sadd.s32 1, %s3687_s10 }
  0x9a   : > { %s306_s11 = sshll.u32 %s3398_s3, 4  ;;  %s1928_s12 = sshll.u32 %s278_s14, 4  ;;  %s3691_s11 = int_to_ptr.vmem [resolvable:$true] %s306_s11 }
  0x9b   : > { %s280_s17 = scalar_lea.hbm %s4472_s1, %s1928_s12  ;;  %s3696_s0 = sld [smem:[#allocation6 + %s310_s28]] }
  0x9c   : > { %s2515_s25 = scalar_lea.hbm %s280_s17, 16  ;;  %p2518_p5 = scmp.lt.s32.totalorder %s280_s17, %s4472_s1 }
  0x9d   : > { %p2516_p3 = scmp.ne.s32.totalorder %s280_s17, %s2515_s25  ;;  %p2519_p11 = scmp.lt.s32.totalorder %s3642_s22, %s2515_s25 }
  0x9f   : > { %p2520_p12 = por %p2519_p11, %p2518_p5 }
  0xa1   : > { %p2521_p0 = pnand %p2520_p12, %p2516_p3 }
  0xa3   : > { %2524 = shalt.err (!%p2521_p0)  }
  0xa4   : > { %s2525_s6 = scalar_lea.vmem %s290_s5, 16  ;;  %p2530_p8 = scmp.lt.s32.totalorder %s290_s5, %s3625_s8 }
  0xa5   : > { %p2526_p4 = scmp.ne.s32.totalorder %s290_s5, %s2525_s6  ;;  %p2531_p6 = scmp.lt.s32.totalorder %s3651_s21, %s2525_s6 }
  0xa7   : > { %p2532_p1 = por %p2531_p6, %p2530_p8 }
  0xa9   : > { %p2533_p7 = pnand %p2532_p1, %p2526_p4 }
  0xab   : > { %2536 = shalt.err (!%p2533_p7)  }
  0xac   : > { %292 = dma.hbm_to_vmem [thread:$0]  %s280_s17, 16, %s290_s5, [#allocation4] }
  0xad   : > { %s1930_s14 = sshll.u32 %s295_s2, 4  ;;  %s3399_s16 = smov [#allocation3 + $0x81]  }
  0xae   : > { %s297_s20 = scalar_lea.hbm %s4472_s1, %s1930_s14  ;;  %s322_s12 = sshll.u32 %s3399_s16, 4  ;;  %s323_s12 = int_to_ptr.vmem [resolvable:$true] %s322_s12 }
  0xaf   : > { %s2537_s13 = scalar_lea.hbm %s297_s20, 16  ;;  %p2540_p10 = scmp.lt.s32.totalorder %s297_s20, %s4472_s1 }
  0xb0   : > { %p2538_p9 = scmp.ne.s32.totalorder %s297_s20, %s2537_s13  ;;  %p2541_p3 = scmp.lt.s32.totalorder %s3642_s22, %s2537_s13 }
  0xb2   : > { %p2542_p5 = por %p2541_p3, %p2540_p10 }
  0xb4   : > { %p2543_p11 = pnand %p2542_p5, %p2538_p9 }
  0xb6   : > { %2546 = shalt.err (!%p2543_p11)  }
  0xb7   : > { %s2547_s5 = scalar_lea.vmem %s3691_s11, 16  ;;  %p2552_p0 = scmp.lt.s32.totalorder %s3691_s11, %s3625_s8 }
  0xb8   : > { %p2548_p12 = scmp.ne.s32.totalorder %s3691_s11, %s2547_s5  ;;  %p2553_p4 = scmp.lt.s32.totalorder %s3651_s21, %s2547_s5 }
  0xba   : > { %p2554_p8 = por %p2553_p4, %p2552_p0 }
  0xbc   : > { %p2555_p6 = pnand %p2554_p8, %p2548_p12 }
  0xbe   : > { %2558 = shalt.err (!%p2555_p6)  }
  0xbf   : > { %309 = dma.hbm_to_vmem [thread:$0]  %s297_s20, 16, %s3691_s11, [#allocation4] }
  0xc0   : > { %s326_s2 = sadd.s32 2, %s3687_s10  ;;  %s1931_s17 = sshll.u32 %s3696_s0, 4 }
  0xc1   : > { %s327_s6 = sld [smem:[#allocation6 + %s326_s2]]  ;;  %s313_s28 = scalar_lea.hbm %s4472_s1, %s1931_s17 }
  0xc2   : > { %s2559_s16 = scalar_lea.hbm %s313_s28, 16  ;;  %p2562_p7 = scmp.lt.s32.totalorder %s313_s28, %s4472_s1 }
  0xc3   : > { %p2560_p1 = scmp.ne.s32.totalorder %s313_s28, %s2559_s16  ;;  %p2563_p9 = scmp.lt.s32.totalorder %s3642_s22, %s2559_s16 }
  0xc5   : > { %p2564_p10 = por %p2563_p9, %p2562_p7 }
  0xc7   : > { %p2565_p3 = pnand %p2564_p10, %p2560_p1 }
  0xc9   : > { %2568 = shalt.err (!%p2565_p3)  }
  0xca   : > { %s2569_s25 = scalar_lea.vmem %s323_s12, 16  ;;  %p2574_p11 = scmp.lt.s32.totalorder %s323_s12, %s3625_s8 }
  0xcb   : > { %p2570_p5 = scmp.ne.s32.totalorder %s323_s12, %s2569_s25  ;;  %p2575_p12 = scmp.lt.s32.totalorder %s3651_s21, %s2569_s25 }
  0xcd   : > { %p2576_p0 = por %p2575_p12, %p2574_p11 }
  0xcf   : > { %p2577_p4 = pnand %p2576_p0, %p2570_p5 }
  0xd1   : > { %2580 = shalt.err (!%p2577_p4)  }
  0xd2   : > { %325 = dma.hbm_to_vmem [thread:$0]  %s313_s28, 16, %s323_s12, [#allocation4] }
  0xd3   : > { %s3400_s11 = smov [#allocation3 + $0x101]   ;;  %s342_s20 = sadd.s32 3, %s3687_s10 }
  0xd4   : > { %s338_s0 = sshll.u32 %s3400_s11, 4  ;;  %s343_s5 = sld [smem:[#allocation6 + %s342_s20]]  ;;  %s339_s0 = int_to_ptr.vmem [resolvable:$true] %s338_s0 }
  0xd5   : > { %s3730_s2 = sadd.s32 8, %s3621_s30  ;;  %s1932_s17 = sshll.u32 %s327_s6, 4 }
  0xd6   : > { %s3401_s14 = smov [#allocation3 + $0x181]   ;;  %s329_s26 = scalar_lea.hbm %s4472_s1, %s1932_s17 }
  0xd7   : > { %s354_s3 = sshll.u32 %s3401_s14, 4  ;;  %s2581_s12 = scalar_lea.hbm %s329_s26, 16  ;;  %s3735_s3 = int_to_ptr.vmem [resolvable:$true] %s354_s3 }
  0xd8   : > { %p2582_p8 = scmp.ne.s32.totalorder %s329_s26, %s2581_s12  ;;  %p2584_p6 = scmp.lt.s32.totalorder %s329_s26, %s4472_s1 }
  0xd9   : > { %p2585_p1 = scmp.lt.s32.totalorder %s3642_s22, %s2581_s12 }
  0xdb   : > { %p2586_p7 = por %p2585_p1, %p2584_p6 }
  0xdd   : > { %p2587_p9 = pnand %p2586_p7, %p2582_p8 }
  0xdf   : > { %2590 = shalt.err (!%p2587_p9)  }
  0xe0   : > { %s2591_s10 = scalar_lea.vmem %s339_s0, 16  ;;  %p2596_p3 = scmp.lt.s32.totalorder %s339_s0, %s3625_s8 }
  0xe1   : > { %p2592_p10 = scmp.ne.s32.totalorder %s339_s0, %s2591_s10  ;;  %p2597_p5 = scmp.lt.s32.totalorder %s3651_s21, %s2591_s10 }
  0xe3   : > { %p2598_p11 = por %p2597_p5, %p2596_p3 }
  0xe5   : > { %p2599_p12 = pnand %p2598_p11, %p2592_p10 }
  0xe7   : > { %2602 = shalt.err (!%p2599_p12)  }
  0xe8   : > { %341 = dma.hbm_to_vmem [thread:$0]  %s329_s26, 16, %s339_s0, [#allocation4] }
  0xe9   : > { %s360_s6 = sld [smem:[#allocation6 + %s3730_s2]]  ;;  %s1933_s11 = sshll.u32 %s343_s5, 4 }
  0xea   : > { %s3402_s20 = smov [#allocation3 + $0x2]   ;;  %s345_s13 = scalar_lea.hbm %s4472_s1, %s1933_s11 }
  0xeb   : > { %s371_s17 = sshll.u32 %s3402_s20, 4  ;;  %s2603_s12 = scalar_lea.hbm %s345_s13, 16  ;;  %s3747_s17 = int_to_ptr.vmem [resolvable:$true] %s371_s17 }
  0xec   : > { %p2604_p0 = scmp.ne.s32.totalorder %s345_s13, %s2603_s12  ;;  %p2606_p4 = scmp.lt.s32.totalorder %s345_s13, %s4472_s1 }
  0xed   : > { %p2607_p8 = scmp.lt.s32.totalorder %s3642_s22, %s2603_s12 }
  0xef   : > { %p2608_p6 = por %p2607_p8, %p2606_p4 }
  0xf1   : > { %p2609_p1 = pnand %p2608_p6, %p2604_p0 }
  0xf3   : > { %2612 = shalt.err (!%p2609_p1)  }
  0xf4   : > { %s2613_s0 = scalar_lea.vmem %s3735_s3, 16  ;;  %p2618_p9 = scmp.lt.s32.totalorder %s3735_s3, %s3625_s8 }
  0xf5   : > { %p2614_p7 = scmp.ne.s32.totalorder %s3735_s3, %s2613_s0  ;;  %p2619_p10 = scmp.lt.s32.totalorder %s3651_s21, %s2613_s0 }
  0xf7   : > { %p2620_p3 = por %p2619_p10, %p2618_p9 }
  0xf9   : > { %p2621_p5 = pnand %p2620_p3, %p2614_p7 }
  0xfb   : > { %2624 = shalt.err (!%p2621_p5)  }
  0xfc   : > { %357 = dma.hbm_to_vmem [thread:$0]  %s345_s13, 16, %s3735_s3, [#allocation4] }
  0xfd   : > { %s375_s5 = sadd.s32 1, %s3730_s2  ;;  %s3403_s10 = smov [#allocation3 + $0x82]  }
  0xfe   : > { %s3760_s26 = sld [smem:[#allocation6 + %s375_s5]]  ;;  %s387_s11 = sshll.u32 %s3403_s10, 4  ;;  %s3762_s11 = int_to_ptr.vmem [resolvable:$true] %s387_s11 }
  0xff   : > { %s1935_s20 = sshll.u32 %s360_s6, 4  ;;  %s391_s28 = sadd.s32 2, %s3730_s2 }
 0x100   : > { %s362_s12 = scalar_lea.hbm %s4472_s1, %s1935_s20 }
 0x101   : > { %s2625_s25 = scalar_lea.hbm %s362_s12, 16  ;;  %p2628_p12 = scmp.lt.s32.totalorder %s362_s12, %s4472_s1 }
 0x102   : > { %p2626_p11 = scmp.ne.s32.totalorder %s362_s12, %s2625_s25  ;;  %p2629_p0 = scmp.lt.s32.totalorder %s3642_s22, %s2625_s25 }
 0x104   : > { %p2630_p4 = por %p2629_p0, %p2628_p12 }
 0x106   : > { %p2631_p8 = pnand %p2630_p4, %p2626_p11 }
 0x108   : > { %2634 = shalt.err (!%p2631_p8)  }
 0x109   : > { %s2635_s3 = scalar_lea.vmem %s3747_s17, 16  ;;  %p2640_p1 = scmp.lt.s32.totalorder %s3747_s17, %s3625_s8 }
 0x10a   : > { %p2636_p6 = scmp.ne.s32.totalorder %s3747_s17, %s2635_s3  ;;  %p2641_p7 = scmp.lt.s32.totalorder %s3651_s21, %s2635_s3 }
 0x10c   : > { %p2642_p9 = por %p2641_p7, %p2640_p1 }
 0x10e   : > { %p2643_p10 = pnand %p2642_p9, %p2636_p6 }
 0x110   : > { %2646 = shalt.err (!%p2643_p10)  }
 0x111   : > { %374 = dma.hbm_to_vmem [thread:$0]  %s362_s12, 16, %s3747_s17, [#allocation4] }
 0x112   : > { %s392_s18 = sld [smem:[#allocation6 + %s391_s28]]  ;;  %s3404_s6 = smov [#allocation3 + $0x102]  }
 0x113   : > { %s403_s13 = sshll.u32 %s3404_s6, 4  ;;  %s407_s5 = sadd.s32 3, %s3730_s2  ;;  %s3780_s13 = int_to_ptr.vmem [resolvable:$true] %s403_s13 }
 0x114   : > { %s1936_s10 = sshll.u32 %s3760_s26, 4  ;;  %s3785_s25 = sld [smem:[#allocation6 + %s407_s5]] }
 0x115   : > { %s378_s16 = scalar_lea.hbm %s4472_s1, %s1936_s10 }
 0x116   : > { %s2647_s0 = scalar_lea.hbm %s378_s16, 16  ;;  %p2650_p5 = scmp.lt.s32.totalorder %s378_s16, %s4472_s1 }
 0x117   : > { %p2648_p3 = scmp.ne.s32.totalorder %s378_s16, %s2647_s0  ;;  %p2651_p11 = scmp.lt.s32.totalorder %s3642_s22, %s2647_s0 }
 0x119   : > { %p2652_p12 = por %p2651_p11, %p2650_p5 }
 0x11b   : > { %p2653_p0 = pnand %p2652_p12, %p2648_p3 }
 0x11d   : > { %2656 = shalt.err (!%p2653_p0)  }
 0x11e   : > { %s2657_s2 = scalar_lea.vmem %s3762_s11, 16  ;;  %p2662_p8 = scmp.lt.s32.totalorder %s3762_s11, %s3625_s8 }
 0x11f   : > { %p2658_p4 = scmp.ne.s32.totalorder %s3762_s11, %s2657_s2  ;;  %p2663_p6 = scmp.lt.s32.totalorder %s3651_s21, %s2657_s2 }
 0x121   : > { %p2664_p1 = por %p2663_p6, %p2662_p8 }
 0x123   : > { %p2665_p7 = pnand %p2664_p1, %p2658_p4 }
 0x125   : > { %2668 = shalt.err (!%p2665_p7)  }
 0x126   : > { %390 = dma.hbm_to_vmem [thread:$0]  %s378_s16, 16, %s3762_s11, [#allocation4] }
 0x127   : > { %s3798_s27 = sadd.s32 12, %s3621_s30  ;;  %s1937_s17 = sshll.u32 %s392_s18, 4 }
 0x128   : > { %s3405_s26 = smov [#allocation3 + $0x182]   ;;  %s394_s5 = scalar_lea.hbm %s4472_s1, %s1937_s17 }
 0x129   : > { %s419_s12 = sshll.u32 %s3405_s26, 4  ;;  %s2669_s10 = scalar_lea.hbm %s394_s5, 16  ;;  %s3803_s12 = int_to_ptr.vmem [resolvable:$true] %s419_s12 }
 0x12a   : > { %p2670_p9 = scmp.ne.s32.totalorder %s394_s5, %s2669_s10  ;;  %p2672_p10 = scmp.lt.s32.totalorder %s394_s5, %s4472_s1 }
 0x12b   : > { %p2673_p3 = scmp.lt.s32.totalorder %s3642_s22, %s2669_s10 }
 0x12d   : > { %p2674_p5 = por %p2673_p3, %p2672_p10 }
 0x12f   : > { %p2675_p11 = pnand %p2674_p5, %p2670_p9 }
 0x131   : > { %2678 = shalt.err (!%p2675_p11)  }
 0x132   : > { %s2679_s11 = scalar_lea.vmem %s3780_s13, 16  ;;  %p2684_p0 = scmp.lt.s32.totalorder %s3780_s13, %s3625_s8 }
 0x133   : > { %p2680_p12 = scmp.ne.s32.totalorder %s3780_s13, %s2679_s11  ;;  %p2685_p4 = scmp.lt.s32.totalorder %s3651_s21, %s2679_s11 }
 0x135   : > { %p2686_p8 = por %p2685_p4, %p2684_p0 }
 0x137   : > { %p2687_p6 = pnand %p2686_p8, %p2680_p12 }
 0x139   : > { %2690 = shalt.err (!%p2687_p6)  }
 0x13a   : > { %406 = dma.hbm_to_vmem [thread:$0]  %s394_s5, 16, %s3780_s13, [#allocation4] }
 0x13b   : > { %s1938_s18 = sshll.u32 %s3785_s25, 4  ;;  %s425_s16 = sld [smem:[#allocation6 + %s3798_s27]] }
 0x13c   : > { %s410_s2 = scalar_lea.hbm %s4472_s1, %s1938_s18 }
 0x13d   : > { %s2691_s17 = scalar_lea.hbm %s410_s2, 16  ;;  %p2694_p7 = scmp.lt.s32.totalorder %s410_s2, %s4472_s1 }
 0x13e   : > { %p2692_p1 = scmp.ne.s32.totalorder %s410_s2, %s2691_s17  ;;  %p2695_p9 = scmp.lt.s32.totalorder %s3642_s22, %s2691_s17 }
 0x140   : > { %p2696_p10 = por %p2695_p9, %p2694_p7 }
 0x142   : > { %p2697_p3 = pnand %p2696_p10, %p2692_p1 }
 0x144   : > { %2700 = shalt.err (!%p2697_p3)  }
 0x145   : > { %s2701_s13 = scalar_lea.vmem %s3803_s12, 16  ;;  %p2706_p11 = scmp.lt.s32.totalorder %s3803_s12, %s3625_s8 }
 0x146   : > { %p2702_p5 = scmp.ne.s32.totalorder %s3803_s12, %s2701_s13  ;;  %p2707_p12 = scmp.lt.s32.totalorder %s3651_s21, %s2701_s13 }
 0x148   : > { %p2708_p0 = por %p2707_p12, %p2706_p11 }
 0x14a   : > { %p2709_p4 = pnand %p2708_p0, %p2702_p5 }
 0x14c   : > { %2712 = shalt.err (!%p2709_p4)  }
 0x14d   : > { %422 = dma.hbm_to_vmem [thread:$0]  %s410_s2, 16, %s3803_s12, [#allocation4] }
 0x14e   : > { %s3406_s25 = smov [#allocation3 + $0x3]   ;;  %s440_s5 = sadd.s32 1, %s3798_s27 }
 0x14f   : > { %s436_s6 = sshll.u32 %s3406_s25, 4  ;;  %s441_s10 = sld [smem:[#allocation6 + %s440_s5]]  ;;  %s437_s6 = int_to_ptr.vmem [resolvable:$true] %s436_s6 }
 0x150   : > { %s456_s20 = sadd.s32 2, %s3798_s27  ;;  %s1940_s14 = sshll.u32 %s425_s16, 4 }
 0x151   : > { %s3407_s11 = smov [#allocation3 + $0x83]   ;;  %s427_s17 = scalar_lea.hbm %s4472_s1, %s1940_s14 }
 0x152   : > { %s452_s18 = sshll.u32 %s3407_s11, 4  ;;  %s2713_s26 = scalar_lea.hbm %s427_s17, 16  ;;  %s3835_s18 = int_to_ptr.vmem [resolvable:$true] %s452_s18 }
 0x153   : > { %p2714_p8 = scmp.ne.s32.totalorder %s427_s17, %s2713_s26  ;;  %p2716_p6 = scmp.lt.s32.totalorder %s427_s17, %s4472_s1 }
 0x154   : > { %p2717_p1 = scmp.lt.s32.totalorder %s3642_s22, %s2713_s26 }
 0x156   : > { %p2718_p7 = por %p2717_p1, %p2716_p6 }
 0x158   : > { %p2719_p9 = pnand %p2718_p7, %p2714_p8 }
 0x15a   : > { %2722 = shalt.err (!%p2719_p9)  }
 0x15b   : > { %s2723_s12 = scalar_lea.vmem %s437_s6, 16  ;;  %p2728_p3 = scmp.lt.s32.totalorder %s437_s6, %s3625_s8 }
 0x15c   : > { %p2724_p10 = scmp.ne.s32.totalorder %s437_s6, %s2723_s12  ;;  %p2729_p5 = scmp.lt.s32.totalorder %s3651_s21, %s2723_s12 }
 0x15e   : > { %p2730_p11 = por %p2729_p5, %p2728_p3 }
 0x160   : > { %p2731_p12 = pnand %p2730_p11, %p2724_p10 }
 0x162   : > { %2734 = shalt.err (!%p2731_p12)  }
 0x163   : > { %439 = dma.hbm_to_vmem [thread:$0]  %s427_s17, 16, %s437_s6, [#allocation4] }
 0x164   : > { %s457_s16 = sld [smem:[#allocation6 + %s456_s20]]  ;;  %s1941_s2 = sshll.u32 %s441_s10, 4 }
 0x165   : > { %s3408_s25 = smov [#allocation3 + $0x103]   ;;  %s443_s0 = scalar_lea.hbm %s4472_s1, %s1941_s2 }
 0x166   : > { %s468_s5 = sshll.u32 %s3408_s25, 4  ;;  %s2735_s3 = scalar_lea.hbm %s443_s0, 16  ;;  %s3846_s5 = int_to_ptr.vmem [resolvable:$true] %s468_s5 }
 0x167   : > { %p2736_p0 = scmp.ne.s32.totalorder %s443_s0, %s2735_s3  ;;  %p2738_p4 = scmp.lt.s32.totalorder %s443_s0, %s4472_s1 }
 0x168   : > { %p2739_p8 = scmp.lt.s32.totalorder %s3642_s22, %s2735_s3 }
 0x16a   : > { %p2740_p6 = por %p2739_p8, %p2738_p4 }
 0x16c   : > { %p2741_p1 = pnand %p2740_p6, %p2736_p0 }
 0x16e   : > { %2744 = shalt.err (!%p2741_p1)  }
 0x16f   : > { %s2745_s6 = scalar_lea.vmem %s3835_s18, 16  ;;  %p2750_p9 = scmp.lt.s32.totalorder %s3835_s18, %s3625_s8 }
 0x170   : > { %p2746_p7 = scmp.ne.s32.totalorder %s3835_s18, %s2745_s6  ;;  %p2751_p10 = scmp.lt.s32.totalorder %s3651_s21, %s2745_s6 }
 0x172   : > { %p2752_p3 = por %p2751_p10, %p2750_p9 }
 0x174   : > { %p2753_p5 = pnand %p2752_p3, %p2746_p7 }
 0x176   : > { %2756 = shalt.err (!%p2753_p5)  }
 0x177   : > { %455 = dma.hbm_to_vmem [thread:$0]  %s443_s0, 16, %s3835_s18, [#allocation4] }
 0x178   : > { %s472_s10 = sadd.s32 3, %s3798_s27  ;;  %s3409_s17 = smov [#allocation3 + $0x183]  }
 0x179   : > { %s3859_s20 = sld [smem:[#allocation6 + %s472_s10]]  ;;  %s484_s13 = sshll.u32 %s3409_s17, 4  ;;  %s3861_s13 = int_to_ptr.vmem [resolvable:$true] %s484_s13 }
 0x17a   : > { %s1942_s12 = sshll.u32 %s457_s16, 4  ;;  %s3867_s11 = sadd.s32 16, %s3621_s30 }
 0x17b   : > { %s459_s14 = scalar_lea.hbm %s4472_s1, %s1942_s12 }
 0x17c   : > { %s2757_s3 = scalar_lea.hbm %s459_s14, 16  ;;  %p2760_p12 = scmp.lt.s32.totalorder %s459_s14, %s4472_s1 }
 0x17d   : > { %p2758_p11 = scmp.ne.s32.totalorder %s459_s14, %s2757_s3  ;;  %p2761_p0 = scmp.lt.s32.totalorder %s3642_s22, %s2757_s3 }
 0x17f   : > { %p2762_p4 = por %p2761_p0, %p2760_p12 }
 0x181   : > { %p2763_p8 = pnand %p2762_p4, %p2758_p11 }
 0x183   : > { %2766 = shalt.err (!%p2763_p8)  }
 0x184   : > { %s2767_s27 = scalar_lea.vmem %s3846_s5, 16  ;;  %p2772_p1 = scmp.lt.s32.totalorder %s3846_s5, %s3625_s8 }
 0x185   : > { %p2768_p6 = scmp.ne.s32.totalorder %s3846_s5, %s2767_s27  ;;  %p2773_p7 = scmp.lt.s32.totalorder %s3651_s21, %s2767_s27 }
 0x187   : > { %p2774_p9 = por %p2773_p7, %p2772_p1 }
 0x189   : > { %p2775_p10 = pnand %p2774_p9, %p2768_p6 }
 0x18b   : > { %2778 = shalt.err (!%p2775_p10)  }
 0x18c   : > { %471 = dma.hbm_to_vmem [thread:$0]  %s459_s14, 16, %s3846_s5, [#allocation4] }
 0x18d   : > { %s490_s18 = sld [smem:[#allocation6 + %s3867_s11]]  ;;  %s3410_s16 = smov [#allocation3 + $0x4]  }
 0x18e   : > { %s501_s0 = sshll.u32 %s3410_s16, 4  ;;  %s505_s6 = sadd.s32 1, %s3867_s11  ;;  %s3882_s0 = int_to_ptr.vmem [resolvable:$true] %s501_s0 }
 0x18f   : > { %s1943_s10 = sshll.u32 %s3859_s20, 4  ;;  %s3887_s25 = sld [smem:[#allocation6 + %s505_s6]] }
 0x190   : > { %s475_s2 = scalar_lea.hbm %s4472_s1, %s1943_s10 }
 0x191   : > { %s2779_s3 = scalar_lea.hbm %s475_s2, 16  ;;  %p2782_p5 = scmp.lt.s32.totalorder %s475_s2, %s4472_s1 }
 0x192   : > { %p2780_p3 = scmp.ne.s32.totalorder %s475_s2, %s2779_s3  ;;  %p2783_p11 = scmp.lt.s32.totalorder %s3642_s22, %s2779_s3 }
 0x194   : > { %p2784_p12 = por %p2783_p11, %p2782_p5 }
 0x196   : > { %p2785_p0 = pnand %p2784_p12, %p2780_p3 }
 0x198   : > { %2788 = shalt.err (!%p2785_p0)  }
 0x199   : > { %s2789_s5 = scalar_lea.vmem %s3861_s13, 16  ;;  %p2794_p8 = scmp.lt.s32.totalorder %s3861_s13, %s3625_s8 }
 0x19a   : > { %p2790_p4 = scmp.ne.s32.totalorder %s3861_s13, %s2789_s5  ;;  %p2795_p6 = scmp.lt.s32.totalorder %s3651_s21, %s2789_s5 }
 0x19c   : > { %p2796_p1 = por %p2795_p6, %p2794_p8 }
 0x19e   : > { %p2797_p7 = pnand %p2796_p1, %p2790_p4 }
 0x1a0   : > { %2800 = shalt.err (!%p2797_p7)  }
 0x1a1   : > { %487 = dma.hbm_to_vmem [thread:$0]  %s475_s2, 16, %s3861_s13, [#allocation4] }
 0x1a2   : > { %s521_s20 = sadd.s32 2, %s3867_s11  ;;  %s1945_s14 = sshll.u32 %s490_s18, 4 }
 0x1a3   : > { %s3411_s27 = smov [#allocation3 + $0x84]   ;;  %s492_s17 = scalar_lea.hbm %s4472_s1, %s1945_s14 }
 0x1a4   : > { %s517_s16 = sshll.u32 %s3411_s27, 4  ;;  %s2801_s12 = scalar_lea.hbm %s492_s17, 16  ;;  %s3903_s16 = int_to_ptr.vmem [resolvable:$true] %s517_s16 }
 0x1a5   : > { %p2802_p9 = scmp.ne.s32.totalorder %s492_s17, %s2801_s12  ;;  %p2804_p10 = scmp.lt.s32.totalorder %s492_s17, %s4472_s1 }
 0x1a6   : > { %p2805_p3 = scmp.lt.s32.totalorder %s3642_s22, %s2801_s12 }
 0x1a8   : > { %p2806_p5 = por %p2805_p3, %p2804_p10 }
 0x1aa   : > { %p2807_p11 = pnand %p2806_p5, %p2802_p9 }
 0x1ac   : > { %2810 = shalt.err (!%p2807_p11)  }
 0x1ad   : > { %s2811_s13 = scalar_lea.vmem %s3882_s0, 16  ;;  %p2816_p0 = scmp.lt.s32.totalorder %s3882_s0, %s3625_s8 }
 0x1ae   : > { %p2812_p12 = scmp.ne.s32.totalorder %s3882_s0, %s2811_s13  ;;  %p2817_p4 = scmp.lt.s32.totalorder %s3651_s21, %s2811_s13 }
 0x1b0   : > { %p2818_p8 = por %p2817_p4, %p2816_p0 }
 0x1b2   : > { %p2819_p6 = pnand %p2818_p8, %p2812_p12 }
 0x1b4   : > { %2822 = shalt.err (!%p2819_p6)  }
 0x1b5   : > { %504 = dma.hbm_to_vmem [thread:$0]  %s492_s17, 16, %s3882_s0, [#allocation4] }
 0x1b6   : > { %s1946_s18 = sshll.u32 %s3887_s25, 4  ;;  %s522_s2 = sld [smem:[#allocation6 + %s521_s20]] }
 0x1b7   : > { %s508_s14 = scalar_lea.hbm %s4472_s1, %s1946_s18 }
 0x1b8   : > { %s2823_s27 = scalar_lea.hbm %s508_s14, 16  ;;  %p2826_p7 = scmp.lt.s32.totalorder %s508_s14, %s4472_s1 }
 0x1b9   : > { %p2824_p1 = scmp.ne.s32.totalorder %s508_s14, %s2823_s27  ;;  %p2827_p9 = scmp.lt.s32.totalorder %s3642_s22, %s2823_s27 }
 0x1bb   : > { %p2828_p10 = por %p2827_p9, %p2826_p7 }
 0x1bd   : > { %p2829_p3 = pnand %p2828_p10, %p2824_p1 }
 0x1bf   : > { %2832 = shalt.err (!%p2829_p3)  }
 0x1c0   : > { %s2833_s0 = scalar_lea.vmem %s3903_s16, 16  ;;  %p2838_p11 = scmp.lt.s32.totalorder %s3903_s16, %s3625_s8 }
 0x1c1   : > { %p2834_p5 = scmp.ne.s32.totalorder %s3903_s16, %s2833_s0  ;;  %p2839_p12 = scmp.lt.s32.totalorder %s3651_s21, %s2833_s0 }
 0x1c3   : > { %p2840_p0 = por %p2839_p12, %p2838_p11 }
 0x1c5   : > { %p2841_p4 = pnand %p2840_p0, %p2834_p5 }
 0x1c7   : > { %2844 = shalt.err (!%p2841_p4)  }
 0x1c8   : > { %520 = dma.hbm_to_vmem [thread:$0]  %s508_s14, 16, %s3903_s16, [#allocation4] }
 0x1c9   : > { %s3412_s25 = smov [#allocation3 + $0x104]   ;;  %s537_s17 = sadd.s32 3, %s3867_s11 }
 0x1ca   : > { %s533_s20 = sshll.u32 %s3412_s25, 4  ;;  %s538_s12 = sld [smem:[#allocation6 + %s537_s17]]  ;;  %s534_s20 = int_to_ptr.vmem [resolvable:$true] %s533_s20 }
 0x1cb   : > { %s3931_s3 = sadd.s32 20, %s3621_s30  ;;  %s1947_s26 = sshll.u32 %s522_s2, 4 }
 0x1cc   : > { %s3413_s13 = smov [#allocation3 + $0x184]   ;;  %s524_s27 = scalar_lea.hbm %s4472_s1, %s1947_s26 }
 0x1cd   : > { %s549_s18 = sshll.u32 %s3413_s13, 4  ;;  %s2845_s6 = scalar_lea.hbm %s524_s27, 16  ;;  %s3936_s18 = int_to_ptr.vmem [resolvable:$true] %s549_s18 }
 0x1ce   : > { %p2846_p8 = scmp.ne.s32.totalorder %s524_s27, %s2845_s6  ;;  %p2848_p6 = scmp.lt.s32.totalorder %s524_s27, %s4472_s1 }
 0x1cf   : > { %p2849_p1 = scmp.lt.s32.totalorder %s3642_s22, %s2845_s6 }
 0x1d1   : > { %p2850_p7 = por %p2849_p1, %p2848_p6 }
 0x1d3   : > { %p2851_p9 = pnand %p2850_p7, %p2846_p8 }
 0x1d5   : > { %2854 = shalt.err (!%p2851_p9)  }
 0x1d6   : > { %s2855_s11 = scalar_lea.vmem %s534_s20, 16  ;;  %p2860_p3 = scmp.lt.s32.totalorder %s534_s20, %s3625_s8 }
 0x1d7   : > { %p2856_p10 = scmp.ne.s32.totalorder %s534_s20, %s2855_s11  ;;  %p2861_p5 = scmp.lt.s32.totalorder %s3651_s21, %s2855_s11 }
 0x1d9   : > { %p2862_p11 = por %p2861_p5, %p2860_p3 }
 0x1db   : > { %p2863_p12 = pnand %p2862_p11, %p2856_p10 }
 0x1dd   : > { %2866 = shalt.err (!%p2863_p12)  }
 0x1de   : > { %536 = dma.hbm_to_vmem [thread:$0]  %s524_s27, 16, %s534_s20, [#allocation4] }
 0x1df   : > { %s555_s2 = sld [smem:[#allocation6 + %s3931_s3]]  ;;  %s1948_s14 = sshll.u32 %s538_s12, 4 }
 0x1e0   : > { %s3414_s0 = smov [#allocation3 + $0x5]   ;;  %s540_s13 = scalar_lea.hbm %s4472_s1, %s1948_s14 }
 0x1e1   : > { %s566_s25 = sshll.u32 %s3414_s0, 4  ;;  %s2867_s28 = scalar_lea.hbm %s540_s13, 16  ;;  %s3948_s25 = int_to_ptr.vmem [resolvable:$true] %s566_s25 }
 0x1e2   : > { %p2868_p0 = scmp.ne.s32.totalorder %s540_s13, %s2867_s28  ;;  %p2870_p4 = scmp.lt.s32.totalorder %s540_s13, %s4472_s1 }
 0x1e3   : > { %p2871_p8 = scmp.lt.s32.totalorder %s3642_s22, %s2867_s28 }
 0x1e5   : > { %p2872_p6 = por %p2871_p8, %p2870_p4 }
 0x1e7   : > { %p2873_p1 = pnand %p2872_p6, %p2868_p0 }
 0x1e9   : > { %2876 = shalt.err (!%p2873_p1)  }
 0x1ea   : > { %s2877_s20 = scalar_lea.vmem %s3936_s18, 16  ;;  %p2882_p9 = scmp.lt.s32.totalorder %s3936_s18, %s3625_s8 }
 0x1eb   : > { %p2878_p7 = scmp.ne.s32.totalorder %s3936_s18, %s2877_s20  ;;  %p2883_p10 = scmp.lt.s32.totalorder %s3651_s21, %s2877_s20 }
 0x1ed   : > { %p2884_p3 = por %p2883_p10, %p2882_p9 }
 0x1ef   : > { %p2885_p5 = pnand %p2884_p3, %p2878_p7 }
 0x1f1   : > { %2888 = shalt.err (!%p2885_p5)  }
 0x1f2   : > { %552 = dma.hbm_to_vmem [thread:$0]  %s540_s13, 16, %s3936_s18, [#allocation4] }
 0x1f3   : > { %s570_s12 = sadd.s32 1, %s3931_s3  ;;  %s3415_s10 = smov [#allocation3 + $0x85]  }
 0x1f4   : > { %s3961_s27 = sld [smem:[#allocation6 + %s570_s12]]  ;;  %s582_s16 = sshll.u32 %s3415_s10, 4  ;;  %s3963_s16 = int_to_ptr.vmem [resolvable:$true] %s582_s16 }
 0x1f5   : > { %s1950_s11 = sshll.u32 %s555_s2, 4  ;;  %s586_s26 = sadd.s32 2, %s3931_s3 }
 0x1f6   : > { %s557_s17 = scalar_lea.hbm %s4472_s1, %s1950_s11 }
 0x1f7   : > { %s2889_s28 = scalar_lea.hbm %s557_s17, 16  ;;  %p2892_p12 = scmp.lt.s32.totalorder %s557_s17, %s4472_s1 }
 0x1f8   : > { %p2890_p11 = scmp.ne.s32.totalorder %s557_s17, %s2889_s28  ;;  %p2893_p0 = scmp.lt.s32.totalorder %s3642_s22, %s2889_s28 }
 0x1fa   : > { %p2894_p4 = por %p2893_p0, %p2892_p12 }
 0x1fc   : > { %p2895_p8 = pnand %p2894_p4, %p2890_p11 }
 0x1fe   : > { %2898 = shalt.err (!%p2895_p8)  }
 0x1ff   : > { %s2899_s18 = scalar_lea.vmem %s3948_s25, 16  ;;  %p2904_p1 = scmp.lt.s32.totalorder %s3948_s25, %s3625_s8 }
 0x200   : > { %p2900_p6 = scmp.ne.s32.totalorder %s3948_s25, %s2899_s18  ;;  %p2905_p7 = scmp.lt.s32.totalorder %s3651_s21, %s2899_s18 }
 0x202   : > { %p2906_p9 = por %p2905_p7, %p2904_p1 }
 0x204   : > { %p2907_p10 = pnand %p2906_p9, %p2900_p6 }
 0x206   : > { %2910 = shalt.err (!%p2907_p10)  }
 0x207   : > { %569 = dma.hbm_to_vmem [thread:$0]  %s557_s17, 16, %s3948_s25, [#allocation4] }
 0x208   : > { %s587_s2 = sld [smem:[#allocation6 + %s586_s26]]  ;;  %s3416_s13 = smov [#allocation3 + $0x105]  }
 0x209   : > { %s598_s20 = sshll.u32 %s3416_s13, 4  ;;  %s602_s12 = sadd.s32 3, %s3931_s3  ;;  %s3981_s20 = int_to_ptr.vmem [resolvable:$true] %s598_s20 }
 0x20a   : > { %s1951_s10 = sshll.u32 %s3961_s27, 4  ;;  %s3986_s28 = sld [smem:[#allocation6 + %s602_s12]] }
 0x20b   : > { %s573_s0 = scalar_lea.hbm %s4472_s1, %s1951_s10 }
 0x20c   : > { %s2911_s5 = scalar_lea.hbm %s573_s0, 16  ;;  %p2914_p5 = scmp.lt.s32.totalorder %s573_s0, %s4472_s1 }
 0x20d   : > { %p2912_p3 = scmp.ne.s32.totalorder %s573_s0, %s2911_s5  ;;  %p2915_p11 = scmp.lt.s32.totalorder %s3642_s22, %s2911_s5 }
 0x20f   : > { %p2916_p12 = por %p2915_p11, %p2914_p5 }
 0x211   : > { %p2917_p0 = pnand %p2916_p12, %p2912_p3 }
 0x213   : > { %2920 = shalt.err (!%p2917_p0)  }
 0x214   : > { %s2921_s3 = scalar_lea.vmem %s3963_s16, 16  ;;  %p2926_p8 = scmp.lt.s32.totalorder %s3963_s16, %s3625_s8 }
 0x215   : > { %p2922_p4 = scmp.ne.s32.totalorder %s3963_s16, %s2921_s3  ;;  %p2927_p6 = scmp.lt.s32.totalorder %s3651_s21, %s2921_s3 }
 0x217   : > { %p2928_p1 = por %p2927_p6, %p2926_p8 }
 0x219   : > { %p2929_p7 = pnand %p2928_p1, %p2922_p4 }
 0x21b   : > { %2932 = shalt.err (!%p2929_p7)  }
 0x21c   : > { %585 = dma.hbm_to_vmem [thread:$0]  %s573_s0, 16, %s3963_s16, [#allocation4] }
 0x21d   : > { %s3999_s25 = sadd.s32 24, %s3621_s30  ;;  %s1952_s27 = sshll.u32 %s587_s2, 4 }
 0x21e   : > { %s3417_s17 = smov [#allocation3 + $0x185]   ;;  %s589_s10 = scalar_lea.hbm %s4472_s1, %s1952_s27 }
 0x21f   : > { %s614_s26 = sshll.u32 %s3417_s17, 4  ;;  %s2933_s11 = scalar_lea.hbm %s589_s10, 16  ;;  %s4004_s26 = int_to_ptr.vmem [resolvable:$true] %s614_s26 }
 0x220   : > { %p2934_p9 = scmp.ne.s32.totalorder %s589_s10, %s2933_s11  ;;  %p2936_p10 = scmp.lt.s32.totalorder %s589_s10, %s4472_s1 }
 0x221   : > { %p2937_p3 = scmp.lt.s32.totalorder %s3642_s22, %s2933_s11 }
 0x223   : > { %p2938_p5 = por %p2937_p3, %p2936_p10 }
 0x225   : > { %p2939_p11 = pnand %p2938_p5, %p2934_p9 }
 0x227   : > { %2942 = shalt.err (!%p2939_p11)  }
 0x228   : > { %s2943_s16 = scalar_lea.vmem %s3981_s20, 16  ;;  %p2948_p0 = scmp.lt.s32.totalorder %s3981_s20, %s3625_s8 }
 0x229   : > { %p2944_p12 = scmp.ne.s32.totalorder %s3981_s20, %s2943_s16  ;;  %p2949_p4 = scmp.lt.s32.totalorder %s3651_s21, %s2943_s16 }
 0x22b   : > { %p2950_p8 = por %p2949_p4, %p2948_p0 }
 0x22d   : > { %p2951_p6 = pnand %p2950_p8, %p2944_p12 }
 0x22f   : > { %2954 = shalt.err (!%p2951_p6)  }
 0x230   : > { %601 = dma.hbm_to_vmem [thread:$0]  %s589_s10, 16, %s3981_s20, [#allocation4] }
 0x231   : > { %s1953_s2 = sshll.u32 %s3986_s28, 4  ;;  %s620_s0 = sld [smem:[#allocation6 + %s3999_s25]] }
 0x232   : > { %s605_s3 = scalar_lea.hbm %s4472_s1, %s1953_s2 }
 0x233   : > { %s2955_s27 = scalar_lea.hbm %s605_s3, 16  ;;  %p2958_p7 = scmp.lt.s32.totalorder %s605_s3, %s4472_s1 }
 0x234   : > { %p2956_p1 = scmp.ne.s32.totalorder %s605_s3, %s2955_s27  ;;  %p2959_p9 = scmp.lt.s32.totalorder %s3642_s22, %s2955_s27 }
 0x236   : > { %p2960_p10 = por %p2959_p9, %p2958_p7 }
 0x238   : > { %p2961_p3 = pnand %p2960_p10, %p2956_p1 }
 0x23a   : > { %2964 = shalt.err (!%p2961_p3)  }
 0x23b   : > { %s2965_s20 = scalar_lea.vmem %s4004_s26, 16  ;;  %p2970_p11 = scmp.lt.s32.totalorder %s4004_s26, %s3625_s8 }
 0x23c   : > { %p2966_p5 = scmp.ne.s32.totalorder %s4004_s26, %s2965_s20  ;;  %p2971_p12 = scmp.lt.s32.totalorder %s3651_s21, %s2965_s20 }
 0x23e   : > { %p2972_p0 = por %p2971_p12, %p2970_p11 }
 0x240   : > { %p2973_p4 = pnand %p2972_p0, %p2966_p5 }
 0x242   : > { %2976 = shalt.err (!%p2973_p4)  }
 0x243   : > { %617 = dma.hbm_to_vmem [thread:$0]  %s605_s3, 16, %s4004_s26, [#allocation4] }
 0x244   : > { %s3418_s28 = smov [#allocation3 + $0x6]   ;;  %s635_s10 = sadd.s32 1, %s3999_s25 }
 0x245   : > { %s631_s12 = sshll.u32 %s3418_s28, 4  ;;  %s636_s11 = sld [smem:[#allocation6 + %s635_s10]]  ;;  %s632_s12 = int_to_ptr.vmem [resolvable:$true] %s631_s12 }
 0x246   : > { %s651_s14 = sadd.s32 2, %s3999_s25  ;;  %s1955_s5 = sshll.u32 %s620_s0, 4 }
 0x247   : > { %s3419_s16 = smov [#allocation3 + $0x86]   ;;  %s622_s27 = scalar_lea.hbm %s4472_s1, %s1955_s5 }
 0x248   : > { %s647_s2 = sshll.u32 %s3419_s16, 4  ;;  %s2977_s17 = scalar_lea.hbm %s622_s27, 16  ;;  %s4036_s2 = int_to_ptr.vmem [resolvable:$true] %s647_s2 }
 0x249   : > { %p2978_p8 = scmp.ne.s32.totalorder %s622_s27, %s2977_s17  ;;  %p2980_p6 = scmp.lt.s32.totalorder %s622_s27, %s4472_s1 }
 0x24a   : > { %p2981_p1 = scmp.lt.s32.totalorder %s3642_s22, %s2977_s17 }
 0x24c   : > { %p2982_p7 = por %p2981_p1, %p2980_p6 }
 0x24e   : > { %p2983_p9 = pnand %p2982_p7, %p2978_p8 }
 0x250   : > { %2986 = shalt.err (!%p2983_p9)  }
 0x251   : > { %s2987_s26 = scalar_lea.vmem %s632_s12, 16  ;;  %p2992_p3 = scmp.lt.s32.totalorder %s632_s12, %s3625_s8 }
 0x252   : > { %p2988_p10 = scmp.ne.s32.totalorder %s632_s12, %s2987_s26  ;;  %p2993_p5 = scmp.lt.s32.totalorder %s3651_s21, %s2987_s26 }
 0x254   : > { %p2994_p11 = por %p2993_p5, %p2992_p3 }
 0x256   : > { %p2995_p12 = pnand %p2994_p11, %p2988_p10 }
 0x258   : > { %2998 = shalt.err (!%p2995_p12)  }
 0x259   : > { %634 = dma.hbm_to_vmem [thread:$0]  %s622_s27, 16, %s632_s12, [#allocation4] }
 0x25a   : > { %s652_s0 = sld [smem:[#allocation6 + %s651_s14]]  ;;  %s1956_s3 = sshll.u32 %s636_s11, 4 }
 0x25b   : > { %s3420_s28 = smov [#allocation3 + $0x106]   ;;  %s638_s6 = scalar_lea.hbm %s4472_s1, %s1956_s3 }
 0x25c   : > { %s663_s10 = sshll.u32 %s3420_s28, 4  ;;  %s2999_s18 = scalar_lea.hbm %s638_s6, 16  ;;  %s4047_s10 = int_to_ptr.vmem [resolvable:$true] %s663_s10 }
 0x25d   : > { %p3000_p0 = scmp.ne.s32.totalorder %s638_s6, %s2999_s18  ;;  %p3002_p4 = scmp.lt.s32.totalorder %s638_s6, %s4472_s1 }
 0x25e   : > { %p3003_p8 = scmp.lt.s32.totalorder %s3642_s22, %s2999_s18 }
 0x260   : > { %p3004_p6 = por %p3003_p8, %p3002_p4 }
 0x262   : > { %p3005_p1 = pnand %p3004_p6, %p3000_p0 }
 0x264   : > { %3008 = shalt.err (!%p3005_p1)  }
 0x265   : > { %s3009_s12 = scalar_lea.vmem %s4036_s2, 16  ;;  %p3014_p9 = scmp.lt.s32.totalorder %s4036_s2, %s3625_s8 }
 0x266   : > { %p3010_p7 = scmp.ne.s32.totalorder %s4036_s2, %s3009_s12  ;;  %p3015_p10 = scmp.lt.s32.totalorder %s3651_s21, %s3009_s12 }
 0x268   : > { %p3016_p3 = por %p3015_p10, %p3014_p9 }
 0x26a   : > { %p3017_p5 = pnand %p3016_p3, %p3010_p7 }
 0x26c   : > { %3020 = shalt.err (!%p3017_p5)  }
 0x26d   : > { %650 = dma.hbm_to_vmem [thread:$0]  %s638_s6, 16, %s4036_s2, [#allocation4] }
 0x26e   : > { %s667_s11 = sadd.s32 3, %s3999_s25  ;;  %s3421_s27 = smov [#allocation3 + $0x186]  }
 0x26f   : > { %s4060_s14 = sld [smem:[#allocation6 + %s667_s11]]  ;;  %s679_s20 = sshll.u32 %s3421_s27, 4  ;;  %s4062_s20 = int_to_ptr.vmem [resolvable:$true] %s679_s20 }
 0x270   : > { %s1957_s26 = sshll.u32 %s652_s0, 4  ;;  %s4068_s16 = sadd.s32 28, %s3621_s30 }
 0x271   : > { %s654_s5 = scalar_lea.hbm %s4472_s1, %s1957_s26 }
 0x272   : > { %s3021_s18 = scalar_lea.hbm %s654_s5, 16  ;;  %p3024_p12 = scmp.lt.s32.totalorder %s654_s5, %s4472_s1 }
 0x273   : > { %p3022_p11 = scmp.ne.s32.totalorder %s654_s5, %s3021_s18  ;;  %p3025_p0 = scmp.lt.s32.totalorder %s3642_s22, %s3021_s18 }
 0x275   : > { %p3026_p4 = por %p3025_p0, %p3024_p12 }
 0x277   : > { %p3027_p8 = pnand %p3026_p4, %p3022_p11 }
 0x279   : > { %3030 = shalt.err (!%p3027_p8)  }
 0x27a   : > { %s3031_s25 = scalar_lea.vmem %s4047_s10, 16  ;;  %p3036_p1 = scmp.lt.s32.totalorder %s4047_s10, %s3625_s8 }
 0x27b   : > { %p3032_p6 = scmp.ne.s32.totalorder %s4047_s10, %s3031_s25  ;;  %p3037_p7 = scmp.lt.s32.totalorder %s3651_s21, %s3031_s25 }
 0x27d   : > { %p3038_p9 = por %p3037_p7, %p3036_p1 }
 0x27f   : > { %p3039_p10 = pnand %p3038_p9, %p3032_p6 }
 0x281   : > { %3042 = shalt.err (!%p3039_p10)  }
 0x282   : > { %666 = dma.hbm_to_vmem [thread:$0]  %s654_s5, 16, %s4047_s10, [#allocation4] }
 0x283   : > { %s685_s30 = sld [smem:[#allocation6 + %s4068_s16]]  ;;  %s3422_s2 = smov [#allocation3 + $0x7]  }
 0x284   : > { %s696_s0 = sshll.u32 %s3422_s2, 4  ;;  %s700_s6 = sadd.s32 1, %s4068_s16  ;;  %s4083_s0 = int_to_ptr.vmem [resolvable:$true] %s696_s0 }
 0x285   : > { %s1958_s12 = sshll.u32 %s4060_s14, 4  ;;  %s4088_s3 = sld [smem:[#allocation6 + %s700_s6]] }
 0x286   : > { %s670_s26 = scalar_lea.hbm %s4472_s1, %s1958_s12 }
 0x287   : > { %s3043_s28 = scalar_lea.hbm %s670_s26, 16  ;;  %p3046_p5 = scmp.lt.s32.totalorder %s670_s26, %s4472_s1 }
 0x288   : > { %p3044_p3 = scmp.ne.s32.totalorder %s670_s26, %s3043_s28  ;;  %p3047_p11 = scmp.lt.s32.totalorder %s3642_s22, %s3043_s28 }
 0x28a   : > { %p3048_p12 = por %p3047_p11, %p3046_p5 }
 0x28c   : > { %p3049_p0 = pnand %p3048_p12, %p3044_p3 }
 0x28e   : > { %3052 = shalt.err (!%p3049_p0)  }
 0x28f   : > { %s3053_s10 = scalar_lea.vmem %s4062_s20, 16  ;;  %p3058_p8 = scmp.lt.s32.totalorder %s4062_s20, %s3625_s8 }
 0x290   : > { %p3054_p4 = scmp.ne.s32.totalorder %s4062_s20, %s3053_s10  ;;  %p3059_p6 = scmp.lt.s32.totalorder %s3651_s21, %s3053_s10 }
 0x292   : > { %p3060_p1 = por %p3059_p6, %p3058_p8 }
 0x294   : > { %p3061_p7 = pnand %p3060_p1, %p3054_p4 }
 0x296   : > { %3064 = shalt.err (!%p3061_p7)  }
 0x297   : > { %682 = dma.hbm_to_vmem [thread:$0]  %s670_s26, 16, %s4062_s20, [#allocation4] }
 0x298   : > { %s716_s14 = sadd.s32 2, %s4068_s16  ;;  %s1960_s5 = sshll.u32 %s685_s30, 4 }
 0x299   : > { %s3423_s13 = smov [#allocation3 + $0x87]   ;;  %s687_s12 = scalar_lea.hbm %s4472_s1, %s1960_s5 }
 0x29a   : > { %s712_s25 = sshll.u32 %s3423_s13, 4  ;;  %s3065_s11 = scalar_lea.hbm %s687_s12, 16  ;;  %s4104_s25 = int_to_ptr.vmem [resolvable:$true] %s712_s25 }
 0x29b   : > { %p3066_p9 = scmp.ne.s32.totalorder %s687_s12, %s3065_s11  ;;  %p3068_p10 = scmp.lt.s32.totalorder %s687_s12, %s4472_s1 }
 0x29c   : > { %p3069_p3 = scmp.lt.s32.totalorder %s3642_s22, %s3065_s11 }
 0x29e   : > { %p3070_p5 = por %p3069_p3, %p3068_p10 }
 0x2a0   : > { %p3071_p11 = pnand %p3070_p5, %p3066_p9 }
 0x2a2   : > { %3074 = shalt.err (!%p3071_p11)  }
 0x2a3   : > { %s3075_s20 = scalar_lea.vmem %s4083_s0, 16  ;;  %p3080_p0 = scmp.lt.s32.totalorder %s4083_s0, %s3625_s8 }
 0x2a4   : > { %p3076_p12 = scmp.ne.s32.totalorder %s4083_s0, %s3075_s20  ;;  %p3081_p4 = scmp.lt.s32.totalorder %s3651_s21, %s3075_s20 }
 0x2a6   : > { %p3082_p8 = por %p3081_p4, %p3080_p0 }
 0x2a8   : > { %p3083_p6 = pnand %p3082_p8, %p3076_p12 }
 0x2aa   : > { %3086 = shalt.err (!%p3083_p6)  }
 0x2ab   : > { %699 = dma.hbm_to_vmem [thread:$0]  %s687_s12, 16, %s4083_s0, [#allocation4] }
 0x2ac   : > { %s1961_s30 = sshll.u32 %s4088_s3, 4  ;;  %s717_s26 = sld [smem:[#allocation6 + %s716_s14]] }
 0x2ad   : > { %s703_s10 = scalar_lea.hbm %s4472_s1, %s1961_s30 }
 0x2ae   : > { %s3087_s5 = scalar_lea.hbm %s703_s10, 16  ;;  %p3090_p7 = scmp.lt.s32.totalorder %s703_s10, %s4472_s1 }
 0x2af   : > { %p3088_p1 = scmp.ne.s32.totalorder %s703_s10, %s3087_s5  ;;  %p3091_p9 = scmp.lt.s32.totalorder %s3642_s22, %s3087_s5 }
 0x2b1   : > { %p3092_p10 = por %p3091_p9, %p3090_p7 }
 0x2b3   : > { %p3093_p3 = pnand %p3092_p10, %p3088_p1 }
 0x2b5   : > { %3096 = shalt.err (!%p3093_p3)  }
 0x2b6   : > { %s3097_s0 = scalar_lea.vmem %s4104_s25, 16  ;;  %p3102_p11 = scmp.lt.s32.totalorder %s4104_s25, %s3625_s8 }
 0x2b7   : > { %p3098_p5 = scmp.ne.s32.totalorder %s4104_s25, %s3097_s0  ;;  %p3103_p12 = scmp.lt.s32.totalorder %s3651_s21, %s3097_s0 }
 0x2b9   : > { %p3104_p0 = por %p3103_p12, %p3102_p11 }
 0x2bb   : > { %p3105_p4 = pnand %p3104_p0, %p3098_p5 }
 0x2bd   : > { %3108 = shalt.err (!%p3105_p4)  }
 0x2be   : > { %715 = dma.hbm_to_vmem [thread:$0]  %s703_s10, 16, %s4104_s25, [#allocation4] }
 0x2bf   : > { %s3424_s3 = smov [#allocation3 + $0x107]   ;;  %s732_s6 = sadd.s32 3, %s4068_s16 }
 0x2c0   : > { %s728_s14 = sshll.u32 %s3424_s3, 4  ;;  %s733_s12 = sld [smem:[#allocation6 + %s732_s6]]  ;;  %s729_s14 = int_to_ptr.vmem [resolvable:$true] %s728_s14 }
 0x2c1   : > { %s1962_s11 = sshll.u32 %s717_s26, 4  ;;  %s3425_s27 = smov [#allocation3 + $0x187]  }
 0x2c2   : > { %s744_s28 = sshll.u32 %s3425_s27, 4  ;;  %s719_s18 = scalar_lea.hbm %s4472_s1, %s1962_s11  ;;  %s745_s28 = int_to_ptr.vmem [resolvable:$true] %s744_s28 }
 0x2c3   : > { %s3109_s17 = scalar_lea.hbm %s719_s18, 16  ;;  %p3112_p6 = scmp.lt.s32.totalorder %s719_s18, %s4472_s1 }
 0x2c4   : > { %p3110_p8 = scmp.ne.s32.totalorder %s719_s18, %s3109_s17  ;;  %p3113_p1 = scmp.lt.s32.totalorder %s3642_s22, %s3109_s17 }
 0x2c6   : > { %p3114_p7 = por %p3113_p1, %p3112_p6 }
 0x2c8   : > { %p3115_p9 = pnand %p3114_p7, %p3110_p8 }
 0x2ca   : > { %3118 = shalt.err (!%p3115_p9)  }
 0x2cb   : > { %s3119_s16 = scalar_lea.vmem %s729_s14, 16  ;;  %p3124_p3 = scmp.lt.s32.totalorder %s729_s14, %s3625_s8 }
 0x2cc   : > { %p3120_p10 = scmp.ne.s32.totalorder %s729_s14, %s3119_s16  ;;  %p3125_p5 = scmp.lt.s32.totalorder %s3651_s21, %s3119_s16 }
 0x2ce   : > { %p3126_p11 = por %p3125_p5, %p3124_p3 }
 0x2d0   : > { %p3127_p12 = pnand %p3126_p11, %p3120_p10 }
 0x2d2   : > { %3130 = shalt.err (!%p3127_p12)  }
 0x2d3   : > { %731 = dma.hbm_to_vmem [thread:$0]  %s719_s18, 16, %s729_s14, [#allocation4] }
 0x2d4   : > { %s1963_s25 = sshll.u32 %s733_s12, 4 }
 0x2d5   : > { %s735_s2 = scalar_lea.hbm %s4472_s1, %s1963_s25 }
 0x2d6   : > { %s3131_s0 = scalar_lea.hbm %s735_s2, 16  ;;  %p3134_p4 = scmp.lt.s32.totalorder %s735_s2, %s4472_s1 }
 0x2d7   : > { %p3132_p0 = scmp.ne.s32.totalorder %s735_s2, %s3131_s0  ;;  %p3135_p8 = scmp.lt.s32.totalorder %s3642_s22, %s3131_s0 }
 0x2d9   : > { %p3136_p6 = por %p3135_p8, %p3134_p4 }
 0x2db   : > { %p3137_p1 = pnand %p3136_p6, %p3132_p0 }
 0x2dd   : > { %3140 = shalt.err (!%p3137_p1)  }
 0x2de   : > { %s3141_s11 = scalar_lea.vmem %s745_s28, 16  ;;  %p3146_p9 = scmp.lt.s32.totalorder %s745_s28, %s3625_s8 }
 0x2df   : > { %p3142_p7 = scmp.ne.s32.totalorder %s745_s28, %s3141_s11  ;;  %p3147_p10 = scmp.lt.s32.totalorder %s3651_s21, %s3141_s11 }
 0x2e1   : > { %p3148_p3 = por %p3147_p10, %p3146_p9 }
 0x2e3   : > { %p3149_p5 = pnand %p3148_p3, %p3142_p7 }
 0x2e5   : > { %3152 = shalt.err (!%p3149_p5)  }
 0x2e6   : > { %747 = dma.hbm_to_vmem [thread:$0]  %s735_s2, 16, %s745_s28, [#allocation4] }
 0x2e7   : > { %s4149_s14 = smov 0  }
 0x2e8 LB: >> { %s754_s12 = sadd.s32 8, %s3383_s14  ;;  %s4512_s27 = sshll.u32 %s3367_s24, 7  ;;  %s3383_s14 = sphi %s4149_s14, %s753_s14  }
 0x2e9   : >> { %s755_s20 = sadd.s32 %s4512_s27, %s754_s12  ;;  %s4158_s30 = scalar_lea.vmem [#allocation3], %s3383_s14 }
 0x2ea   : >> { %s1830_s18 = scalar_lea.vmem %s4158_s30, 8 [#allocation3]  ;;  %s1964_s28 = sshll.u32 %s755_s20, 2 }
 0x2eb   : >> { %s768_s17 = sshll.u32 %s1830_s18, 4  ;;  %s757_s5 = sld [smem:[#allocation6 + %s1964_s28]]  ;;  %s4161_s17 = int_to_ptr.vmem [resolvable:$true] %s768_s17 }
 0x2ec   : >> { %s772_s13 = sadd.s32 1, %s1964_s28  ;;  %s1834_s16 = scalar_lea.vmem %s4158_s30, 136 [#allocation3] }
 0x2ed   : >> { %s4164_s25 = sld [smem:[#allocation6 + %s772_s13]]  ;;  %s785_s26 = sshll.u32 %s1834_s16, 4  ;;  %s4166_s26 = int_to_ptr.vmem [resolvable:$true] %s785_s26 }
 0x2ee   : >> { %s789_s10 = sadd.s32 2, %s1964_s28  ;;  %s1838_s0 = scalar_lea.vmem %s4158_s30, 264 [#allocation3] }
 0x2ef   : >> { %s4168_s2 = sld [smem:[#allocation6 + %s789_s10]]  ;;  %s802_s3 = sshll.u32 %s1838_s0, 4  ;;  %s4171_s3 = int_to_ptr.vmem [resolvable:$true] %s802_s3 }
 0x2f0   : >> { %s806_s6 = sadd.s32 3, %s1964_s28 }
 0x2f1   : >> { %s1965_s11 = sshll.u32 %s757_s5, 4  ;;  %s4176_s18 = sld [smem:[#allocation6 + %s806_s6]] }
 0x2f2   : >> { %s759_s20 = scalar_lea.hbm %s4472_s1, %s1965_s11 }
 0x2f3   : >> { %s3153_s13 = scalar_lea.hbm %s759_s20, 16  ;;  %p3156_p12 = scmp.lt.s32.totalorder %s759_s20, %s4472_s1 }
 0x2f4   : >> { %p3154_p11 = scmp.ne.s32.totalorder %s759_s20, %s3153_s13  ;;  %p3157_p0 = scmp.lt.s32.totalorder %s3642_s22, %s3153_s13 }
 0x2f6   : >> { %p3158_p4 = por %p3157_p0, %p3156_p12 }
 0x2f8   : >> { %p3159_p8 = pnand %p3158_p4, %p3154_p11 }
 0x2fa   : >> { %3162 = shalt.err (!%p3159_p8)  }
 0x2fb   : >> { %s3163_s28 = scalar_lea.vmem %s4161_s17, 16  ;;  %p3168_p1 = scmp.lt.s32.totalorder %s4161_s17, %s3625_s8 }
 0x2fc   : >> { %p3164_p6 = scmp.ne.s32.totalorder %s4161_s17, %s3163_s28  ;;  %p3169_p7 = scmp.lt.s32.totalorder %s3651_s21, %s3163_s28 }
 0x2fe   : >> { %p3170_p9 = por %p3169_p7, %p3168_p1 }
 0x300   : >> { %p3171_p10 = pnand %p3170_p9, %p3164_p6 }
 0x302   : >> { %3174 = shalt.err (!%p3171_p10)  }
 0x303   : >> { %771 = dma.hbm_to_vmem [thread:$0]  %s759_s20, 16, %s4161_s17, [#allocation4] }
 0x304   : >> { %s1966_s4 = sshll.u32 %s4164_s25, 4  ;;  %s1842_s5 = scalar_lea.vmem %s4158_s30, 392 [#allocation3] }
 0x305   : >> { %s775_s6 = scalar_lea.hbm %s4472_s1, %s1966_s4  ;;  %s1967_s11 = sshll.u32 %s4168_s2, 4 }
 0x306   : >> { %s3175_s12 = scalar_lea.hbm %s775_s6, 16  ;;  %p3178_p5 = scmp.lt.s32.totalorder %s775_s6, %s4472_s1 }
 0x307   : >> { %p3176_p3 = scmp.ne.s32.totalorder %s775_s6, %s3175_s12  ;;  %p3179_p11 = scmp.lt.s32.totalorder %s3642_s22, %s3175_s12 }
 0x309   : >> { %p3180_p12 = por %p3179_p11, %p3178_p5 }
 0x30b   : >> { %p3181_p0 = pnand %p3180_p12, %p3176_p3 }
 0x30d   : >> { %3184 = shalt.err (!%p3181_p0)  }
 0x30e   : >> { %s3185_s30 = scalar_lea.vmem %s4166_s26, 16  ;;  %p3190_p8 = scmp.lt.s32.totalorder %s4166_s26, %s3625_s8 }
 0x30f   : >> { %p3186_p4 = scmp.ne.s32.totalorder %s4166_s26, %s3185_s30  ;;  %p3191_p6 = scmp.lt.s32.totalorder %s3651_s21, %s3185_s30 }
 0x311   : >> { %p3192_p1 = por %p3191_p6, %p3190_p8 }
 0x313   : >> { %p3193_p7 = pnand %p3192_p1, %p3186_p4 }
 0x315   : >> { %3196 = shalt.err (!%p3193_p7)  }
 0x316   : >> { %788 = dma.hbm_to_vmem [thread:$0]  %s775_s6, 16, %s4166_s26, [#allocation4] }
 0x317   : >> { %s792_s2 = scalar_lea.hbm %s4472_s1, %s1967_s11  ;;  %s819_s20 = sshll.u32 %s1842_s5, 4  ;;  %s820_s20 = int_to_ptr.vmem [resolvable:$true] %s819_s20 }
 0x318   : >> { %s3197_s16 = scalar_lea.hbm %s792_s2, 16  ;;  %p3200_p10 = scmp.lt.s32.totalorder %s792_s2, %s4472_s1 }
 0x319   : >> { %p3198_p9 = scmp.ne.s32.totalorder %s792_s2, %s3197_s16  ;;  %p3201_p3 = scmp.lt.s32.totalorder %s3642_s22, %s3197_s16 }
 0x31b   : >> { %p3202_p5 = por %p3201_p3, %p3200_p10 }
 0x31d   : >> { %p3203_p11 = pnand %p3202_p5, %p3198_p9 }
 0x31f   : >> { %3206 = shalt.err (!%p3203_p11)  }
 0x320   : >> { %s3207_s26 = scalar_lea.vmem %s4171_s3, 16  ;;  %p3212_p0 = scmp.lt.s32.totalorder %s4171_s3, %s3625_s8 }
 0x321   : >> { %p3208_p12 = scmp.ne.s32.totalorder %s4171_s3, %s3207_s26  ;;  %p3213_p4 = scmp.lt.s32.totalorder %s3651_s21, %s3207_s26 }
 0x323   : >> { %p3214_p8 = por %p3213_p4, %p3212_p0 }
 0x325   : >> { %p3215_p6 = pnand %p3214_p8, %p3208_p12 }
 0x327   : >> { %3218 = shalt.err (!%p3215_p6)  }
 0x328   : >> { %805 = dma.hbm_to_vmem [thread:$0]  %s792_s2, 16, %s4171_s3, [#allocation4] }
 0x329   : >> { %s1968_s5 = sshll.u32 %s4176_s18, 4 }
 0x32a   : >> { %s809_s6 = scalar_lea.hbm %s4472_s1, %s1968_s5 }
 0x32b   : >> { %s3219_s11 = scalar_lea.hbm %s809_s6, 16  ;;  %p3222_p7 = scmp.lt.s32.totalorder %s809_s6, %s4472_s1 }
 0x32c   : >> { %p3220_p1 = scmp.ne.s32.totalorder %s809_s6, %s3219_s11  ;;  %p3223_p9 = scmp.lt.s32.totalorder %s3642_s22, %s3219_s11 }
 0x32e   : >> { %p3224_p10 = por %p3223_p9, %p3222_p7 }
 0x330   : >> { %p3225_p3 = pnand %p3224_p10, %p3220_p1 }
 0x332   : >> { %3228 = shalt.err (!%p3225_p3)  }
 0x333   : >> { %s3229_s13 = scalar_lea.vmem %s820_s20, 16  ;;  %p3234_p11 = scmp.lt.s32.totalorder %s820_s20, %s3625_s8 }
 0x334   : >> { %p3230_p5 = scmp.ne.s32.totalorder %s820_s20, %s3229_s13  ;;  %p3235_p12 = scmp.lt.s32.totalorder %s3651_s21, %s3229_s13 }
 0x336   : >> { %p3236_p0 = por %p3235_p12, %p3234_p11 }
 0x338   : >> { %p3237_p4 = pnand %p3236_p0, %p3230_p5 }
 0x33a   : >> { %3240 = shalt.err (!%p3237_p4)  }
 0x33b   : >> { %822 = dma.hbm_to_vmem [thread:$0]  %s809_s6, 16, %s820_s20, [#allocation4] }
 0x33c   : >> { %3329 = dma.done.wait [#allocation4], 64 }
 0x33d   : >> { %3330 = vsyncadd [#allocation4], 4294967232  ;;  %s753_s14 = sadd.s32 1, %s3383_s14  }
 0x33e   : >> { %p750_p8 = scmp.ge.s32.totalorder %s753_s14, 120  }
 0x33f   : > { %s3385_s3 = smov (%p750_p8), 0  }
 0x340   : > { %752 = sbr.rel (!%p750_p8) target bundleno = 744 (0x2e8), region = 319 }
 0x345 LB: >> { %3331 = dma.done.wait [#allocation4], 64  ;;  %s3387_s3 = sphi %s3385_s3, %s836_s3  }
 0x346   : >> { %3332 = vsyncadd [#allocation4], 4294967232  ;;  %s836_s3 = sadd.s32 1, %s3387_s3  }
 0x347   : >> { %p833_p6 = scmp.ge.s32.totalorder %s836_s3, 8  }
 0x348   : > { %v845_v0 = vld [vmem:[#allocation3] sm:$0xff] (%p833_p6)  ;;  %v846_v1 = vld [vmem:[#allocation3 + $0x8] sm:$0xff] (%p833_p6)  ;;  %v847_v10 = vld [vmem:[#allocation3 + $0x10] sm:$0xff] (%p833_p6) }
 0x349   : > { %835 = sbr.rel (!%p833_p6) target bundleno = 837 (0x345), region = 330  ;;  %v861_v2 = vld [vmem:[#allocation3 + $0x80] sm:$0xff] (%p833_p6)  ;;  %v862_v3 = vld [vmem:[#allocation3 + $0x88] sm:$0xff] (%p833_p6)  ;;  %v848_v12 = vld [vmem:[#allocation3 + $0x18] sm:$0xff] (%p833_p6) }
 0x34a   : > { %v877_v4 = vadd.f32 (%p833_p6), %v861_v2, %v845_v0  ;;  %v893_v5 = vld [vmem:[#allocation3 + $0x100] sm:$0xff] (%p833_p6)  ;;  %v894_v6 = vld [vmem:[#allocation3 + $0x108] sm:$0xff] (%p833_p6)  ;;  %v878_v7 = vadd.f32 (%p833_p6), %v862_v3, %v846_v1  ;;  %v863_v13 = vld [vmem:[#allocation3 + $0x90] sm:$0xff] (%p833_p6) }
 0x34b   : > { %v925_v8 = vld [vmem:[#allocation3 + $0x180] sm:$0xff] (%p833_p6)  ;;  %v926_v9 = vld [vmem:[#allocation3 + $0x188] sm:$0xff] (%p833_p6)  ;;  %v864_v14 = vld [vmem:[#allocation3 + $0x98] sm:$0xff] (%p833_p6)  ;;  %v879_v16 = vadd.f32 (%p833_p6), %v863_v13, %v847_v10 }
 0x34c   : > { %v909_v11 = vadd.f32 (%p833_p6), %v893_v5, %v877_v4  ;;  %v910_v15 = vadd.f32 (%p833_p6), %v894_v6, %v878_v7  ;;  %v880_v17 = vadd.f32 (%p833_p6), %v864_v14, %v848_v12  ;;  %v895_v18 = vld [vmem:[#allocation3 + $0x110] sm:$0xff] (%p833_p6)  ;;  %v896_v19 = vld [vmem:[#allocation3 + $0x118] sm:$0xff] (%p833_p6)  ;;  %v849_v23 = vld [vmem:[#allocation3 + $0x20] sm:$0xff] (%p833_p6) }
 0x34d   : > { %v927_v20 = vld [vmem:[#allocation3 + $0x190] sm:$0xff] (%p833_p6)  ;;  %v928_v22 = vld [vmem:[#allocation3 + $0x198] sm:$0xff] (%p833_p6)  ;;  %v850_v24 = vld [vmem:[#allocation3 + $0x28] sm:$0xff] (%p833_p6)  ;;  %v911_v26 = vadd.f32 (%p833_p6), %v895_v18, %v879_v16 }
 0x34e   : > { %v941_v21 = vadd.f32 %v925_v8, %v909_v11  ;;  %v942_v25 = vadd.f32 %v926_v9, %v910_v15  ;;  %v912_v27 = vadd.f32 %v896_v19, %v880_v17  ;;  %v865_v28 = vld [vmem:[#allocation3 + $0xa0] sm:$0xff]  ;;  %v866_v29 = vld [vmem:[#allocation3 + $0xa8] sm:$0xff]  ;;  %v851_v40 = vld [vmem:[#allocation3 + $0x30] sm:$0xff] }
 0x34f   : > { %v897_v30 = vld [vmem:[#allocation3 + $0x120] sm:$0xff]  ;;  %v881_v32 = vadd.f32 %v865_v28, %v849_v23  ;;  %v882_v33 = vadd.f32 %v866_v29, %v850_v24  ;;  %v898_v34 = vld [vmem:[#allocation3 + $0x128] sm:$0xff]  ;;  %v943_v38 = vadd.f32 %v927_v20, %v911_v26  ;;  %v852_v41 = vld [vmem:[#allocation3 + $0x38] sm:$0xff] }
 0x350   : > { %v957_v31 = vmul.f32 0.25, %v941_v21  ;;  %v929_v35 = vld [vmem:[#allocation3 + $0x1a0] sm:$0xff]  ;;  %v930_v36 = vld [vmem:[#allocation3 + $0x1a8] sm:$0xff]  ;;  %v958_v37 = vmul.f32 0.25, %v942_v25  ;;  %v944_v39 = vadd.f32 %v928_v22, %v912_v27  ;;  %v867_v42 = vld [vmem:[#allocation3 + $0xb0] sm:$0xff] }
 0x351   : > { %v913_v43 = vadd.f32 %v897_v30, %v881_v32  ;;  %v914_v44 = vadd.f32 %v898_v34, %v882_v33  ;;  %v868_v45 = vld [vmem:[#allocation3 + $0xb8] sm:$0xff]  ;;  %v883_v46 = vadd.f32 %v867_v42, %v851_v40  ;;  %v899_v47 = vld [vmem:[#allocation3 + $0x130] sm:$0xff]  ;;  %v959_v50 = vmul.f32 0.25, %v943_v38  ;;  %v853_v55 = vld [vmem:[#allocation3 + $0x40] sm:$0xff] }
 0x352   : > { %v900_v48 = vld [vmem:[#allocation3 + $0x138] sm:$0xff]  ;;  %v2069_v49 = vpack.c.bf16 %v958_v37, %v957_v31  ;;  %v960_v51 = vmul.f32 0.25, %v944_v39  ;;  %v884_v52 = vadd.f32 %v868_v45, %v852_v41  ;;  %v931_v53 = vld [vmem:[#allocation3 + $0x1b0] sm:$0xff]  ;;  %v854_v59 = vld [vmem:[#allocation3 + $0x48] sm:$0xff] }
 0x353   : > { %v932_v54 = vld [vmem:[#allocation3 + $0x1b8] sm:$0xff]  ;;  %v945_v56 = vadd.f32 %v929_v35, %v913_v43  ;;  %v946_v57 = vadd.f32 %v930_v36, %v914_v44  ;;  %v915_v58 = vadd.f32 %v899_v47, %v883_v46  ;;  %v869_v60 = vld [vmem:[#allocation3 + $0xc0] sm:$0xff]  ;;  %v870_v61 = vld [vmem:[#allocation3 + $0xc8] sm:$0xff] }
 0x354   : > { %2070 = vst [vmem:[#allocation2] sm:$0xff] %v2069_v49   ;;  %v2074_v62 = vpack.c.bf16 %v960_v51, %v959_v50  ;;  %v916_v63 = vadd.f32 %v900_v48, %v884_v52  ;;  %v885_v0 = vadd.f32 %v869_v60, %v853_v55  ;;  %v886_v1 = vadd.f32 %v870_v61, %v854_v59  ;;  %v901_v2 = vld [vmem:[#allocation3 + $0x140] sm:$0xff]  ;;  %v902_v3 = vld [vmem:[#allocation3 + $0x148] sm:$0xff]  ;;  %v855_v9 = vld [vmem:[#allocation3 + $0x50] sm:$0xff] }
 0x355   : > { %v933_v4 = vld [vmem:[#allocation3 + $0x1c0] sm:$0xff]  ;;  %v961_v5 = vmul.f32 0.25, %v945_v56  ;;  %v962_v6 = vmul.f32 0.25, %v946_v57  ;;  %v947_v7 = vadd.f32 %v931_v53, %v915_v58  ;;  %v934_v8 = vld [vmem:[#allocation3 + $0x1c8] sm:$0xff]  ;;  %v856_v10 = vld [vmem:[#allocation3 + $0x58] sm:$0xff] }
 0x356   : > { %2113 = vst [vmem:[#allocation2 + $0x8] sm:$0xff] %v2074_v62   ;;  %v948_v11 = vadd.f32 %v932_v54, %v916_v63  ;;  %v917_v12 = vadd.f32 %v901_v2, %v885_v0  ;;  %v918_v13 = vadd.f32 %v902_v3, %v886_v1  ;;  %v871_v14 = vld [vmem:[#allocation3 + $0xd0] sm:$0xff]  ;;  %v872_v15 = vld [vmem:[#allocation3 + $0xd8] sm:$0xff]  ;;  %v857_v27 = vld [vmem:[#allocation3 + $0x60] sm:$0xff] }
 0x357   : > { %v903_v16 = vld [vmem:[#allocation3 + $0x150] sm:$0xff]  ;;  %v2079_v17 = vpack.c.bf16 %v962_v6, %v961_v5  ;;  %v963_v18 = vmul.f32 0.25, %v947_v7  ;;  %v887_v19 = vadd.f32 %v871_v14, %v855_v9  ;;  %v888_v20 = vadd.f32 %v872_v15, %v856_v10  ;;  %v904_v21 = vld [vmem:[#allocation3 + $0x158] sm:$0xff]  ;;  %v858_v28 = vld [vmem:[#allocation3 + $0x68] sm:$0xff] }
 0x358   : > { %v935_v22 = vld [vmem:[#allocation3 + $0x1d0] sm:$0xff]  ;;  %v936_v23 = vld [vmem:[#allocation3 + $0x1d8] sm:$0xff]  ;;  %v964_v24 = vmul.f32 0.25, %v948_v11  ;;  %v949_v25 = vadd.f32 %v933_v4, %v917_v12  ;;  %v950_v26 = vadd.f32 %v934_v8, %v918_v13  ;;  %v873_v29 = vld [vmem:[#allocation3 + $0xe0] sm:$0xff] }
 0x359   : > { %2114 = vst [vmem:[#allocation2 + $0x10] sm:$0xff] %v2079_v17   ;;  %v919_v30 = vadd.f32 %v903_v16, %v887_v19  ;;  %v920_v31 = vadd.f32 %v904_v21, %v888_v20  ;;  %v874_v32 = vld [vmem:[#allocation3 + $0xe8] sm:$0xff]  ;;  %v889_v33 = vadd.f32 %v873_v29, %v857_v27  ;;  %v905_v34 = vld [vmem:[#allocation3 + $0x160] sm:$0xff]  ;;  %v859_v42 = vld [vmem:[#allocation3 + $0x70] sm:$0xff] }
 0x35a   : > { %v906_v35 = vld [vmem:[#allocation3 + $0x168] sm:$0xff]  ;;  %v2084_v36 = vpack.c.bf16 %v964_v24, %v963_v18  ;;  %v965_v37 = vmul.f32 0.25, %v949_v25  ;;  %v966_v38 = vmul.f32 0.25, %v950_v26  ;;  %v890_v39 = vadd.f32 %v874_v32, %v858_v28  ;;  %v937_v40 = vld [vmem:[#allocation3 + $0x1e0] sm:$0xff]  ;;  %v860_v46 = vld [vmem:[#allocation3 + $0x78] sm:$0xff] }
 0x35b   : > { %v938_v41 = vld [vmem:[#allocation3 + $0x1e8] sm:$0xff]  ;;  %v951_v43 = vadd.f32 %v935_v22, %v919_v30  ;;  %v952_v44 = vadd.f32 %v936_v23, %v920_v31  ;;  %v921_v45 = vadd.f32 %v905_v34, %v889_v33  ;;  %v875_v47 = vld [vmem:[#allocation3 + $0xf0] sm:$0xff]  ;;  %v876_v48 = vld [vmem:[#allocation3 + $0xf8] sm:$0xff] }
 0x35c   : > { %2115 = vst [vmem:[#allocation2 + $0x18] sm:$0xff] %v2084_v36   ;;  %v2089_v49 = vpack.c.bf16 %v966_v38, %v965_v37  ;;  %v922_v50 = vadd.f32 %v906_v35, %v890_v39  ;;  %v891_v51 = vadd.f32 %v875_v47, %v859_v42  ;;  %v892_v52 = vadd.f32 %v876_v48, %v860_v46  ;;  %v907_v53 = vld [vmem:[#allocation3 + $0x170] sm:$0xff]  ;;  %v908_v54 = vld [vmem:[#allocation3 + $0x178] sm:$0xff] }
 0x35d   : > { %v967_v55 = vmul.f32 0.25, %v951_v43  ;;  %v968_v56 = vmul.f32 0.25, %v952_v44  ;;  %v953_v57 = vadd.f32 %v937_v40, %v921_v45  ;;  %v939_v58 = vld [vmem:[#allocation3 + $0x1f0] sm:$0xff]  ;;  %v940_v59 = vld [vmem:[#allocation3 + $0x1f8] sm:$0xff] }
 0x35e   : > { %2116 = vst [vmem:[#allocation2 + $0x20] sm:$0xff] %v2089_v49   ;;  %v954_v60 = vadd.f32 %v938_v41, %v922_v50  ;;  %v923_v61 = vadd.f32 %v907_v53, %v891_v51  ;;  %v924_v62 = vadd.f32 %v908_v54, %v892_v52 }
 0x35f   : > { %v2094_v63 = vpack.c.bf16 %v968_v56, %v967_v55  ;;  %v969_v0 = vmul.f32 0.25, %v953_v57 }
 0x360   : > { %v970_v1 = vmul.f32 0.25, %v954_v60  ;;  %v955_v2 = vadd.f32 %v939_v58, %v923_v61  ;;  %v956_v3 = vadd.f32 %v940_v59, %v924_v62 }
 0x361   : > { %2117 = vst [vmem:[#allocation2 + $0x28] sm:$0xff] %v2094_v63  }
 0x362   : > { %v2099_v4 = vpack.c.bf16 %v970_v1, %v969_v0  ;;  %v971_v5 = vmul.f32 0.25, %v955_v2  ;;  %v972_v6 = vmul.f32 0.25, %v956_v3 }
 0x364   : > { %2118 = vst [vmem:[#allocation2 + $0x30] sm:$0xff] %v2099_v4   ;;  %v2104_v7 = vpack.c.bf16 %v972_v6, %v971_v5 }
 0x366   : > { %2119 = vst [vmem:[#allocation2 + $0x38] sm:$0xff] %v2104_v7  }
 0x367 PF: > { %v2345_v8 = vld [vmem:[%s3601_s7 + $0x78] sm:$0xff]   ;;  %v2349_v12 = vld [vmem:[%s3601_s7 + $0x70] sm:$0xff]   ;;  %v2353_v16 = vld [vmem:[%s3601_s7 + $0x68] sm:$0xff]   ;;  %v1135_v48 = vlaneseq  ;;  %s2027_s22 = sshll.u32 %s3363_s23, 2  ;;  %s4513_s14 = sld [smem:[#allocation107_spill]] }
 0x368   : > { %v2346_v9 = vld [vmem:[%s3601_s7 + $0xf8] sm:$0xff]   ;;  %2120 = vmatprep.subr.bf16.mxu0 %v2345_v8  ;;  %v2350_v13 = vld [vmem:[%s3601_s7 + $0xf0] sm:$0xff]   ;;  %v2354_v17 = vld [vmem:[%s3601_s7 + $0xe8] sm:$0xff]   ;;  %s4514_s30 = sand.u32 1, %s3343_s19   ;;  %s3426_s2 = smov [#allocation12]  }
 0x369   : > { %v2347_v10 = vld [vmem:[%s3601_s7 + $0x38] sm:$0xff]   ;;  %2152 = vmatprep.subr.bf16.mxu1 %v2346_v9  ;;  %v2351_v14 = vld [vmem:[%s3601_s7 + $0x30] sm:$0xff]   ;;  %v2355_v18 = vld [vmem:[%s3601_s7 + $0x28] sm:$0xff]   ;;  %v1136_v49 = vshrl.u32 %v1135_v48, 7  ;;  %s4411_s17 = scalar_lea.sflag [#allocation9], %s4514_s30  ;;  %s3245_s20 = sshll.u32 %s3426_s2, 4  ;;  %s3246_s20 = int_to_ptr.vmem [resolvable:$false] %s3245_s20 }
 0x36a   : > { %v2348_v11 = vld [vmem:[%s3601_s7 + $0xb8] sm:$0xff]   ;;  %2121 = vmatpush3.bf16.xpose.msra.mxu0 %v2347_v10  ;;  %v2352_v15 = vld [vmem:[%s3601_s7 + $0xb0] sm:$0xff]   ;;  %v2356_v19 = vld [vmem:[%s3601_s7 + $0xa8] sm:$0xff]   ;;  %s3247_s16 = scalar_lea.vmem %s3246_s20, 16384 }
 0x36b   : > { %2153 = vmatpush3.bf16.xpose.msra.mxu1 %v2348_v11  ;;  %2122 = vmatprep.subr.bf16.mxu0 %v2349_v12  ;;  %v2357_v20 = vld [vmem:[%s3601_s7 + $0x60] sm:$0xff]   ;;  %v2361_v24 = vld [vmem:[%s3601_s7 + $0x58] sm:$0xff]   ;;  %v2365_v29 = vld [vmem:[%s3601_s7 + $0x50] sm:$0xff]   ;;  %v1137_v50 = vsub.s32 0, %v1136_v49  ;;  %v1145_v52 = vsub.s32 2, %v1136_v49  ;;  %v1141_v53 = vsub.s32 1, %v1136_v49 }
 0x36c   : > { %2154 = vmatprep.subr.bf16.mxu1 %v2350_v13  ;;  %v2358_v21 = vld [vmem:[%s3601_s7 + $0xe0] sm:$0xff]   ;;  %v2362_v25 = vld [vmem:[%s3601_s7 + $0xd8] sm:$0xff]   ;;  %v2366_v30 = vld [vmem:[%s3601_s7 + $0xd0] sm:$0xff]   ;;  %v1149_v54 = vsub.s32 3, %v1136_v49 }
 0x36d   : > { %v2359_v22 = vld [vmem:[%s3601_s7 + $0x20] sm:$0xff]   ;;  %v2363_v26 = vld [vmem:[%s3601_s7 + $0x18] sm:$0xff]   ;;  %v2367_v31 = vld [vmem:[%s3601_s7 + $0x10] sm:$0xff]  }
 0x36e   : > { %v2360_v23 = vld [vmem:[%s3601_s7 + $0xa0] sm:$0xff]   ;;  %v2364_v27 = vld [vmem:[%s3601_s7 + $0x98] sm:$0xff]   ;;  %v2368_v32 = vld [vmem:[%s3601_s7 + $0x90] sm:$0xff]  }
 0x36f   : > { %v2377_v28 = vld [vmem:[#allocation2] sm:$0xff]   ;;  %v2369_v33 = vld [vmem:[%s3601_s7 + $0x48] sm:$0xff]   ;;  %v2379_v42 = vld [vmem:[#allocation2 + $0x10] sm:$0xff]  }
 0x370   : > { %2136 = vmatprep.mubr.bf16.mxu0 %v2377_v28  ;;  %2168 = vmatprep.mubr.bf16.mxu1 %v2377_v28  ;;  %v2370_v34 = vld [vmem:[%s3601_s7 + $0xc8] sm:$0xff]   ;;  %v2373_v37 = vld [vmem:[%s3601_s7 + $0x40] sm:$0xff]   ;;  %v2380_v43 = vld [vmem:[#allocation2 + $0x18] sm:$0xff]  }
 0x371   : > { %v2371_v35 = vld [vmem:[%s3601_s7 + $0x8] sm:$0xff]   ;;  %v2374_v38 = vld [vmem:[%s3601_s7 + $0xc0] sm:$0xff]   ;;  %v2383_v46 = vld [vmem:[#allocation2 + $0x30] sm:$0xff]  }
 0x372   : > { %2123 = vmatpush3.bf16.xpose.msra.mxu0 %v2351_v14  ;;  %v2372_v36 = vld [vmem:[%s3601_s7 + $0x88] sm:$0xff]   ;;  %v2375_v39 = vld [vmem:[%s3601_s7] sm:$0xff]   ;;  %v2384_v47 = vld [vmem:[#allocation2 + $0x38] sm:$0xff]  }
 0x373   : > { %2155 = vmatpush3.bf16.xpose.msra.mxu1 %v2352_v15  ;;  %2124 = vmatprep.subr.bf16.mxu0 %v2353_v16  ;;  %v2376_v40 = vld [vmem:[%s3601_s7 + $0x80] sm:$0xff]   ;;  %v2378_v41 = vld [vmem:[#allocation2 + $0x8] sm:$0xff]   ;;  %s2065_s7 = sshll.u32 %s3367_s24, 7  ;;  %s1702_s24 = sshll.u32 %s3616_s9, 4  ;;  %s4403_s24 = int_to_ptr.vmem [resolvable:$true] %s1702_s24 }
 0x374   : > { %2156 = vmatprep.subr.bf16.mxu1 %v2354_v17  ;;  %v2381_v44 = vld [vmem:[#allocation2 + $0x20] sm:$0xff]   ;;  %v2382_v45 = vld [vmem:[#allocation2 + $0x28] sm:$0xff]   ;;  %s3241_s25 = scalar_lea.vmem %s4403_s24, 8192  ;;  %p3248_p10 = scmp.lt.s32.totalorder %s4403_s24, %s3246_s20 }
 0x375   : > { %v1133_v51 = vld [vmem:[%s3607_s29] sm:$0xf]  ;;  %s1699_s29 = sadd.s32 %s2065_s7, %s2027_s22  ;;  %p3242_p1 = scmp.ne.s32.totalorder %s4403_s24, %s3241_s25 }
 0x376   : > { %v4263_v55 = vrot.slane %v1133_v51, %v1137_v50  ;;  %v4265_v56 = vrot.slane %v1133_v51, %v1145_v52  ;;  %v4267_v57 = vrot.slane %v1133_v51, %v1141_v53  ;;  %v4269_v59 = vrot.slane %v1133_v51, %v1149_v54  ;;  %s2029_s23 = sshll.u32 %s1699_s29, 7  ;;  %p3249_p3 = scmp.lt.s32.totalorder %s3247_s16, %s3241_s25 }
 0x377   : > { %s4399_s18 = scalar_lea.hbm %s4513_s14, %s2029_s23  ;;  %p3243_p7 = pnand %p3242_p1, %p3548_p13 }
 0x378   : > { %p3250_p5 = por %p3249_p3, %p3248_p10 }
 0x379   : > { %p3244_p9 = pneg %p3243_p7 }
 0x37a   : > { %2125 = vmatpush3.bf16.xpose.msra.mxu0 %v2355_v18 }
 0x37b   : > { %2157 = vmatpush3.bf16.xpose.msra.mxu1 %v2356_v19  ;;  %2126 = vmatprep.subr.bf16.mxu0 %v2357_v20  ;;  %p3251_p11 = pnand %p3250_p5, %p3244_p9 }
 0x37c   : > { %2158 = vmatprep.subr.bf16.mxu1 %v2358_v21 }
 0x382   : > { %2127 = vmatpush3.bf16.xpose.msra.mxu0 %v2359_v22 }
 0x383   : > { %2159 = vmatpush3.bf16.xpose.msra.mxu1 %v2360_v23  ;;  %2128 = vmatprep.subr.bf16.mxu0 %v2361_v24 }
 0x384   : > { %2160 = vmatprep.subr.bf16.mxu1 %v2362_v25 }
 0x38a   : > { %2129 = vmatpush3.bf16.xpose.msra.mxu0 %v2363_v26 }
 0x38b   : > { %2161 = vmatpush3.bf16.xpose.msra.mxu1 %v2364_v27  ;;  %2130 = vmatprep.subr.bf16.mxu0 %v2365_v29 }
 0x38c   : > { %2162 = vmatprep.subr.bf16.mxu1 %v2366_v30 }
 0x392   : > { %2131 = vmatpush3.bf16.xpose.msra.mxu0 %v2367_v31 }
 0x393   : > { %2163 = vmatpush3.bf16.xpose.msra.mxu1 %v2368_v32  ;;  %2132 = vmatprep.subr.bf16.mxu0 %v2369_v33 }
 0x394   : > { %2164 = vmatprep.subr.bf16.mxu1 %v2370_v34 }
 0x39a   : > { %2133 = vmatpush3.bf16.xpose.msra.mxu0 %v2371_v35 }
 0x39b   : > { %2165 = vmatpush3.bf16.xpose.msra.mxu1 %v2372_v36  ;;  %2134 = vmatprep.subr.bf16.mxu0 %v2373_v37 }
 0x39c   : > { %2166 = vmatprep.subr.bf16.mxu1 %v2374_v38 }
 0x3a2   : > { %2135 = vmatpush3.bf16.xpose.msra.mxu0 %v2375_v39 }
 0x3a3   : > { %2167 = vmatpush3.bf16.xpose.msra.mxu1 %v2376_v40 }
 0x3a9   : > { %2137 = vmatmul.mubr.bf16.vlgmr.msra.gmra.mxu0 %v2377_v28 }
 0x3aa   : > { %2169 = vmatmul.mubr.bf16.vlgmr.msra.gmra.mxu1 %v2377_v28  ;;  %2138 = vmatprep.mubr.bf16.mxu0 %v2378_v41 }
 0x3ab   : > { %2170 = vmatprep.mubr.bf16.mxu1 %v2378_v41 }
 0x3b1   : > { %2139 = vmatmul.mubr.bf16.gmra.mxu0 %v2378_v41 }
 0x3b2   : > { %2171 = vmatmul.mubr.bf16.gmra.mxu1 %v2378_v41  ;;  %2140 = vmatprep.mubr.bf16.mxu0 %v2379_v42 }
 0x3b3   : > { %2172 = vmatprep.mubr.bf16.mxu1 %v2379_v42 }
 0x3b9   : > { %2141 = vmatmul.mubr.bf16.gmra.mxu0 %v2379_v42 }
 0x3ba   : > { %2173 = vmatmul.mubr.bf16.gmra.mxu1 %v2379_v42  ;;  %2142 = vmatprep.mubr.bf16.mxu0 %v2380_v43 }
 0x3bb   : > { %2174 = vmatprep.mubr.bf16.mxu1 %v2380_v43 }
 0x3c1   : > { %2143 = vmatmul.mubr.bf16.gmra.mxu0 %v2380_v43 }
 0x3c2   : > { %2175 = vmatmul.mubr.bf16.gmra.mxu1 %v2380_v43  ;;  %2144 = vmatprep.mubr.bf16.mxu0 %v2381_v44 }
 0x3c3   : > { %2176 = vmatprep.mubr.bf16.mxu1 %v2381_v44 }
 0x3c9   : > { %2145 = vmatmul.mubr.bf16.gmra.mxu0 %v2381_v44 }
 0x3ca   : > { %2177 = vmatmul.mubr.bf16.gmra.mxu1 %v2381_v44  ;;  %2146 = vmatprep.mubr.bf16.mxu0 %v2382_v45 }
 0x3cb   : > { %2178 = vmatprep.mubr.bf16.mxu1 %v2382_v45 }
 0x3d1   : > { %2147 = vmatmul.mubr.bf16.gmra.mxu0 %v2382_v45 }
 0x3d2   : > { %2179 = vmatmul.mubr.bf16.gmra.mxu1 %v2382_v45  ;;  %2148 = vmatprep.mubr.bf16.mxu0 %v2383_v46 }
 0x3d3   : > { %2180 = vmatprep.mubr.bf16.mxu1 %v2383_v46 }
 0x3d9   : > { %2149 = vmatmul.mubr.bf16.gmra.mxu0 %v2383_v46 }
 0x3da   : > { %2181 = vmatmul.mubr.bf16.gmra.mxu1 %v2383_v46  ;;  %2150 = vmatprep.mubr.bf16.mxu0 %v2384_v47 }
 0x3db   : > { %2182 = vmatprep.mubr.bf16.mxu1 %v2384_v47 }
 0x3e1   : > { %2151 = vmatmul.mubr.bf16.gmra.mxu0 %v2384_v47 }
 0x3e2   : > { %2183 = vmatmul.mubr.bf16.gmra.mxu1 %v2384_v47 }
 0x469   : > { %v1429_v58 = vpop.f32.mrf.mxu0 }
 0x46a   : > { %v1430_v60 = vadd.f32 %v1429_v58, %v4263_v55  ;;  %v1542_v61 = vpop.f32.mrf.mxu1 }
 0x46b   : > { %v1543_v62 = vadd.f32 %v1542_v61, %v4265_v56  ;;  %v1431_v63 = vpop.f32.mrf.mxu0 }
 0x46c   : > { %1621 = vst [vmem:[%s3616_s9] sm:$0xff] %v1430_v60  ;;  %v1432_v0 = vadd.f32 %v1431_v63, %v4267_v57  ;;  %v1544_v1 = vpop.f32.mrf.mxu1 }
 0x46d   : > { %1623 = vst [vmem:[%s3616_s9 + $0x10] sm:$0xff] %v1543_v62  ;;  %v1545_v2 = vadd.f32 %v1544_v1, %v4269_v59  ;;  %v1433_v3 = vpop.f32.mrf.mxu0 }
 0x46e   : > { %1622 = vst [vmem:[%s3616_s9 + $0x8] sm:$0xff] %v1432_v0  ;;  %v1434_v4 = vadd.f32 %v1433_v3, %v4263_v55  ;;  %v1546_v5 = vpop.f32.mrf.mxu1 }
 0x46f   : > { %1624 = vst [vmem:[%s3616_s9 + $0x18] sm:$0xff] %v1545_v2  ;;  %v1547_v6 = vadd.f32 %v1546_v5, %v4265_v56  ;;  %v1435_v7 = vpop.f32.mrf.mxu0 }
 0x470   : > { %1625 = vst [vmem:[%s3616_s9 + $0x20] sm:$0xff] %v1434_v4  ;;  %v1436_v8 = vadd.f32 %v1435_v7, %v4267_v57  ;;  %v1548_v9 = vpop.f32.mrf.mxu1 }
 0x471   : > { %1627 = vst [vmem:[%s3616_s9 + $0x30] sm:$0xff] %v1547_v6  ;;  %v1549_v10 = vadd.f32 %v1548_v9, %v4269_v59  ;;  %v1439_v11 = vpop.f32.mrf.mxu0 }
 0x472   : > { %1626 = vst [vmem:[%s3616_s9 + $0x28] sm:$0xff] %v1436_v8  ;;  %v1440_v12 = vadd.f32 %v1439_v11, %v4263_v55  ;;  %v1552_v13 = vpop.f32.mrf.mxu1 }
 0x473   : > { %1628 = vst [vmem:[%s3616_s9 + $0x38] sm:$0xff] %v1549_v10  ;;  %v1553_v14 = vadd.f32 %v1552_v13, %v4265_v56  ;;  %v1441_v15 = vpop.f32.mrf.mxu0 }
 0x474   : > { %1629 = vst [vmem:[%s3616_s9 + $0x40] sm:$0xff] %v1440_v12  ;;  %v1442_v16 = vadd.f32 %v1441_v15, %v4267_v57  ;;  %v1554_v17 = vpop.f32.mrf.mxu1 }
 0x475   : > { %1631 = vst [vmem:[%s3616_s9 + $0x50] sm:$0xff] %v1553_v14  ;;  %v1555_v18 = vadd.f32 %v1554_v17, %v4269_v59  ;;  %v1443_v19 = vpop.f32.mrf.mxu0 }
 0x476   : > { %1630 = vst [vmem:[%s3616_s9 + $0x48] sm:$0xff] %v1442_v16  ;;  %v1444_v20 = vadd.f32 %v1443_v19, %v4263_v55  ;;  %v1556_v21 = vpop.f32.mrf.mxu1 }
 0x477   : > { %1632 = vst [vmem:[%s3616_s9 + $0x58] sm:$0xff] %v1555_v18  ;;  %v1557_v22 = vadd.f32 %v1556_v21, %v4265_v56  ;;  %v1445_v23 = vpop.f32.mrf.mxu0 }
 0x478   : > { %1633 = vst [vmem:[%s3616_s9 + $0x60] sm:$0xff] %v1444_v20  ;;  %v1446_v24 = vadd.f32 %v1445_v23, %v4267_v57  ;;  %v1558_v25 = vpop.f32.mrf.mxu1 }
 0x479   : > { %1635 = vst [vmem:[%s3616_s9 + $0x70] sm:$0xff] %v1557_v22  ;;  %v1559_v26 = vadd.f32 %v1558_v25, %v4269_v59  ;;  %v1449_v27 = vpop.f32.mrf.mxu0 }
 0x47a   : > { %1634 = vst [vmem:[%s3616_s9 + $0x68] sm:$0xff] %v1446_v24  ;;  %v1450_v28 = vadd.f32 %v1449_v27, %v4263_v55  ;;  %v1562_v29 = vpop.f32.mrf.mxu1 }
 0x47b   : > { %1636 = vst [vmem:[%s3616_s9 + $0x78] sm:$0xff] %v1559_v26  ;;  %v1563_v30 = vadd.f32 %v1562_v29, %v4265_v56  ;;  %v1451_v31 = vpop.f32.mrf.mxu0 }
 0x47c   : > { %1637 = vst [vmem:[%s3616_s9 + $0x80] sm:$0xff] %v1450_v28  ;;  %v1452_v32 = vadd.f32 %v1451_v31, %v4267_v57  ;;  %v1564_v33 = vpop.f32.mrf.mxu1 }
 0x47d   : > { %1639 = vst [vmem:[%s3616_s9 + $0x90] sm:$0xff] %v1563_v30  ;;  %v1565_v34 = vadd.f32 %v1564_v33, %v4269_v59  ;;  %v1453_v35 = vpop.f32.mrf.mxu0 }
 0x47e   : > { %1638 = vst [vmem:[%s3616_s9 + $0x88] sm:$0xff] %v1452_v32  ;;  %v1454_v36 = vadd.f32 %v1453_v35, %v4263_v55  ;;  %v1566_v37 = vpop.f32.mrf.mxu1 }
 0x47f   : > { %1640 = vst [vmem:[%s3616_s9 + $0x98] sm:$0xff] %v1565_v34  ;;  %v1567_v38 = vadd.f32 %v1566_v37, %v4265_v56  ;;  %v1455_v39 = vpop.f32.mrf.mxu0 }
 0x480   : > { %1641 = vst [vmem:[%s3616_s9 + $0xa0] sm:$0xff] %v1454_v36  ;;  %v1456_v40 = vadd.f32 %v1455_v39, %v4267_v57  ;;  %v1568_v41 = vpop.f32.mrf.mxu1 }
 0x481   : > { %1643 = vst [vmem:[%s3616_s9 + $0xb0] sm:$0xff] %v1567_v38  ;;  %v1569_v42 = vadd.f32 %v1568_v41, %v4269_v59  ;;  %v1459_v43 = vpop.f32.mrf.mxu0 }
 0x482   : > { %1642 = vst [vmem:[%s3616_s9 + $0xa8] sm:$0xff] %v1456_v40  ;;  %v1460_v44 = vadd.f32 %v1459_v43, %v4263_v55  ;;  %v1572_v45 = vpop.f32.mrf.mxu1 }
 0x483   : > { %1644 = vst [vmem:[%s3616_s9 + $0xb8] sm:$0xff] %v1569_v42  ;;  %v1573_v46 = vadd.f32 %v1572_v45, %v4265_v56  ;;  %v1461_v47 = vpop.f32.mrf.mxu0 }
 0x484   : > { %1645 = vst [vmem:[%s3616_s9 + $0xc0] sm:$0xff] %v1460_v44  ;;  %v1462_v48 = vadd.f32 %v1461_v47, %v4267_v57  ;;  %v1574_v49 = vpop.f32.mrf.mxu1 }
 0x485   : > { %1647 = vst [vmem:[%s3616_s9 + $0xd0] sm:$0xff] %v1573_v46  ;;  %v1575_v50 = vadd.f32 %v1574_v49, %v4269_v59  ;;  %v1463_v51 = vpop.f32.mrf.mxu0 }
 0x486   : > { %1646 = vst [vmem:[%s3616_s9 + $0xc8] sm:$0xff] %v1462_v48  ;;  %v1464_v52 = vadd.f32 %v1463_v51, %v4263_v55  ;;  %v1576_v53 = vpop.f32.mrf.mxu1 }
 0x487   : > { %1648 = vst [vmem:[%s3616_s9 + $0xd8] sm:$0xff] %v1575_v50  ;;  %v1577_v54 = vadd.f32 %v1576_v53, %v4265_v56  ;;  %v1465_v58 = vpop.f32.mrf.mxu0 }
 0x488   : > { %1649 = vst [vmem:[%s3616_s9 + $0xe0] sm:$0xff] %v1464_v52  ;;  %v1466_v60 = vadd.f32 %v1465_v58, %v4267_v57  ;;  %v1578_v61 = vpop.f32.mrf.mxu1 }
 0x489   : > { %1651 = vst [vmem:[%s3616_s9 + $0xf0] sm:$0xff] %v1577_v54  ;;  %v1579_v62 = vadd.f32 %v1578_v61, %v4269_v59  ;;  %v1469_v63 = vpop.f32.mrf.mxu0 }
 0x48a   : > { %1650 = vst [vmem:[%s3616_s9 + $0xe8] sm:$0xff] %v1466_v60  ;;  %v1470_v0 = vadd.f32 %v1469_v63, %v4263_v55  ;;  %v1582_v1 = vpop.f32.mrf.mxu1 }
 0x48b   : > { %1652 = vst [vmem:[%s3616_s9 + $0xf8] sm:$0xff] %v1579_v62  ;;  %v1583_v2 = vadd.f32 %v1582_v1, %v4265_v56  ;;  %v1471_v3 = vpop.f32.mrf.mxu0 }
 0x48c   : > { %1653 = vst [vmem:[%s3616_s9 + $0x100] sm:$0xff] %v1470_v0  ;;  %v1472_v4 = vadd.f32 %v1471_v3, %v4267_v57  ;;  %v1584_v5 = vpop.f32.mrf.mxu1 }
 0x48d   : > { %1655 = vst [vmem:[%s3616_s9 + $0x110] sm:$0xff] %v1583_v2  ;;  %v1585_v6 = vadd.f32 %v1584_v5, %v4269_v59  ;;  %v1473_v7 = vpop.f32.mrf.mxu0 }
 0x48e   : > { %1654 = vst [vmem:[%s3616_s9 + $0x108] sm:$0xff] %v1472_v4  ;;  %v1474_v8 = vadd.f32 %v1473_v7, %v4263_v55  ;;  %v1586_v9 = vpop.f32.mrf.mxu1 }
 0x48f   : > { %1656 = vst [vmem:[%s3616_s9 + $0x118] sm:$0xff] %v1585_v6  ;;  %v1587_v10 = vadd.f32 %v1586_v9, %v4265_v56  ;;  %v1475_v11 = vpop.f32.mrf.mxu0 }
 0x490   : > { %1657 = vst [vmem:[%s3616_s9 + $0x120] sm:$0xff] %v1474_v8  ;;  %v1476_v12 = vadd.f32 %v1475_v11, %v4267_v57  ;;  %v1588_v13 = vpop.f32.mrf.mxu1 }
 0x491   : > { %1659 = vst [vmem:[%s3616_s9 + $0x130] sm:$0xff] %v1587_v10  ;;  %v1589_v14 = vadd.f32 %v1588_v13, %v4269_v59  ;;  %v1479_v15 = vpop.f32.mrf.mxu0 }
 0x492   : > { %1658 = vst [vmem:[%s3616_s9 + $0x128] sm:$0xff] %v1476_v12  ;;  %v1480_v16 = vadd.f32 %v1479_v15, %v4263_v55  ;;  %v1592_v17 = vpop.f32.mrf.mxu1 }
 0x493   : > { %1660 = vst [vmem:[%s3616_s9 + $0x138] sm:$0xff] %v1589_v14  ;;  %v1593_v18 = vadd.f32 %v1592_v17, %v4265_v56  ;;  %v1481_v19 = vpop.f32.mrf.mxu0 }
 0x494   : > { %1661 = vst [vmem:[%s3616_s9 + $0x140] sm:$0xff] %v1480_v16  ;;  %v1482_v20 = vadd.f32 %v1481_v19, %v4267_v57  ;;  %v1594_v21 = vpop.f32.mrf.mxu1 }
 0x495   : > { %1663 = vst [vmem:[%s3616_s9 + $0x150] sm:$0xff] %v1593_v18  ;;  %v1595_v22 = vadd.f32 %v1594_v21, %v4269_v59  ;;  %v1483_v23 = vpop.f32.mrf.mxu0 }
 0x496   : > { %1662 = vst [vmem:[%s3616_s9 + $0x148] sm:$0xff] %v1482_v20  ;;  %v1484_v24 = vadd.f32 %v1483_v23, %v4263_v55  ;;  %v1596_v25 = vpop.f32.mrf.mxu1 }
 0x497   : > { %1664 = vst [vmem:[%s3616_s9 + $0x158] sm:$0xff] %v1595_v22  ;;  %v1597_v26 = vadd.f32 %v1596_v25, %v4265_v56  ;;  %v1485_v27 = vpop.f32.mrf.mxu0 }
 0x498   : > { %1665 = vst [vmem:[%s3616_s9 + $0x160] sm:$0xff] %v1484_v24  ;;  %v1486_v28 = vadd.f32 %v1485_v27, %v4267_v57  ;;  %v1598_v29 = vpop.f32.mrf.mxu1 }
 0x499   : > { %1667 = vst [vmem:[%s3616_s9 + $0x170] sm:$0xff] %v1597_v26  ;;  %v1599_v30 = vadd.f32 %v1598_v29, %v4269_v59  ;;  %v1489_v31 = vpop.f32.mrf.mxu0 }
 0x49a   : > { %1666 = vst [vmem:[%s3616_s9 + $0x168] sm:$0xff] %v1486_v28  ;;  %v1490_v32 = vadd.f32 %v1489_v31, %v4263_v55  ;;  %v1602_v33 = vpop.f32.mrf.mxu1 }
 0x49b   : > { %1668 = vst [vmem:[%s3616_s9 + $0x178] sm:$0xff] %v1599_v30  ;;  %v1603_v34 = vadd.f32 %v1602_v33, %v4265_v56  ;;  %v1491_v35 = vpop.f32.mrf.mxu0 }
 0x49c   : > { %1669 = vst [vmem:[%s3616_s9 + $0x180] sm:$0xff] %v1490_v32  ;;  %v1492_v36 = vadd.f32 %v1491_v35, %v4267_v57  ;;  %v1604_v37 = vpop.f32.mrf.mxu1 }
 0x49d   : > { %1671 = vst [vmem:[%s3616_s9 + $0x190] sm:$0xff] %v1603_v34  ;;  %v1605_v38 = vadd.f32 %v1604_v37, %v4269_v59  ;;  %v1493_v39 = vpop.f32.mrf.mxu0 }
 0x49e   : > { %1670 = vst [vmem:[%s3616_s9 + $0x188] sm:$0xff] %v1492_v36  ;;  %v1494_v40 = vadd.f32 %v1493_v39, %v4263_v55  ;;  %v1606_v41 = vpop.f32.mrf.mxu1 }
 0x49f   : > { %1672 = vst [vmem:[%s3616_s9 + $0x198] sm:$0xff] %v1605_v38  ;;  %v1607_v42 = vadd.f32 %v1606_v41, %v4265_v56  ;;  %v1495_v43 = vpop.f32.mrf.mxu0 }
 0x4a0   : > { %1673 = vst [vmem:[%s3616_s9 + $0x1a0] sm:$0xff] %v1494_v40  ;;  %v1496_v44 = vadd.f32 %v1495_v43, %v4267_v57  ;;  %v1608_v45 = vpop.f32.mrf.mxu1 }
 0x4a1   : > { %1675 = vst [vmem:[%s3616_s9 + $0x1b0] sm:$0xff] %v1607_v42  ;;  %v1609_v46 = vadd.f32 %v1608_v45, %v4269_v59  ;;  %v1499_v47 = vpop.f32.mrf.mxu0 }
 0x4a2   : > { %1674 = vst [vmem:[%s3616_s9 + $0x1a8] sm:$0xff] %v1496_v44  ;;  %v1500_v48 = vadd.f32 %v1499_v47, %v4263_v55  ;;  %v1612_v49 = vpop.f32.mrf.mxu1 }
 0x4a3   : > { %1676 = vst [vmem:[%s3616_s9 + $0x1b8] sm:$0xff] %v1609_v46  ;;  %v1613_v50 = vadd.f32 %v1612_v49, %v4265_v56  ;;  %v1501_v51 = vpop.f32.mrf.mxu0 }
 0x4a4   : > { %1677 = vst [vmem:[%s3616_s9 + $0x1c0] sm:$0xff] %v1500_v48  ;;  %v1502_v52 = vadd.f32 %v1501_v51, %v4267_v57  ;;  %v1614_v53 = vpop.f32.mrf.mxu1 }
 0x4a5   : > { %1679 = vst [vmem:[%s3616_s9 + $0x1d0] sm:$0xff] %v1613_v50  ;;  %v1615_v54 = vadd.f32 %v1614_v53, %v4269_v59  ;;  %v1503_v58 = vpop.f32.mrf.mxu0 }
 0x4a6   : > { %1678 = vst [vmem:[%s3616_s9 + $0x1c8] sm:$0xff] %v1502_v52  ;;  %v1504_v60 = vadd.f32 %v1503_v58, %v4263_v55  ;;  %v1616_v61 = vpop.f32.mrf.mxu1 }
 0x4a7   : > { %1680 = vst [vmem:[%s3616_s9 + $0x1d8] sm:$0xff] %v1615_v54  ;;  %v1617_v62 = vadd.f32 %v1616_v61, %v4265_v56  ;;  %v1505_v63 = vpop.f32.mrf.mxu0 }
 0x4a8   : > { %1681 = vst [vmem:[%s3616_s9 + $0x1e0] sm:$0xff] %v1504_v60  ;;  %v1506_v0 = vadd.f32 %v1505_v63, %v4267_v57  ;;  %v1618_v1 = vpop.f32.mrf.mxu1 }
 0x4a9   : > { %1683 = vst [vmem:[%s3616_s9 + $0x1f0] sm:$0xff] %v1617_v62  ;;  %v1619_v55 = vadd.f32 %v1618_v1, %v4269_v59 }
 0x4aa   : > { %1682 = vst [vmem:[%s3616_s9 + $0x1e8] sm:$0xff] %v1506_v0 }
 0x4ab   : > { %1684 = vst [vmem:[%s3616_s9 + $0x1f8] sm:$0xff] %v1619_v55 }
 0x4ac   : > { %3254 = shalt.err (!%p3251_p11)
}
 0x4ad   : > { %s3255_s9 = scalar_lea.hbm %s4399_s18, 8192  ;;  %s3259_s26 = scalar_lea.hbm %s4513_s14, 32768 }
 0x4ae   : > { %p3256_p12 = scmp.ne.s32.totalorder %s4399_s18, %s3255_s9  ;;  %p3260_p8 = scmp.lt.s32.totalorder %s4399_s18, %s4513_s14 }
 0x4af   : > { %p3261_p6 = scmp.lt.s32.totalorder %s3259_s26, %s3255_s9 }
 0x4b0   : > { %p3257_p0 = pnand %p3256_p12, %p3548_p13 }
 0x4b1   : > { %p3262_p1 = por %p3261_p6, %p3260_p8 }
 0x4b2   : > { %p3258_p4 = pneg %p3257_p0 }
 0x4b4   : > { %p3263_p7 = pnand %p3262_p1, %p3258_p4 }
 0x4b6   : > { %3266 = shalt.err (!%p3263_p7)
}
 0x4b7   : > { %s3427_s0 = smov 512   ;;  %s3428_s6 = smov 1024  }
 0x4b8   : > { %s3429_s11 = smov 32  }
 0x4b9   : > { %2188 = dma.vmem_to_hbm [thread:$0]  (%p3548_p13), %s4403_s24, 8192, %s4399_s18, %s4411_s17, %s3427_s0, %s3428_s6, %s3429_s11  }
 0x4ba PF: > { %s4515_s12 = sld [smem:[#allocation99_spill]] }
 0x4bb   : > { %s4516_s27 = sld [smem:[#allocation93_spill]] }
 0x4c0   : > { %p2202_p9 = scmp.ge.s32.totalorder %s4515_s12, 2 }
 0x4c1   : > { %s1717_s3 = sand.u32 1, %s4516_s27  }
 0x4c2   : > { %p2198_p10 = pnand %p2202_p9, %p3553_p2  ;;  %s1718_s22 = scalar_lea.sflag [#allocation9], %s1717_s3 }
 0x4c4   : > { %p2199_p3 = pneg %p2198_p10 }
 0x4c6   : > { %3334 = dma.done.wait (%p2199_p3), %s1718_s22, 8192  }
 0x4c7   : > { %3336 = vsyncadd (%p2199_p3), %s1718_s22, 4294959104  ;;  %s27_s27 = sadd.s32 1, %s4515_s12   ;;  %s4518_s7 = sld [smem:[#allocation94_spill]] }
 0x4c8   : > { %p24_p5 = scmp.ge.s32.totalorder %s27_s27, 6   ;;  %s4519_s20 = sld [smem:[#allocation103_spill]] }
 0x4c9   : > { %s4520_s21 = sld [smem:[#allocation95_spill]]  ;;  %s4527_s18 = smov %s3343_s19 }
 0x4ca   : > { %s4521_s22 = sld [smem:[#allocation96_spill]] }
 0x4cb   : > { %s4522_s0 = sld [smem:[#allocation102_spill]]  ;;  %26 = sbr.rel (!%p24_p5) target bundleno = 19 (0x13), region = 341 }
 0x4cc   : > { %s4523_s23 = sld [smem:[#allocation97_spill]] }
 0x4cd   : > { %s4524_s24 = sld [smem:[#allocation98_spill]]  ;;  %s4528_s19 = smov %s4518_s7 }
 0x4ce   : > { %s4525_s25 = sld [smem:[#allocation100_spill]] }
 0x4cf   : > { %s4526_s26 = sld [smem:[#allocation101_spill]] }
 0x4d0   :  { %1723 = vsyncpa [#allocation8], 1 }
 0x4d1   :  { %1725 = vsyncpa [#allocation8 + $0x1], 1 }
 0x4d2   :  { %1726 = vsyncpa [#allocation11], 1 }
 0x4d3   :  { %1728 = vsyncpa [#allocation11 + $0x1], 1 }
 0x4d4   :  { %1729 = vsyncpa [#allocation9], 1 }
 0x4d5   :  { %1731 = vsyncpa [#allocation9 + $0x1], 1 }
 0x4d6   :  { %1732 = vsyncmov [#allocation4] }
 0x4d9   :  { %s1733_s15 = vpop.sfrf %1732 }
 0x4da   :  { %p2032_p13 = scmp.ne.s32.totalorder %s1733_s15, 0 }
 0x4dc   :  { %1737 = shalt.err (%p2032_p13)  }

</bundles_post_ra>
